<compile_context>
chip_gen: v6e
topology: v6e:2x2x1
jax: 0.10.0
libtpu: 0.0.40
codegen_flags: <defaults>
</compile_context>

<pallas_src>
import numpy as np
import jax
import jax.numpy as jnp
from jax.experimental import pallas as pl
from jax.experimental.pallas import tpu as pltpu

LANES = 128   # lane width for all channel/feature/class dims
K1 = 25       # 5x5 taps, C_in = 1 for conv1 (padded to 32 host-side)


# ------------------------------ host-side glue ------------------------------

def _conv1_im2col_pooled(x):
    """x: (N,1,32,32) f32 -> (N,1024,32) bf16.

    Row order is q*256 + ho*16 + wo with q = (H%2)*2 + (W%2) and output pixel
    (H, W) = (2*ho + H%2, 2*wo + W%2), so AvgPool2d(2) of the conv1 output is
    the mean of 4 contiguous, 256-row-aligned blocks inside the kernel.
    Column (tap) order is dh*5 + dw; K is padded 25 -> 32.
    """
    n = x.shape[0]
    xp = jnp.pad(x[:, 0], ((0, 0), (2, 2), (2, 2)))                      # (N,36,36)
    cols = jnp.stack([xp[:, dh:dh + 32, dw:dw + 32]
                      for dh in range(5) for dw in range(5)], axis=-1)   # (N,32,32,25)
    cols = cols.reshape(n, 16, 2, 16, 2, 25).transpose(0, 2, 4, 1, 3, 5)
    cols = cols.reshape(n, 1024, 25)
    cols = jnp.pad(cols, ((0, 0), (0, 0), (0, 32 - K1)))
    return cols.astype(jnp.bfloat16)


def _prepare_constants(params):
    """Pack weights into compact, lane-dense constants (bf16 except biases/wf)."""
    f32 = np.float32
    w1 = np.asarray(params["w1"], f32)    # (3, 1, 5, 5)
    w2 = np.asarray(params["w2"], f32)    # (8, 3, 5, 5)
    w3 = np.asarray(params["w3"], f32)    # (16, 8, 5, 5)
    wl1 = np.asarray(params["wl1"], f32)  # (latent, 16)
    wl2 = np.asarray(params["wl2"], f32)  # (classes, latent)
    b1 = np.asarray(params["b1"], f32)
    b2 = np.asarray(params["b2"], f32)
    b3 = np.asarray(params["b3"], f32)
    bl1 = np.asarray(params["bl1"], f32)
    bl2 = np.asarray(params["bl2"], f32)
    num_classes = wl2.shape[0]

    # conv1: rows = tap (dh*5+dw, 25 used of 32), cols = cout (3 used).
    w1m = np.zeros((32, LANES), f32)
    w1m[:K1, :3] = w1.reshape(3, K1).T

    # conv2: dw packed along K -> per-dh block of 40 rows (dw*8 + cin), cols = cout(8).
    w2m = np.zeros((5 * 40, LANES), f32)
    for dh in range(5):
        for dw in range(5):
            w2m[dh * 40 + dw * 8: dh * 40 + dw * 8 + 3, :8] = w2[:, :, dh, dw].T

    # conv3: per-dh block of 80 rows (dw*16 + cin(8)), cols = cout(16).
    w3m = np.zeros((5 * 80, LANES), f32)
    for dh in range(5):
        for dw in range(5):
            w3m[dh * 80 + dw * 16: dh * 80 + dw * 16 + 8, :16] = w3[:, :, dh, dw].T

    # pool2: AvgPool2d(2) over the valid 12x12 conv2 region (rows h*16+w of y2),
    # output row = ho*8 + wo (8-stride w layout -> 8-aligned conv3 dh offsets);
    # rows with wo in {6,7} stay zero (masking + padding in one matrix).
    p2 = np.zeros((48, 192), f32)
    for ho in range(6):
        for wo in range(6):
            for dh in range(2):
                for dw in range(2):
                    p2[ho * 8 + wo, (2 * ho + dh) * 16 + (2 * wo + dw)] = 0.25

    # Folded classifier: Linear(16->latent) o Linear(latent->classes), no ReLU between.
    wf = np.zeros((LANES, LANES), f32)
    wf[:16, :num_classes] = wl1.T @ wl2.T
    bf = bl1 @ wl2.T + bl2

    bias = np.zeros((8, LANES), f32)       # zero in all padded lanes
    bias[0, :3] = b1
    bias[1, :8] = b2
    bias[2, :16] = b3
    bias[3, :num_classes] = bf

    return dict(
        w1=jnp.asarray(w1m, jnp.bfloat16),
        w2=jnp.asarray(w2m, jnp.bfloat16),
        w3=jnp.asarray(w3m, jnp.bfloat16),
        p2=jnp.asarray(p2, jnp.bfloat16),
        wf=jnp.asarray(wf, jnp.float32),
        bias=jnp.asarray(bias, jnp.float32),
    )


# ------------------------------ fused Pallas kernel ------------------------------

def _lenet5_kernel(xcol_ref, w1_ref, b_ref, w2_ref, p2_ref, w3_ref, wf_ref,
                   out_ref, a1_ref, a2_ref, c2_ref, c3_ref):
    f32 = jnp.float32
    bf16 = jnp.bfloat16
    b1 = b_ref[0:1, :]
    b2 = b_ref[1:2, :]
    b3 = b_ref[2:3, :]
    bfold = b_ref[3:4, :]

    # ---- conv1 (5x5 'same', im2col matmul, K=32) + ReLU, fused with AvgPool2d(2).
    # xcol rows are ordered (pool-cell q, ho, wo): pooling = 3 aligned VPU adds.
    w1 = w1_ref[...]
    a1 = None
    for q in range(4):
        y1q = jnp.dot(xcol_ref[q * 256:(q + 1) * 256, :], w1,
                      preferred_element_type=f32)
        y1q = jnp.maximum(y1q + b1, 0.0)
        a1 = y1q if a1 is None else a1 + y1q
    a1_ref[0:256, :] = 0.25 * a1                       # (256,128): row = ho*16+wo
    a1_ref[256:272, :] = jnp.zeros((16, LANES), f32)   # zero tail for the dw shifts

    # ---- conv2 (5x5 valid on the 16x16 grid): pack the 5 dw taps along lanes
    # once (4 small misaligned copies), then 5 sublane-ALIGNED dots over dh.
    for dw in range(5):
        c2_ref[:, dw * 8:(dw + 1) * 8] = a1_ref[dw:dw + 256, 0:8].astype(bf16)
    y2 = jnp.dot(c2_ref[0:192, :], w2_ref[0:40, :], preferred_element_type=f32)
    for dh in range(1, 5):
        y2 = y2 + jnp.dot(c2_ref[dh * 16:dh * 16 + 192, :],
                          w2_ref[dh * 40:(dh + 1) * 40, :],
                          preferred_element_type=f32)
    y2 = jnp.maximum(y2 + b2, 0.0)                     # (192,128): rows h*16+w, valid h,w<12

    # ---- AvgPool2d(2) over the valid 12x12 region; output on an 8-stride w grid.
    a2 = jnp.dot(p2_ref[...], y2.astype(bf16), preferred_element_type=f32)
    a2_ref[0:48, :] = a2                               # (48,128): row = ho*8+wo, wo<6 used
    a2_ref[48:64, :] = jnp.zeros((16, LANES), f32)

    # ---- conv3 (5x5 valid on the 6x6 grid): same dw-packed scheme.
    for dw in range(5):
        c3_ref[:, dw * 16:(dw + 1) * 16] = a2_ref[dw:dw + 48, 0:16].astype(bf16)
    y3 = jnp.dot(c3_ref[0:16, :], w3_ref[0:80, :], preferred_element_type=f32)
    for dh in range(1, 5):
        y3 = y3 + jnp.dot(c3_ref[dh * 8:dh * 8 + 16, :],
                          w3_ref[dh * 80:(dh + 1) * 80, :],
                          preferred_element_type=f32)
    r3 = jnp.maximum(y3 + b3, 0.0)                     # (16,128): valid rows {0,1,8,9}

    # ---- AdaptiveAvgPool2d(1) over the 2x2 valid outputs + folded classifier.
    gap = 0.25 * (r3[0:1, :] + r3[1:2, :] + r3[8:9, :] + r3[9:10, :])   # (1,128)
    logits = jnp.dot(gap, wf_ref[...], preferred_element_type=f32) + bfold
    out_ref[...] = jnp.broadcast_to(logits, (8, LANES))


def make_lenet5_forward(params, batch):
    n = batch
    num_classes = int(np.asarray(params["wl2"]).shape[0])
    c = _prepare_constants(params)

    fused = pl.pallas_call(
        _lenet5_kernel,
        out_shape=jax.ShapeDtypeStruct((n, 8, LANES), jnp.float32),
        grid=(n,),
        in_specs=[
            pl.BlockSpec((None, 1024, 32), lambda i: (i, 0, 0)),   # per-image im2col
            pl.BlockSpec((32, LANES), lambda i: (0, 0)),           # w1 (resident)
            pl.BlockSpec((8, LANES), lambda i: (0, 0)),            # biases + folded bias
            pl.BlockSpec((200, LANES), lambda i: (0, 0)),          # conv2 weights (compact)
            pl.BlockSpec((48, 192), lambda i: (0, 0)),             # pool2 selector
            pl.BlockSpec((400, LANES), lambda i: (0, 0)),          # conv3 weights (compact)
            pl.BlockSpec((LANES, LANES), lambda i: (0, 0)),        # folded classifier
        ],
        out_specs=pl.BlockSpec((None, 8, LANES), lambda i: (i, 0, 0)),
        scratch_shapes=[
            pltpu.VMEM((272, LANES), jnp.float32),   # a1: pool1 output (16x16) + zero tail
            pltpu.VMEM((64, LANES), jnp.float32),    # a2: pool2 output (6x6, 8-stride) + tail
            pltpu.VMEM((256, 40), jnp.bfloat16),     # conv2 dw-packed operand
            pltpu.VMEM((48, 80), jnp.bfloat16),      # conv3 dw-packed operand
        ],
        compiler_params=pltpu.CompilerParams(dimension_semantics=("parallel",)),
    )

    @jax.jit
    def forward(x):
        assert x.shape == (n, 1, 32, 32), x.shape
        xcol = _conv1_im2col_pooled(x)                 # (n, 1024, 32) bf16
        out = fused(xcol, c["w1"], c["bias"], c["w2"], c["p2"], c["w3"], c["wf"])
        return out[:, 0, :num_classes]

    return forward


# -------------------------- deterministic parameters ------------------------

def init_params(key, input_channels=1, num_classes=10, latent_dim=32):
    def conv_init(k, cout, cin, ksz):
        bound = 1.0 / np.sqrt(cin * ksz * ksz)
        kw_, kb_ = jax.random.split(k)
        return (jax.random.uniform(kw_, (cout, cin, ksz, ksz), jnp.float32, -bound, bound),
                jax.random.uniform(kb_, (cout,), jnp.float32, -bound, bound))

    def lin_init(k, out_f, in_f):
        bound = 1.0 / np.sqrt(in_f)
        kw_, kb_ = jax.random.split(k)
        return (jax.random.uniform(kw_, (out_f, in_f), jnp.float32, -bound, bound),
                jax.random.uniform(kb_, (out_f,), jnp.float32, -bound, bound))

    k1, k2, k3, k4, k5 = jax.random.split(key, 5)
    w1, b1 = conv_init(k1, 3, input_channels, 5)
    w2, b2 = conv_init(k2, 8, 3, 5)
    w3, b3 = conv_init(k3, 16, 8, 5)
    wl1, bl1 = lin_init(k4, latent_dim, 16)
    wl2, bl2 = lin_init(k5, num_classes, latent_dim)
    return dict(w1=w1, b1=b1, w2=w2, b2=b2, w3=w3, b3=b3,
                wl1=wl1, bl1=bl1, wl2=wl2, bl2=bl2)


# ------------------------------ pure-JAX reference ---------------------------

def reference_forward(x, p):
    def conv(x, w, b, padding):
        y = jax.lax.conv_general_dilated(
            x, w, (1, 1), padding, dimension_numbers=("NCHW", "OIHW", "NCHW"))
        return y + b.reshape(1, -1, 1, 1)

    def avgpool2(x):
        n, ch, h, w = x.shape
        return x.reshape(n, ch, h // 2, 2, w // 2, 2).mean(axis=(3, 5))

    h = avgpool2(jax.nn.relu(conv(x, p["w1"], p["b1"], "SAME")))
    h = avgpool2(jax.nn.relu(conv(h, p["w2"], p["b2"], "VALID")))
    h = jax.nn.relu(conv(h, p["w3"], p["b3"], "VALID")).mean(axis=(2, 3))
    h = h @ p["wl1"].T + p["bl1"]
    return h @ p["wl2"].T + p["bl2"]


# ----------------------------------- main ------------------------------------

if __name__ == "__main__":
    key = jax.random.PRNGKey(0)
    pkey, xkey = jax.random.split(key)
    params = init_params(pkey, input_channels=1, num_classes=10, latent_dim=32)

    # NCHW like the PyTorch module: batch=2, channels=1, 32x32 spatial.
    x = jax.random.normal(xkey, (2, 1, 32, 32), dtype=jnp.float32)

    forward = make_lenet5_forward(params, batch=2)
    out = jax.block_until_ready(forward(x))
    assert out.shape == (2, 10), out.shape

    ref = reference_forward(x, params)
    # bf16 matmul operands with f32 accumulation -> well within 2e-2.
    np.testing.assert_allclose(np.asarray(out), np.asarray(ref), rtol=2e-2, atol=2e-2)

    print("KERNEL_OK")
</pallas_src>

<mosaic_0001>
module attributes {stable_mosaic.version = 11 : i64} {
  func.func @_lenet5_kernel(%arg0: i32, %arg1: memref<1x1024x32xbf16, #tpu.memory_space<vmem>>, %arg2: memref<32x128xbf16, #tpu.memory_space<vmem>>, %arg3: memref<8x128xf32, #tpu.memory_space<vmem>>, %arg4: memref<200x128xbf16, #tpu.memory_space<vmem>>, %arg5: memref<48x192xbf16, #tpu.memory_space<vmem>>, %arg6: memref<400x128xbf16, #tpu.memory_space<vmem>>, %arg7: memref<128x128xf32, #tpu.memory_space<vmem>>, %arg8: memref<1x8x128xf32, #tpu.memory_space<vmem>>, %arg9: memref<272x128xf32, #tpu.memory_space<vmem>>, %arg10: memref<64x128xf32, #tpu.memory_space<vmem>>, %arg11: memref<256x40xbf16, #tpu.memory_space<vmem>>, %arg12: memref<48x80xbf16, #tpu.memory_space<vmem>>) attributes {dimension_semantics = [#tpu.dimension_semantics<parallel>], iteration_bounds = array<i64: 2>, scalar_prefetch = 0 : i64, scratch_operands = 4 : i64, tpu.core_type = #tpu.core_type<tc>, window_params = [{transform_indices = @transform_0, window_bounds = array<i64: 1, 1024, 32>}, {pipeline_mode = #tpu.pipeline_mode<synchronous>, transform_indices = @transform_1, window_bounds = array<i64: 32, 128>}, {pipeline_mode = #tpu.pipeline_mode<synchronous>, transform_indices = @transform_2, window_bounds = array<i64: 8, 128>}, {pipeline_mode = #tpu.pipeline_mode<synchronous>, transform_indices = @transform_3, window_bounds = array<i64: 200, 128>}, {pipeline_mode = #tpu.pipeline_mode<synchronous>, transform_indices = @transform_4, window_bounds = array<i64: 48, 192>}, {pipeline_mode = #tpu.pipeline_mode<synchronous>, transform_indices = @transform_5, window_bounds = array<i64: 400, 128>}, {pipeline_mode = #tpu.pipeline_mode<synchronous>, transform_indices = @transform_6, window_bounds = array<i64: 128, 128>}, {transform_indices = @transform_7, window_bounds = array<i64: 1, 8, 128>}]} {
    %c0 = arith.constant 0 : index
    %c0_0 = arith.constant 0 : index
    %0 = vector.load %arg3[%c0, %c0_0] : memref<8x128xf32, #tpu.memory_space<vmem>>, vector<1x128xf32>
    %c1 = arith.constant 1 : index
    %c0_1 = arith.constant 0 : index
    %1 = vector.load %arg3[%c1, %c0_1] : memref<8x128xf32, #tpu.memory_space<vmem>>, vector<1x128xf32>
    %c2 = arith.constant 2 : index
    %c0_2 = arith.constant 0 : index
    %2 = vector.load %arg3[%c2, %c0_2] : memref<8x128xf32, #tpu.memory_space<vmem>>, vector<1x128xf32>
    %c3 = arith.constant 3 : index
    %c0_3 = arith.constant 0 : index
    %3 = vector.load %arg3[%c3, %c0_3] : memref<8x128xf32, #tpu.memory_space<vmem>>, vector<1x128xf32>
    %c0_4 = arith.constant 0 : index
    %c0_5 = arith.constant 0 : index
    %4 = vector.load %arg2[%c0_4, %c0_5] : memref<32x128xbf16, #tpu.memory_space<vmem>>, vector<32x128xbf16>
    %c0_6 = arith.constant 0 : index
    %c0_7 = arith.constant 0 : index
    %c0_8 = arith.constant 0 : index
    %5 = vector.load %arg1[%c0_6, %c0_7, %c0_8] : memref<1x1024x32xbf16, #tpu.memory_space<vmem>>, vector<1x256x32xbf16>
    %6 = vector.shape_cast %5 : vector<1x256x32xbf16> to vector<256x32xbf16>
    %cst = arith.constant dense<0.000000e+00> : vector<256x128xf32>
    %7 = tpu.matmul %6, %4, %cst {dimension_numbers = #tpu.dot_dimension_numbers<[1], [0], [0], [1], [0, 0, 1, 1], [], []>} : vector<256x32xbf16>, vector<32x128xbf16>, vector<256x128xf32> -> vector<256x128xf32>
    %8 = vector.broadcast %0 : vector<1x128xf32> to vector<256x128xf32>
    %9 = arith.addf %7, %8 : vector<256x128xf32>
    %cst_9 = arith.constant 0.000000e+00 : f32
    %10 = vector.broadcast %cst_9 : f32 to vector<256x128xf32>
    %11 = arith.maximumf %9, %10 : vector<256x128xf32>
    %c0_10 = arith.constant 0 : index
    %c256 = arith.constant 256 : index
    %c0_11 = arith.constant 0 : index
    %12 = vector.load %arg1[%c0_10, %c256, %c0_11] : memref<1x1024x32xbf16, #tpu.memory_space<vmem>>, vector<1x256x32xbf16>
    %13 = vector.shape_cast %12 : vector<1x256x32xbf16> to vector<256x32xbf16>
    %cst_12 = arith.constant dense<0.000000e+00> : vector<256x128xf32>
    %14 = tpu.matmul %13, %4, %cst_12 {dimension_numbers = #tpu.dot_dimension_numbers<[1], [0], [0], [1], [0, 0, 1, 1], [], []>} : vector<256x32xbf16>, vector<32x128xbf16>, vector<256x128xf32> -> vector<256x128xf32>
    %15 = vector.broadcast %0 : vector<1x128xf32> to vector<256x128xf32>
    %16 = arith.addf %14, %15 : vector<256x128xf32>
    %cst_13 = arith.constant 0.000000e+00 : f32
    %17 = vector.broadcast %cst_13 : f32 to vector<256x128xf32>
    %18 = arith.maximumf %16, %17 : vector<256x128xf32>
    %19 = arith.addf %11, %18 : vector<256x128xf32>
    %c0_14 = arith.constant 0 : index
    %c512 = arith.constant 512 : index
    %c0_15 = arith.constant 0 : index
    %20 = vector.load %arg1[%c0_14, %c512, %c0_15] : memref<1x1024x32xbf16, #tpu.memory_space<vmem>>, vector<1x256x32xbf16>
    %21 = vector.shape_cast %20 : vector<1x256x32xbf16> to vector<256x32xbf16>
    %cst_16 = arith.constant dense<0.000000e+00> : vector<256x128xf32>
    %22 = tpu.matmul %21, %4, %cst_16 {dimension_numbers = #tpu.dot_dimension_numbers<[1], [0], [0], [1], [0, 0, 1, 1], [], []>} : vector<256x32xbf16>, vector<32x128xbf16>, vector<256x128xf32> -> vector<256x128xf32>
    %23 = vector.broadcast %0 : vector<1x128xf32> to vector<256x128xf32>
    %24 = arith.addf %22, %23 : vector<256x128xf32>
    %cst_17 = arith.constant 0.000000e+00 : f32
    %25 = vector.broadcast %cst_17 : f32 to vector<256x128xf32>
    %26 = arith.maximumf %24, %25 : vector<256x128xf32>
    %27 = arith.addf %19, %26 : vector<256x128xf32>
    %c0_18 = arith.constant 0 : index
    %c768 = arith.constant 768 : index
    %c0_19 = arith.constant 0 : index
    %28 = vector.load %arg1[%c0_18, %c768, %c0_19] : memref<1x1024x32xbf16, #tpu.memory_space<vmem>>, vector<1x256x32xbf16>
    %29 = vector.shape_cast %28 : vector<1x256x32xbf16> to vector<256x32xbf16>
    %cst_20 = arith.constant dense<0.000000e+00> : vector<256x128xf32>
    %30 = tpu.matmul %29, %4, %cst_20 {dimension_numbers = #tpu.dot_dimension_numbers<[1], [0], [0], [1], [0, 0, 1, 1], [], []>} : vector<256x32xbf16>, vector<32x128xbf16>, vector<256x128xf32> -> vector<256x128xf32>
    %31 = vector.broadcast %0 : vector<1x128xf32> to vector<256x128xf32>
    %32 = arith.addf %30, %31 : vector<256x128xf32>
    %cst_21 = arith.constant 0.000000e+00 : f32
    %33 = vector.broadcast %cst_21 : f32 to vector<256x128xf32>
    %34 = arith.maximumf %32, %33 : vector<256x128xf32>
    %35 = arith.addf %27, %34 : vector<256x128xf32>
    %cst_22 = arith.constant 2.500000e-01 : f32
    %36 = vector.broadcast %cst_22 : f32 to vector<256x128xf32>
    %37 = arith.mulf %36, %35 : vector<256x128xf32>
    %c0_23 = arith.constant 0 : index
    %c0_24 = arith.constant 0 : index
    %38 = vector.load %arg9[%c0_23, %c0_24] : memref<272x128xf32, #tpu.memory_space<vmem>>, vector<256x128xf32>
    tpu.vector_store %arg9[%c0_23, %c0_24], %37 {strides = array<i32>} : memref<272x128xf32, #tpu.memory_space<vmem>>, vector<256x128xf32>,
    %cst_25 = arith.constant 0.000000e+00 : f32
    %39 = vector.broadcast %cst_25 : f32 to vector<16x128xf32>
    %c256_26 = arith.constant 256 : index
    %c0_27 = arith.constant 0 : index
    %40 = vector.load %arg9[%c256_26, %c0_27] : memref<272x128xf32, #tpu.memory_space<vmem>>, vector<16x128xf32>
    tpu.vector_store %arg9[%c256_26, %c0_27], %39 {strides = array<i32>} : memref<272x128xf32, #tpu.memory_space<vmem>>, vector<16x128xf32>,
    %c0_28 = arith.constant 0 : index
    %c0_29 = arith.constant 0 : index
    %41 = vector.load %arg9[%c0_28, %c0_29] : memref<272x128xf32, #tpu.memory_space<vmem>>, vector<256x8xf32>
    %42 = arith.truncf %41 : vector<256x8xf32> to vector<256x8xbf16>
    %c0_30 = arith.constant 0 : index
    %c0_31 = arith.constant 0 : index
    %43 = vector.load %arg11[%c0_30, %c0_31] : memref<256x40xbf16, #tpu.memory_space<vmem>>, vector<256x8xbf16>
    tpu.vector_store %arg11[%c0_30, %c0_31], %42 {strides = array<i32>} : memref<256x40xbf16, #tpu.memory_space<vmem>>, vector<256x8xbf16>,
    %c1_32 = arith.constant 1 : index
    %c0_33 = arith.constant 0 : index
    %44 = vector.load %arg9[%c1_32, %c0_33] : memref<272x128xf32, #tpu.memory_space<vmem>>, vector<256x8xf32>
    %45 = arith.truncf %44 : vector<256x8xf32> to vector<256x8xbf16>
    %c0_34 = arith.constant 0 : index
    %c8 = arith.constant 8 : index
    %46 = vector.load %arg11[%c0_34, %c8] : memref<256x40xbf16, #tpu.memory_space<vmem>>, vector<256x8xbf16>
    tpu.vector_store %arg11[%c0_34, %c8], %45 {strides = array<i32>} : memref<256x40xbf16, #tpu.memory_space<vmem>>, vector<256x8xbf16>,
    %c2_35 = arith.constant 2 : index
    %c0_36 = arith.constant 0 : index
    %47 = vector.load %arg9[%c2_35, %c0_36] : memref<272x128xf32, #tpu.memory_space<vmem>>, vector<256x8xf32>
    %48 = arith.truncf %47 : vector<256x8xf32> to vector<256x8xbf16>
    %c0_37 = arith.constant 0 : index
    %c16 = arith.constant 16 : index
    %49 = vector.load %arg11[%c0_37, %c16] : memref<256x40xbf16, #tpu.memory_space<vmem>>, vector<256x8xbf16>
    tpu.vector_store %arg11[%c0_37, %c16], %48 {strides = array<i32>} : memref<256x40xbf16, #tpu.memory_space<vmem>>, vector<256x8xbf16>,
    %c3_38 = arith.constant 3 : index
    %c0_39 = arith.constant 0 : index
    %50 = vector.load %arg9[%c3_38, %c0_39] : memref<272x128xf32, #tpu.memory_space<vmem>>, vector<256x8xf32>
    %51 = arith.truncf %50 : vector<256x8xf32> to vector<256x8xbf16>
    %c0_40 = arith.constant 0 : index
    %c24 = arith.constant 24 : index
    %52 = vector.load %arg11[%c0_40, %c24] : memref<256x40xbf16, #tpu.memory_space<vmem>>, vector<256x8xbf16>
    tpu.vector_store %arg11[%c0_40, %c24], %51 {strides = array<i32>} : memref<256x40xbf16, #tpu.memory_space<vmem>>, vector<256x8xbf16>,
    %c4 = arith.constant 4 : index
    %c0_41 = arith.constant 0 : index
    %53 = vector.load %arg9[%c4, %c0_41] : memref<272x128xf32, #tpu.memory_space<vmem>>, vector<256x8xf32>
    %54 = arith.truncf %53 : vector<256x8xf32> to vector<256x8xbf16>
    %c0_42 = arith.constant 0 : index
    %c32 = arith.constant 32 : index
    %55 = vector.load %arg11[%c0_42, %c32] : memref<256x40xbf16, #tpu.memory_space<vmem>>, vector<256x8xbf16>
    tpu.vector_store %arg11[%c0_42, %c32], %54 {strides = array<i32>} : memref<256x40xbf16, #tpu.memory_space<vmem>>, vector<256x8xbf16>,
    %c0_43 = arith.constant 0 : index
    %c0_44 = arith.constant 0 : index
    %56 = vector.load %arg11[%c0_43, %c0_44] : memref<256x40xbf16, #tpu.memory_space<vmem>>, vector<192x40xbf16>
    %c0_45 = arith.constant 0 : index
    %c0_46 = arith.constant 0 : index
    %57 = vector.load %arg4[%c0_45, %c0_46] : memref<200x128xbf16, #tpu.memory_space<vmem>>, vector<40x128xbf16>
    %cst_47 = arith.constant dense<0.000000e+00> : vector<192x128xf32>
    %58 = tpu.matmul %56, %57, %cst_47 {dimension_numbers = #tpu.dot_dimension_numbers<[1], [0], [0], [1], [0, 0, 1, 1], [], []>} : vector<192x40xbf16>, vector<40x128xbf16>, vector<192x128xf32> -> vector<192x128xf32>
    %c16_48 = arith.constant 16 : index
    %c0_49 = arith.constant 0 : index
    %59 = vector.load %arg11[%c16_48, %c0_49] : memref<256x40xbf16, #tpu.memory_space<vmem>>, vector<192x40xbf16>
    %c40 = arith.constant 40 : index
    %c0_50 = arith.constant 0 : index
    %60 = vector.load %arg4[%c40, %c0_50] : memref<200x128xbf16, #tpu.memory_space<vmem>>, vector<40x128xbf16>
    %cst_51 = arith.constant dense<0.000000e+00> : vector<192x128xf32>
    %61 = tpu.matmul %59, %60, %cst_51 {dimension_numbers = #tpu.dot_dimension_numbers<[1], [0], [0], [1], [0, 0, 1, 1], [], []>} : vector<192x40xbf16>, vector<40x128xbf16>, vector<192x128xf32> -> vector<192x128xf32>
    %62 = arith.addf %58, %61 : vector<192x128xf32>
    %c32_52 = arith.constant 32 : index
    %c0_53 = arith.constant 0 : index
    %63 = vector.load %arg11[%c32_52, %c0_53] : memref<256x40xbf16, #tpu.memory_space<vmem>>, vector<192x40xbf16>
    %c80 = arith.constant 80 : index
    %c0_54 = arith.constant 0 : index
    %64 = vector.load %arg4[%c80, %c0_54] : memref<200x128xbf16, #tpu.memory_space<vmem>>, vector<40x128xbf16>
    %cst_55 = arith.constant dense<0.000000e+00> : vector<192x128xf32>
    %65 = tpu.matmul %63, %64, %cst_55 {dimension_numbers = #tpu.dot_dimension_numbers<[1], [0], [0], [1], [0, 0, 1, 1], [], []>} : vector<192x40xbf16>, vector<40x128xbf16>, vector<192x128xf32> -> vector<192x128xf32>
    %66 = arith.addf %62, %65 : vector<192x128xf32>
    %c48 = arith.constant 48 : index
    %c0_56 = arith.constant 0 : index
    %67 = vector.load %arg11[%c48, %c0_56] : memref<256x40xbf16, #tpu.memory_space<vmem>>, vector<192x40xbf16>
    %c120 = arith.constant 120 : index
    %c0_57 = arith.constant 0 : index
    %68 = vector.load %arg4[%c120, %c0_57] : memref<200x128xbf16, #tpu.memory_space<vmem>>, vector<40x128xbf16>
    %cst_58 = arith.constant dense<0.000000e+00> : vector<192x128xf32>
    %69 = tpu.matmul %67, %68, %cst_58 {dimension_numbers = #tpu.dot_dimension_numbers<[1], [0], [0], [1], [0, 0, 1, 1], [], []>} : vector<192x40xbf16>, vector<40x128xbf16>, vector<192x128xf32> -> vector<192x128xf32>
    %70 = arith.addf %66, %69 : vector<192x128xf32>
    %c64 = arith.constant 64 : index
    %c0_59 = arith.constant 0 : index
    %71 = vector.load %arg11[%c64, %c0_59] : memref<256x40xbf16, #tpu.memory_space<vmem>>, vector<192x40xbf16>
    %c160 = arith.constant 160 : index
    %c0_60 = arith.constant 0 : index
    %72 = vector.load %arg4[%c160, %c0_60] : memref<200x128xbf16, #tpu.memory_space<vmem>>, vector<40x128xbf16>
    %cst_61 = arith.constant dense<0.000000e+00> : vector<192x128xf32>
    %73 = tpu.matmul %71, %72, %cst_61 {dimension_numbers = #tpu.dot_dimension_numbers<[1], [0], [0], [1], [0, 0, 1, 1], [], []>} : vector<192x40xbf16>, vector<40x128xbf16>, vector<192x128xf32> -> vector<192x128xf32>
    %74 = arith.addf %70, %73 : vector<192x128xf32>
    %75 = vector.broadcast %1 : vector<1x128xf32> to vector<192x128xf32>
    %76 = arith.addf %74, %75 : vector<192x128xf32>
    %cst_62 = arith.constant 0.000000e+00 : f32
    %77 = vector.broadcast %cst_62 : f32 to vector<192x128xf32>
    %78 = arith.maximumf %76, %77 : vector<192x128xf32>
    %c0_63 = arith.constant 0 : index
    %c0_64 = arith.constant 0 : index
    %79 = vector.load %arg5[%c0_63, %c0_64] : memref<48x192xbf16, #tpu.memory_space<vmem>>, vector<48x192xbf16>
    %80 = arith.truncf %78 : vector<192x128xf32> to vector<192x128xbf16>
    %cst_65 = arith.constant dense<0.000000e+00> : vector<48x128xf32>
    %81 = tpu.matmul %79, %80, %cst_65 {dimension_numbers = #tpu.dot_dimension_numbers<[1], [0], [0], [1], [0, 0, 1, 1], [], []>} : vector<48x192xbf16>, vector<192x128xbf16>, vector<48x128xf32> -> vector<48x128xf32>
    %c0_66 = arith.constant 0 : index
    %c0_67 = arith.constant 0 : index
    %82 = vector.load %arg10[%c0_66, %c0_67] : memref<64x128xf32, #tpu.memory_space<vmem>>, vector<48x128xf32>
    tpu.vector_store %arg10[%c0_66, %c0_67], %81 {strides = array<i32>} : memref<64x128xf32, #tpu.memory_space<vmem>>, vector<48x128xf32>,
    %cst_68 = arith.constant 0.000000e+00 : f32
    %83 = vector.broadcast %cst_68 : f32 to vector<16x128xf32>
    %c48_69 = arith.constant 48 : index
    %c0_70 = arith.constant 0 : index
    %84 = vector.load %arg10[%c48_69, %c0_70] : memref<64x128xf32, #tpu.memory_space<vmem>>, vector<16x128xf32>
    tpu.vector_store %arg10[%c48_69, %c0_70], %83 {strides = array<i32>} : memref<64x128xf32, #tpu.memory_space<vmem>>, vector<16x128xf32>,
    %c0_71 = arith.constant 0 : index
    %c0_72 = arith.constant 0 : index
    %85 = vector.load %arg10[%c0_71, %c0_72] : memref<64x128xf32, #tpu.memory_space<vmem>>, vector<48x16xf32>
    %86 = arith.truncf %85 : vector<48x16xf32> to vector<48x16xbf16>
    %c0_73 = arith.constant 0 : index
    %c0_74 = arith.constant 0 : index
    %87 = vector.load %arg12[%c0_73, %c0_74] : memref<48x80xbf16, #tpu.memory_space<vmem>>, vector<48x16xbf16>
    tpu.vector_store %arg12[%c0_73, %c0_74], %86 {strides = array<i32>} : memref<48x80xbf16, #tpu.memory_space<vmem>>, vector<48x16xbf16>,
    %c1_75 = arith.constant 1 : index
    %c0_76 = arith.constant 0 : index
    %88 = vector.load %arg10[%c1_75, %c0_76] : memref<64x128xf32, #tpu.memory_space<vmem>>, vector<48x16xf32>
    %89 = arith.truncf %88 : vector<48x16xf32> to vector<48x16xbf16>
    %c0_77 = arith.constant 0 : index
    %c16_78 = arith.constant 16 : index
    %90 = vector.load %arg12[%c0_77, %c16_78] : memref<48x80xbf16, #tpu.memory_space<vmem>>, vector<48x16xbf16>
    tpu.vector_store %arg12[%c0_77, %c16_78], %89 {strides = array<i32>} : memref<48x80xbf16, #tpu.memory_space<vmem>>, vector<48x16xbf16>,
    %c2_79 = arith.constant 2 : index
    %c0_80 = arith.constant 0 : index
    %91 = vector.load %arg10[%c2_79, %c0_80] : memref<64x128xf32, #tpu.memory_space<vmem>>, vector<48x16xf32>
    %92 = arith.truncf %91 : vector<48x16xf32> to vector<48x16xbf16>
    %c0_81 = arith.constant 0 : index
    %c32_82 = arith.constant 32 : index
    %93 = vector.load %arg12[%c0_81, %c32_82] : memref<48x80xbf16, #tpu.memory_space<vmem>>, vector<48x16xbf16>
    tpu.vector_store %arg12[%c0_81, %c32_82], %92 {strides = array<i32>} : memref<48x80xbf16, #tpu.memory_space<vmem>>, vector<48x16xbf16>,
    %c3_83 = arith.constant 3 : index
    %c0_84 = arith.constant 0 : index
    %94 = vector.load %arg10[%c3_83, %c0_84] : memref<64x128xf32, #tpu.memory_space<vmem>>, vector<48x16xf32>
    %95 = arith.truncf %94 : vector<48x16xf32> to vector<48x16xbf16>
    %c0_85 = arith.constant 0 : index
    %c48_86 = arith.constant 48 : index
    %96 = vector.load %arg12[%c0_85, %c48_86] : memref<48x80xbf16, #tpu.memory_space<vmem>>, vector<48x16xbf16>
    tpu.vector_store %arg12[%c0_85, %c48_86], %95 {strides = array<i32>} : memref<48x80xbf16, #tpu.memory_space<vmem>>, vector<48x16xbf16>,
    %c4_87 = arith.constant 4 : index
    %c0_88 = arith.constant 0 : index
    %97 = vector.load %arg10[%c4_87, %c0_88] : memref<64x128xf32, #tpu.memory_space<vmem>>, vector<48x16xf32>
    %98 = arith.truncf %97 : vector<48x16xf32> to vector<48x16xbf16>
    %c0_89 = arith.constant 0 : index
    %c64_90 = arith.constant 64 : index
    %99 = vector.load %arg12[%c0_89, %c64_90] : memref<48x80xbf16, #tpu.memory_space<vmem>>, vector<48x16xbf16>
    tpu.vector_store %arg12[%c0_89, %c64_90], %98 {strides = array<i32>} : memref<48x80xbf16, #tpu.memory_space<vmem>>, vector<48x16xbf16>,
    %c0_91 = arith.constant 0 : index
    %c0_92 = arith.constant 0 : index
    %100 = vector.load %arg12[%c0_91, %c0_92] : memref<48x80xbf16, #tpu.memory_space<vmem>>, vector<16x80xbf16>
    %c0_93 = arith.constant 0 : index
    %c0_94 = arith.constant 0 : index
    %101 = vector.load %arg6[%c0_93, %c0_94] : memref<400x128xbf16, #tpu.memory_space<vmem>>, vector<80x128xbf16>
    %cst_95 = arith.constant dense<0.000000e+00> : vector<16x128xf32>
    %102 = tpu.matmul %100, %101, %cst_95 {dimension_numbers = #tpu.dot_dimension_numbers<[1], [0], [0], [1], [0, 0, 1, 1], [], []>} : vector<16x80xbf16>, vector<80x128xbf16>, vector<16x128xf32> -> vector<16x128xf32>
    %c8_96 = arith.constant 8 : index
    %c0_97 = arith.constant 0 : index
    %103 = vector.load %arg12[%c8_96, %c0_97] : memref<48x80xbf16, #tpu.memory_space<vmem>>, vector<16x80xbf16>
    %c80_98 = arith.constant 80 : index
    %c0_99 = arith.constant 0 : index
    %104 = vector.load %arg6[%c80_98, %c0_99] : memref<400x128xbf16, #tpu.memory_space<vmem>>, vector<80x128xbf16>
    %cst_100 = arith.constant dense<0.000000e+00> : vector<16x128xf32>
    %105 = tpu.matmul %103, %104, %cst_100 {dimension_numbers = #tpu.dot_dimension_numbers<[1], [0], [0], [1], [0, 0, 1, 1], [], []>} : vector<16x80xbf16>, vector<80x128xbf16>, vector<16x128xf32> -> vector<16x128xf32>
    %106 = arith.addf %102, %105 : vector<16x128xf32>
    %c16_101 = arith.constant 16 : index
    %c0_102 = arith.constant 0 : index
    %107 = vector.load %arg12[%c16_101, %c0_102] : memref<48x80xbf16, #tpu.memory_space<vmem>>, vector<16x80xbf16>
    %c160_103 = arith.constant 160 : index
    %c0_104 = arith.constant 0 : index
    %108 = vector.load %arg6[%c160_103, %c0_104] : memref<400x128xbf16, #tpu.memory_space<vmem>>, vector<80x128xbf16>
    %cst_105 = arith.constant dense<0.000000e+00> : vector<16x128xf32>
    %109 = tpu.matmul %107, %108, %cst_105 {dimension_numbers = #tpu.dot_dimension_numbers<[1], [0], [0], [1], [0, 0, 1, 1], [], []>} : vector<16x80xbf16>, vector<80x128xbf16>, vector<16x128xf32> -> vector<16x128xf32>
    %110 = arith.addf %106, %109 : vector<16x128xf32>
    %c24_106 = arith.constant 24 : index
    %c0_107 = arith.constant 0 : index
    %111 = vector.load %arg12[%c24_106, %c0_107] : memref<48x80xbf16, #tpu.memory_space<vmem>>, vector<16x80xbf16>
    %c240 = arith.constant 240 : index
    %c0_108 = arith.constant 0 : index
    %112 = vector.load %arg6[%c240, %c0_108] : memref<400x128xbf16, #tpu.memory_space<vmem>>, vector<80x128xbf16>
    %cst_109 = arith.constant dense<0.000000e+00> : vector<16x128xf32>
    %113 = tpu.matmul %111, %112, %cst_109 {dimension_numbers = #tpu.dot_dimension_numbers<[1], [0], [0], [1], [0, 0, 1, 1], [], []>} : vector<16x80xbf16>, vector<80x128xbf16>, vector<16x128xf32> -> vector<16x128xf32>
    %114 = arith.addf %110, %113 : vector<16x128xf32>
    %c32_110 = arith.constant 32 : index
    %c0_111 = arith.constant 0 : index
    %115 = vector.load %arg12[%c32_110, %c0_111] : memref<48x80xbf16, #tpu.memory_space<vmem>>, vector<16x80xbf16>
    %c320 = arith.constant 320 : index
    %c0_112 = arith.constant 0 : index
    %116 = vector.load %arg6[%c320, %c0_112] : memref<400x128xbf16, #tpu.memory_space<vmem>>, vector<80x128xbf16>
    %cst_113 = arith.constant dense<0.000000e+00> : vector<16x128xf32>
    %117 = tpu.matmul %115, %116, %cst_113 {dimension_numbers = #tpu.dot_dimension_numbers<[1], [0], [0], [1], [0, 0, 1, 1], [], []>} : vector<16x80xbf16>, vector<80x128xbf16>, vector<16x128xf32> -> vector<16x128xf32>
    %118 = arith.addf %114, %117 : vector<16x128xf32>
    %119 = vector.broadcast %2 : vector<1x128xf32> to vector<16x128xf32>
    %120 = arith.addf %118, %119 : vector<16x128xf32>
    %cst_114 = arith.constant 0.000000e+00 : f32
    %121 = vector.broadcast %cst_114 : f32 to vector<16x128xf32>
    %122 = arith.maximumf %120, %121 : vector<16x128xf32>
    %123 = vector.extract_strided_slice %122 {offsets = [0, 0], sizes = [1, 128], strides = [1, 1]} : vector<16x128xf32> to vector<1x128xf32>
    %124 = vector.extract_strided_slice %122 {offsets = [1, 0], sizes = [1, 128], strides = [1, 1]} : vector<16x128xf32> to vector<1x128xf32>
    %125 = arith.addf %123, %124 : vector<1x128xf32>
    %126 = vector.extract_strided_slice %122 {offsets = [8, 0], sizes = [1, 128], strides = [1, 1]} : vector<16x128xf32> to vector<1x128xf32>
    %127 = arith.addf %125, %126 : vector<1x128xf32>
    %128 = vector.extract_strided_slice %122 {offsets = [9, 0], sizes = [1, 128], strides = [1, 1]} : vector<16x128xf32> to vector<1x128xf32>
    %129 = arith.addf %127, %128 : vector<1x128xf32>
    %cst_115 = arith.constant 2.500000e-01 : f32
    %130 = vector.broadcast %cst_115 : f32 to vector<1x128xf32>
    %131 = arith.mulf %130, %129 : vector<1x128xf32>
    %c0_116 = arith.constant 0 : index
    %c0_117 = arith.constant 0 : index
    %132 = vector.load %arg7[%c0_116, %c0_117] : memref<128x128xf32, #tpu.memory_space<vmem>>, vector<128x128xf32>
    %cst_118 = arith.constant dense<0.000000e+00> : vector<1x128xf32>
    %133 = tpu.matmul %131, %132, %cst_118 {dimension_numbers = #tpu.dot_dimension_numbers<[1], [0], [0], [1], [0, 0, 1, 1], [], []>} : vector<1x128xf32>, vector<128x128xf32>, vector<1x128xf32> -> vector<1x128xf32>
    %134 = arith.addf %133, %3 : vector<1x128xf32>
    %135 = vector.shape_cast %134 : vector<1x128xf32> to vector<1x128xf32>
    %136 = vector.broadcast %135 : vector<1x128xf32> to vector<8x128xf32>
    %c0_119 = arith.constant 0 : index
    %c0_120 = arith.constant 0 : index
    %c0_121 = arith.constant 0 : index
    %137 = vector.load %arg8[%c0_119, %c0_120, %c0_121] : memref<1x8x128xf32, #tpu.memory_space<vmem>>, vector<1x8x128xf32>
    %138 = vector.shape_cast %137 : vector<1x8x128xf32> to vector<8x128xf32>
    %139 = vector.shape_cast %136 : vector<8x128xf32> to vector<1x8x128xf32>
    tpu.vector_store %arg8[%c0_119, %c0_120, %c0_121], %139 {strides = array<i32>} : memref<1x8x128xf32, #tpu.memory_space<vmem>>, vector<1x8x128xf32>,
    return
  }
  func.func @transform_0(%arg0: i32) -> (i32, i32, i32) {
    %c0_i32 = arith.constant 0 : i32
    %c0_i32_0 = arith.constant 0 : i32
    %c0_i32_1 = arith.constant 0 : i32
    return %arg0, %c0_i32, %c0_i32_0 : i32, i32, i32
  }
  func.func @transform_1(%arg0: i32) -> (i32, i32) {
    %c0_i32 = arith.constant 0 : i32
    %c0_i32_0 = arith.constant 0 : i32
    %c0_i32_1 = arith.constant 0 : i32
    return %c0_i32, %c0_i32_0 : i32, i32
  }
  func.func @transform_2(%arg0: i32) -> (i32, i32) {
    %c0_i32 = arith.constant 0 : i32
    %c0_i32_0 = arith.constant 0 : i32
    %c0_i32_1 = arith.constant 0 : i32
    return %c0_i32, %c0_i32_0 : i32, i32
  }
  func.func @transform_3(%arg0: i32) -> (i32, i32) {
    %c0_i32 = arith.constant 0 : i32
    %c0_i32_0 = arith.constant 0 : i32
    %c0_i32_1 = arith.constant 0 : i32
    return %c0_i32, %c0_i32_0 : i32, i32
  }
  func.func @transform_4(%arg0: i32) -> (i32, i32) {
    %c0_i32 = arith.constant 0 : i32
    %c0_i32_0 = arith.constant 0 : i32
    %c0_i32_1 = arith.constant 0 : i32
    return %c0_i32, %c0_i32_0 : i32, i32
  }
  func.func @transform_5(%arg0: i32) -> (i32, i32) {
    %c0_i32 = arith.constant 0 : i32
    %c0_i32_0 = arith.constant 0 : i32
    %c0_i32_1 = arith.constant 0 : i32
    return %c0_i32, %c0_i32_0 : i32, i32
  }
  func.func @transform_6(%arg0: i32) -> (i32, i32) {
    %c0_i32 = arith.constant 0 : i32
    %c0_i32_0 = arith.constant 0 : i32
    %c0_i32_1 = arith.constant 0 : i32
    return %c0_i32, %c0_i32_0 : i32, i32
  }
  func.func @transform_7(%arg0: i32) -> (i32, i32, i32) {
    %c0_i32 = arith.constant 0 : i32
    %c0_i32_0 = arith.constant 0 : i32
    %c0_i32_1 = arith.constant 0 : i32
    return %arg0, %c0_i32, %c0_i32_0 : i32, i32, i32
  }
}

</mosaic_0001>

<bundles_post_ra>
// kernel: forward.1
= control target key start
LH: loop header
LB: loop body
LE: loop exit
PB: predicated region body
PF: predicated region fallthrough
CT: control target
= control target key end

     0   :  { %s6987_s24 = smov 0   ;;  %s8528_s0 = inlined_call_operand.vmem [shape: bf16[2,1024,32], index: 0, kind: input, shape index: {}]   ;;  %s8529_s1 = inlined_call_operand.vmem [shape: bf16[32,128], index: 1, kind: input, shape index: {}]   ;;  %s8530_s2 = inlined_call_operand.vmem [shape: f32[8,128], index: 2, kind: input, shape index: {}]   ;;  %s8531_s3 = inlined_call_operand.vmem [shape: bf16[200,128], index: 3, kind: input, shape index: {}]   ;;  %s8532_s4 = inlined_call_operand.vmem [shape: bf16[48,192], index: 4, kind: input, shape index: {}]   ;;  %s8533_s5 = inlined_call_operand.vmem [shape: bf16[400,128], index: 5, kind: input, shape index: {}]   ;;  %s8534_s6 = inlined_call_operand.vmem [shape: f32[128,128], index: 6, kind: input, shape index: {}]   ;;  %s8535_s7 = inlined_call_operand.vmem [shape: f32[2,8,128], index: 7, kind: output, shape index: {}]  }
   0x1 LB: > { %s5448_s25 = sadd.s32 4294967295, %s6936_s24   ;;  %p5452_p0 = scmp.ge.s32.totalorder %s6936_s24, 1  ;;  %s6936_s24 = sphi %s6987_s24, %s17_s24  }
   0x2   : > { %p237_p1 = scmp.lt.s32.totalorder %s6936_s24, 3 }
   0x4   : > { %p238_p2 = pnand %p5452_p0, %p237_p1 }
   0x6   : > { %241 = sbr.rel (%p238_p2) target bundleno = 1769 (0x6e9), region = 48 }
   0xb   : > { %v6998_v0 = vld [vmem:[%s8529_s1 + $0x8] sm:$0xff]   ;;  %p268_p3 = scmp.lt.s32.totalorder %s5448_s25, 1  ;;  %v7003_v1 = vld [vmem:[%s8529_s1] sm:$0xff]   ;;  %vm414_vm0 = vcmask 261120   ;;  %vm2037_vm1 = vcmask 60416   ;;  %s6939_s13 = smov 8  }
   0xc   : > { %6334 = vmatprep.subr.bf16.mxu0 %v6998_v0  ;;  %6733 = vmatprep.subr.bf16.mxu1 %v6998_v0  ;;  %s6940_s14 = smov 16   ;;  %s6941_s15 = smov 24   ;;  %vm3246_vm2 = vcmask 1043456   ;;  %vm2294_vm3 = vcmask 126016   ;;  %vm2551_vm4 = vcmask 191616   ;;  %vm2808_vm5 = vcmask 257216  }
   0xd   : > { %s8553_s25 = smov (!%p268_p3, %s5448_s25), 1  ;;  %6335 = vmatpush3.bf16.msra.mxu0 %v6998_v0  ;;  %6735 = vmatpush3.bf16.msra.mxu1 %v6998_v0  ;;  %s6942_s16 = smov 32   ;;  %vm3065_vm6 = vcmask 322816   ;;  %vm3209_vm7 = vcmask 326656   ;;  %vm4519_vm8 = vcmask 523264   ;;  %vm4624_vm9 = vcmask 125952  }
   0xe   : > { %6336 = vmatprep.subr.bf16.mxu0 %v7003_v1  ;;  %s5949_s30 = sshll.u32 %s8553_s25, 9  ;;  %6734 = vmatprep.subr.bf16.mxu1 %v7003_v1  ;;  %vm6946_vm10 = vmmov 0   ;;  %vm4673_vm11 = vcmask 257152   ;;  %vm4722_vm12 = vcmask 388352   ;;  %vm4771_vm13 = vcmask 519552   ;;  %s5455_s8 = sshll.u32 %s8553_s25, 3 }
   0xf   : > { %s7017_s10 = scalar_lea.vmem %s8528_s0, %s5949_s30  ;;  %vm4820_vm14 = vcmask 650752   ;;  %vm4885_vm15 = vcmask 654336   ;;  %s276_s11 = scalar_lea.vmem %s8535_s7, %s5455_s8 }
  0x10   : > { %v6761_v2 = vld [vmem:[%s7017_s10] sm:$0xff]   ;;  %v6762_v3 = vld [vmem:[%s7017_s10 + $0x8] sm:$0xff]   ;;  %v6763_v4 = vld [vmem:[%s7017_s10 + $0x10] sm:$0xff]  }
  0x11   : > { %6337 = vmatpush3.bf16.msra.mxu0 %v7003_v1  ;;  %6736 = vmatpush3.bf16.msra.mxu1 %v7003_v1  ;;  %v6764_v5 = vld [vmem:[%s7017_s10 + $0x90] sm:$0xff]   ;;  %v6766_v6 = vld [vmem:[%s7017_s10 + $0x98] sm:$0xff]   ;;  %v6768_v7 = vld [vmem:[%s7017_s10 + $0xa0] sm:$0xff]  }
  0x12   : > { %6338 = vmatprep.mubr.msk.bf16.mxu0 %vm414_vm0, %v6761_v2  ;;  %6370 = vmatprep.subr.bf16.mxu0 %v6998_v0  ;;  %v6765_v8 = vld [vmem:[%s7017_s10 + $0x18] sm:$0xff]   ;;  %v6767_v9 = vld [vmem:[%s7017_s10 + $0x20] sm:$0xff]   ;;  %v6770_v10 = vld [vmem:[%s7017_s10 + $0xa8] sm:$0xff]  }
  0x13   : > { %6442 = vmatprep.subr.bf16.mxu1 %v6998_v0  ;;  %6378 = vmatprep.mubr.msk.bf16.mxu1 %vm414_vm0, %v6764_v5  ;;  %v6772_v11 = vld [vmem:[%s7017_s10 + $0xb0] sm:$0xff]   ;;  %v6769_v12 = vld [vmem:[%s7017_s10 + $0x28] sm:$0xff]   ;;  %v6774_v14 = vld [vmem:[%s7017_s10 + $0xb8] sm:$0xff]  }
  0x14   : > { %6339 = vmatmul.mubr.msk.bf16.vlgmr.msra.gmra.mxu0 %vm414_vm0, %v6762_v3  ;;  %6379 = vmatmul.mubr.msk.bf16.vlgmr.msra.gmra.mxu1 %vm414_vm0, %v6766_v6  ;;  %v6771_v13 = vld [vmem:[%s7017_s10 + $0x30] sm:$0xff]   ;;  %v6776_v15 = vld [vmem:[%s7017_s10 + $0xc0] sm:$0xff]   ;;  %v6773_v16 = vld [vmem:[%s7017_s10 + $0x38] sm:$0xff]  }
  0x15   : > { %6371 = vmatpush3.bf16.msra.mxu0 %v6998_v0  ;;  %6342 = vmatprep.mubr.msk.bf16.mxu0 %vm414_vm0, %v6763_v4  ;;  %v6775_v17 = vld [vmem:[%s7017_s10 + $0x40] sm:$0xff]   ;;  %v6778_v18 = vld [vmem:[%s7017_s10 + $0xc8] sm:$0xff]   ;;  %v6780_v19 = vld [vmem:[%s7017_s10 + $0xd0] sm:$0xff]  }
  0x16   : > { %6372 = vmatprep.subr.bf16.mxu0 %v7003_v1  ;;  %6443 = vmatpush3.bf16.msra.mxu1 %v6998_v0  ;;  %v6777_v20 = vld [vmem:[%s7017_s10 + $0x48] sm:$0xff]   ;;  %v6779_v21 = vld [vmem:[%s7017_s10 + $0x50] sm:$0xff]   ;;  %v6782_v22 = vld [vmem:[%s7017_s10 + $0xd8] sm:$0xff]  }
  0x17   : > { %6382 = vmatprep.mubr.msk.bf16.mxu1 %vm414_vm0, %v6768_v7  ;;  %6444 = vmatprep.subr.bf16.mxu1 %v7003_v1  ;;  %v6784_v23 = vld [vmem:[%s7017_s10 + $0xe0] sm:$0xff]   ;;  %v6781_v24 = vld [vmem:[%s7017_s10 + $0x58] sm:$0xff]   ;;  %v6786_v26 = vld [vmem:[%s7017_s10 + $0xe8] sm:$0xff]  }
  0x18   : > { %v6783_v25 = vld [vmem:[%s7017_s10 + $0x60] sm:$0xff]   ;;  %v6788_v27 = vld [vmem:[%s7017_s10 + $0xf0] sm:$0xff]   ;;  %v6785_v28 = vld [vmem:[%s7017_s10 + $0x68] sm:$0xff]  }
  0x19   : > { %6373 = vmatpush3.bf16.msra.mxu0 %v7003_v1  ;;  %v6787_v29 = vld [vmem:[%s7017_s10 + $0x70] sm:$0xff]   ;;  %v6790_v30 = vld [vmem:[%s7017_s10 + $0xf8] sm:$0xff]   ;;  %v6793_v31 = vld [vmem:[%s7017_s10 + $0x180] sm:$0xff]  }
  0x1a   : > { %6406 = vmatprep.subr.bf16.mxu0 %v6998_v0  ;;  %6445 = vmatpush3.bf16.msra.mxu1 %v7003_v1  ;;  %v6789_v32 = vld [vmem:[%s7017_s10 + $0x78] sm:$0xff]   ;;  %v6791_v33 = vld [vmem:[%s7017_s10 + $0x80] sm:$0xff]   ;;  %v6794_v34 = vld [vmem:[%s7017_s10 + $0x188] sm:$0xff]  }
  0x1b   : > { %v6798_v35 = vld [vmem:[%s7017_s10 + $0x190] sm:$0xff]   ;;  %v6792_v36 = vld [vmem:[%s7017_s10 + $0x88] sm:$0xff]   ;;  %v6795_v37 = vld [vmem:[%s7017_s10 + $0x100] sm:$0xff]  }
  0x1c   : > { %6343 = vmatmul.mubr.msk.bf16.gmra.mxu0 %vm414_vm0, %v6765_v8  ;;  %6383 = vmatmul.mubr.msk.bf16.gmra.mxu1 %vm414_vm0, %v6770_v10  ;;  %v6800_v38 = vld [vmem:[%s7017_s10 + $0x198] sm:$0xff]   ;;  %v6803_v39 = vld [vmem:[%s7017_s10 + $0x1a0] sm:$0xff]   ;;  %v6796_v40 = vld [vmem:[%s7017_s10 + $0x108] sm:$0xff]  }
  0x1d   : > { %6346 = vmatprep.mubr.msk.bf16.mxu0 %vm414_vm0, %v6767_v9  ;;  %6386 = vmatprep.mubr.msk.bf16.mxu1 %vm414_vm0, %v6772_v11  ;;  %v6797_v41 = vld [vmem:[%s7017_s10 + $0x110] sm:$0xff]   ;;  %v6804_v42 = vld [vmem:[%s7017_s10 + $0x1a8] sm:$0xff]   ;;  %v6799_v44 = vld [vmem:[%s7017_s10 + $0x118] sm:$0xff]  }
  0x1e   : > { %v6807_v43 = vld [vmem:[%s7017_s10 + $0x1b0] sm:$0xff]   ;;  %v6801_v45 = vld [vmem:[%s7017_s10 + $0x120] sm:$0xff]   ;;  %v6808_v46 = vld [vmem:[%s7017_s10 + $0x1b8] sm:$0xff]  }
  0x1f   : > { %v6811_v47 = vld [vmem:[%s7017_s10 + $0x1c0] sm:$0xff]   ;;  %v6802_v48 = vld [vmem:[%s7017_s10 + $0x128] sm:$0xff]   ;;  %v6805_v49 = vld [vmem:[%s7017_s10 + $0x130] sm:$0xff]  }
  0x20   : > { %v6812_v50 = vld [vmem:[%s7017_s10 + $0x1c8] sm:$0xff]   ;;  %v6815_v51 = vld [vmem:[%s7017_s10 + $0x1d0] sm:$0xff]   ;;  %v6806_v52 = vld [vmem:[%s7017_s10 + $0x138] sm:$0xff]  }
  0x21   : > { %v6809_v53 = vld [vmem:[%s7017_s10 + $0x140] sm:$0xff]   ;;  %v6816_v54 = vld [vmem:[%s7017_s10 + $0x1d8] sm:$0xff]   ;;  %v6810_v56 = vld [vmem:[%s7017_s10 + $0x148] sm:$0xff]  }
  0x22   : > { %v6819_v55 = vld [vmem:[%s7017_s10 + $0x1e0] sm:$0xff]   ;;  %v6813_v57 = vld [vmem:[%s7017_s10 + $0x150] sm:$0xff]   ;;  %v6820_v58 = vld [vmem:[%s7017_s10 + $0x1e8] sm:$0xff]  }
  0x23   : > { %v6823_v59 = vld [vmem:[%s7017_s10 + $0x1f0] sm:$0xff]   ;;  %v6814_v60 = vld [vmem:[%s7017_s10 + $0x158] sm:$0xff]   ;;  %v6817_v61 = vld [vmem:[%s7017_s10 + $0x160] sm:$0xff]  }
  0x24   : > { %6347 = vmatmul.mubr.msk.bf16.gmra.mxu0 %vm414_vm0, %v6769_v12  ;;  %6387 = vmatmul.mubr.msk.bf16.gmra.mxu1 %vm414_vm0, %v6774_v14  ;;  %v6824_v62 = vld [vmem:[%s7017_s10 + $0x1f8] sm:$0xff]   ;;  %v6818_v63 = vld [vmem:[%s7017_s10 + $0x168] sm:$0xff]  }
  0x25   : > { %6350 = vmatprep.mubr.msk.bf16.mxu0 %vm414_vm0, %v6771_v13  ;;  %6390 = vmatprep.mubr.msk.bf16.mxu1 %vm414_vm0, %v6776_v15 }
  0x2c   : > { %6351 = vmatmul.mubr.msk.bf16.gmra.mxu0 %vm414_vm0, %v6773_v16  ;;  %6391 = vmatmul.mubr.msk.bf16.gmra.mxu1 %vm414_vm0, %v6778_v18 }
  0x2d   : > { %6354 = vmatprep.mubr.msk.bf16.mxu0 %vm414_vm0, %v6775_v17  ;;  %6394 = vmatprep.mubr.msk.bf16.mxu1 %vm414_vm0, %v6780_v19 }
  0x34   : > { %6355 = vmatmul.mubr.msk.bf16.gmra.mxu0 %vm414_vm0, %v6777_v20  ;;  %6395 = vmatmul.mubr.msk.bf16.gmra.mxu1 %vm414_vm0, %v6782_v22 }
  0x35   : > { %6358 = vmatprep.mubr.msk.bf16.mxu0 %vm414_vm0, %v6779_v21  ;;  %6398 = vmatprep.mubr.msk.bf16.mxu1 %vm414_vm0, %v6784_v23 }
  0x3c   : > { %6359 = vmatmul.mubr.msk.bf16.gmra.mxu0 %vm414_vm0, %v6781_v24  ;;  %6399 = vmatmul.mubr.msk.bf16.gmra.mxu1 %vm414_vm0, %v6786_v26 }
  0x3d   : > { %6362 = vmatprep.mubr.msk.bf16.mxu0 %vm414_vm0, %v6783_v25  ;;  %6402 = vmatprep.mubr.msk.bf16.mxu1 %vm414_vm0, %v6788_v27 }
  0x44   : > { %6363 = vmatmul.mubr.msk.bf16.gmra.mxu0 %vm414_vm0, %v6785_v28  ;;  %6403 = vmatmul.mubr.msk.bf16.gmra.mxu1 %vm414_vm0, %v6790_v30 }
  0x45   : > { %6366 = vmatprep.mubr.msk.bf16.mxu0 %vm414_vm0, %v6787_v29  ;;  %6446 = vmatprep.mubr.msk.bf16.mxu1 %vm414_vm0, %v6793_v31 }
  0x4c   : > { %6367 = vmatmul.mubr.msk.bf16.gmra.mxu0 %vm414_vm0, %v6789_v32  ;;  %6447 = vmatmul.mubr.msk.bf16.vlgmr.msra.gmra.mxu1 %vm414_vm0, %v6794_v34 }
  0x4d   : > { %6374 = vmatprep.mubr.msk.bf16.mxu0 %vm414_vm0, %v6791_v33  ;;  %6450 = vmatprep.mubr.msk.bf16.mxu1 %vm414_vm0, %v6798_v35  ;;  %v7182_v33 = vld [vmem:[%s8530_s2] ss:$0 sm:$0xff] }
  0x54   : > { %6375 = vmatmul.mubr.msk.bf16.vlgmr.msra.gmra.mxu0 %vm414_vm0, %v6792_v36  ;;  %6451 = vmatmul.mubr.msk.bf16.gmra.mxu1 %vm414_vm0, %v6800_v38 }
  0x55   : > { %6407 = vmatpush3.bf16.msra.mxu0 %v6998_v0  ;;  %6410 = vmatprep.mubr.msk.bf16.mxu0 %vm414_vm0, %v6795_v37  ;;  %v6821_v0 = vld [vmem:[%s7017_s10 + $0x170] sm:$0xff]  }
  0x56   : > { %6408 = vmatprep.subr.bf16.mxu0 %v7003_v1  ;;  %6454 = vmatprep.mubr.msk.bf16.mxu1 %vm414_vm0, %v6803_v39 }
  0x59   : > { %6409 = vmatpush3.bf16.msra.mxu0 %v7003_v1  ;;  %v6822_v1 = vld [vmem:[%s7017_s10 + $0x178] sm:$0xff]  }
  0x5c   : > { %6411 = vmatmul.mubr.msk.bf16.vlgmr.msra.gmra.mxu0 %vm414_vm0, %v6796_v40  ;;  %6455 = vmatmul.mubr.msk.bf16.gmra.mxu1 %vm414_vm0, %v6804_v42 }
  0x5d   : > { %6414 = vmatprep.mubr.msk.bf16.mxu0 %vm414_vm0, %v6797_v41  ;;  %6458 = vmatprep.mubr.msk.bf16.mxu1 %vm414_vm0, %v6807_v43 }
  0x64   : > { %6415 = vmatmul.mubr.msk.bf16.gmra.mxu0 %vm414_vm0, %v6799_v44  ;;  %6459 = vmatmul.mubr.msk.bf16.gmra.mxu1 %vm414_vm0, %v6808_v46 }
  0x65   : > { %6418 = vmatprep.mubr.msk.bf16.mxu0 %vm414_vm0, %v6801_v45  ;;  %6462 = vmatprep.mubr.msk.bf16.mxu1 %vm414_vm0, %v6811_v47 }
  0x6c   : > { %6419 = vmatmul.mubr.msk.bf16.gmra.mxu0 %vm414_vm0, %v6802_v48  ;;  %6463 = vmatmul.mubr.msk.bf16.gmra.mxu1 %vm414_vm0, %v6812_v50 }
  0x6d   : > { %6422 = vmatprep.mubr.msk.bf16.mxu0 %vm414_vm0, %v6805_v49  ;;  %6466 = vmatprep.mubr.msk.bf16.mxu1 %vm414_vm0, %v6815_v51 }
  0x74   : > { %6423 = vmatmul.mubr.msk.bf16.gmra.mxu0 %vm414_vm0, %v6806_v52  ;;  %6467 = vmatmul.mubr.msk.bf16.gmra.mxu1 %vm414_vm0, %v6816_v54 }
  0x75   : > { %6426 = vmatprep.mubr.msk.bf16.mxu0 %vm414_vm0, %v6809_v53  ;;  %6470 = vmatprep.mubr.msk.bf16.mxu1 %vm414_vm0, %v6819_v55 }
  0x7c   : > { %6427 = vmatmul.mubr.msk.bf16.gmra.mxu0 %vm414_vm0, %v6810_v56  ;;  %6471 = vmatmul.mubr.msk.bf16.gmra.mxu1 %vm414_vm0, %v6820_v58 }
  0x7d   : > { %6430 = vmatprep.mubr.msk.bf16.mxu0 %vm414_vm0, %v6813_v57  ;;  %6474 = vmatprep.mubr.msk.bf16.mxu1 %vm414_vm0, %v6823_v59 }
  0x84   : > { %6431 = vmatmul.mubr.msk.bf16.gmra.mxu0 %vm414_vm0, %v6814_v60  ;;  %6475 = vmatmul.mubr.msk.bf16.gmra.mxu1 %vm414_vm0, %v6824_v62 }
  0x85   : > { %6434 = vmatprep.mubr.msk.bf16.mxu0 %vm414_vm0, %v6817_v61 }
  0x8c   : > { %6435 = vmatmul.mubr.msk.bf16.gmra.mxu0 %vm414_vm0, %v6818_v63 }
  0x8d   : > { %6438 = vmatprep.mubr.msk.bf16.mxu0 %vm414_vm0, %v6821_v0 }
  0x94   : > { %6439 = vmatmul.mubr.msk.bf16.gmra.mxu0 %vm414_vm0, %v6822_v1 }
  0xd4   : > { %v6340_v2 = vpop.f32.mrf.mxu0  ;;  %v6380_v4 = vpop.f32.mrf.mxu1 }
  0xd5   : > { %v7191_v37 = vadd.f32 %v6340_v2, %v7182_v33  ;;  %v875_v40 = vadd.f32 %v6380_v4, %v7182_v33 }
  0xd6   : > { %v497_v3 = vpop.f32.mrf.mxu0  ;;  %v866_v6 = vpop.f32.mrf.mxu1 }
  0xd7   : > { %v7196_v39 = vadd.f32 %v7182_v33, %v497_v3  ;;  %v867_v44 = vadd.f32 %v7182_v33, %v866_v6  ;;  %v626_v50 = vmax.f32 %v7191_v37, 0.0  ;;  %v983_v54 = vmax.f32 %v875_v40, 0.0 }
  0xd8   : > { %v6341_v5 = vpop.f32.mrf.mxu0  ;;  %v6381_v8 = vpop.f32.mrf.mxu1 }
  0xd9   : > { %v7202_v42 = vadd.f32 %v6341_v5, %v7182_v33  ;;  %v878_v48 = vadd.f32 %v6381_v8, %v7182_v33  ;;  %v981_v59 = vmax.f32 %v867_v44, 0.0 }
  0xda   : > { %v500_v7 = vpop.f32.mrf.mxu0  ;;  %v869_v10 = vpop.f32.mrf.mxu1 }
  0xdb   : > { %v7218_v53 = vadd.f32 %v7182_v33, %v500_v7  ;;  %v870_v55 = vadd.f32 %v7182_v33, %v869_v10  ;;  %v984_v0 = vmax.f32 %v878_v48, 0.0 }
  0xdc   : > { %v6344_v9 = vpop.f32.mrf.mxu0  ;;  %v6384_v12 = vpop.f32.mrf.mxu1 }
  0xdd   : > { %v522_v43 = vadd.f32 %v6344_v9, %v7182_v33  ;;  %v891_v60 = vadd.f32 %v6384_v12, %v7182_v33  ;;  %v982_v9 = vmax.f32 %v870_v55, 0.0 }
  0xde   : > { %v513_v11 = vpop.f32.mrf.mxu0  ;;  %v882_v14 = vpop.f32.mrf.mxu1 }
  0xdf   : > { %v514_v46 = vadd.f32 %v7182_v33, %v513_v11  ;;  %v630_v58 = vmax.f32 %v522_v43, 0.0  ;;  %v883_v1 = vadd.f32 %v7182_v33, %v882_v14  ;;  %v987_v14 = vmax.f32 %v891_v60, 0.0 }
  0xe0   : > { %v6345_v13 = vpop.f32.mrf.mxu0  ;;  %v6385_v16 = vpop.f32.mrf.mxu1 }
  0xe1   : > { %v525_v47 = vadd.f32 %v6345_v13, %v7182_v33  ;;  %v628_v62 = vmax.f32 %v514_v46, 0.0  ;;  %v894_v6 = vadd.f32 %v6385_v16, %v7182_v33  ;;  %v7241_v13 = vadd.f32 %v983_v54, %v630_v58 }
  0xe2   : > { %v516_v15 = vpop.f32.mrf.mxu0  ;;  %v885_v18 = vpop.f32.mrf.mxu1  ;;  %v985_v43 = vmax.f32 %v883_v1, 0.0 }
  0xe3   : > { %v631_v63 = vmax.f32 %v525_v47, 0.0  ;;  %v517_v3 = vadd.f32 %v7182_v33, %v516_v15  ;;  %v886_v11 = vadd.f32 %v7182_v33, %v885_v18  ;;  %v7247_v16 = vadd.f32 %v981_v59, %v628_v62 }
  0xe4   : > { %v6348_v17 = vpop.f32.mrf.mxu0  ;;  %v6388_v20 = vpop.f32.mrf.mxu1  ;;  %v988_v48 = vmax.f32 %v894_v6, 0.0 }
  0xe5   : > { %v538_v4 = vadd.f32 %v6348_v17, %v7182_v33  ;;  %v907_v17 = vadd.f32 %v6388_v20, %v7182_v33  ;;  %v7249_v40 = vadd.f32 %v984_v0, %v631_v63  ;;  %v629_v18 = vmax.f32 %v517_v3, 0.0 }
  0xe6   : > { %v529_v19 = vpop.f32.mrf.mxu0  ;;  %v7161_v22 = vpop.f32.mrf.mxu1  ;;  %v986_v55 = vmax.f32 %v886_v11, 0.0 }
  0xe7   : > { %v530_v5 = vadd.f32 %v7182_v33, %v529_v19  ;;  %v634_v46 = vmax.f32 %v538_v4, 0.0  ;;  %v899_v58 = vadd.f32 %v7182_v33, %v7161_v22 }
  0xe8   : > { %v6349_v21 = vpop.f32.mrf.mxu0  ;;  %v7163_v24 = vpop.f32.mrf.mxu1 }
  0xe9   : > { %v541_v10 = vadd.f32 %v6349_v21, %v7182_v33  ;;  %v632_v47 = vmax.f32 %v530_v5, 0.0  ;;  %v910_v63 = vadd.f32 %v7163_v24, %v7182_v33  ;;  %v7276_v5 = vadd.f32 %v982_v9, %v629_v18 }
  0xea   : > { %v532_v23 = vpop.f32.mrf.mxu0  ;;  %v7165_v26 = vpop.f32.mrf.mxu1 }
  0xeb   : > { %v533_v15 = vadd.f32 %v7182_v33, %v532_v23  ;;  %v635_v23 = vmax.f32 %v541_v10, 0.0  ;;  %v7280_v6 = vadd.f32 %v985_v43, %v632_v47 }
  0xec   : > { %v6352_v25 = vpop.f32.mrf.mxu0  ;;  %v7169_v28 = vpop.f32.mrf.mxu1 }
  0xed   : > { %v554_v21 = vadd.f32 %v6352_v25, %v7182_v33  ;;  %v633_v60 = vmax.f32 %v533_v15, 0.0  ;;  %v991_v25 = vmax.f32 %v907_v17, 0.0  ;;  %v923_v22 = vadd.f32 %v7169_v28, %v7182_v33 }
  0xee   : > { %v7167_v27 = vpop.f32.mrf.mxu0  ;;  %v7173_v30 = vpop.f32.mrf.mxu1 }
  0xef   : > { %v546_v20 = vadd.f32 %v7182_v33, %v7167_v27  ;;  %v638_v1 = vmax.f32 %v554_v21, 0.0  ;;  %v902_v27 = vadd.f32 %v7182_v33, %v7165_v26  ;;  %v989_v26 = vmax.f32 %v899_v58, 0.0 }
  0xf0   : > { %v7171_v29 = vpop.f32.mrf.mxu0  ;;  %v7177_v32 = vpop.f32.mrf.mxu1  ;;  %v915_v28 = vadd.f32 %v7182_v33, %v7173_v30  ;;  %v7290_v17 = vadd.f32 %v986_v55, %v633_v60  ;;  %v995_v47 = vmax.f32 %v923_v22, 0.0 }
  0xf1   : > { %v557_v62 = vadd.f32 %v7171_v29, %v7182_v33  ;;  %v7278_v29 = vadd.f32 %v987_v14, %v634_v46  ;;  %v636_v11 = vmax.f32 %v546_v20, 0.0  ;;  %v992_v14 = vmax.f32 %v910_v63, 0.0 }
  0xf2   : > { %v7175_v31 = vpop.f32.mrf.mxu0  ;;  %v7186_v35 = vpop.f32.mrf.mxu1  ;;  %v926_v43 = vadd.f32 %v7177_v32, %v7182_v33  ;;  %v990_v46 = vmax.f32 %v902_v27, 0.0  ;;  %v993_v60 = vmax.f32 %v915_v28, 0.0 }
  0xf3   : > { %v549_v3 = vadd.f32 %v7182_v33, %v7175_v31  ;;  %v7286_v31 = vadd.f32 %v988_v48, %v635_v23  ;;  %v639_v9 = vmax.f32 %v557_v62, 0.0  ;;  %v918_v20 = vadd.f32 %v7182_v33, %v7186_v35 }
  0xf4   : > { %v7184_v34 = vpop.f32.mrf.mxu0  ;;  %v7193_v38 = vpop.f32.mrf.mxu1  ;;  %v7306_v32 = vadd.f32 %v989_v26, %v636_v11 }
  0xf5   : > { %v570_v24 = vadd.f32 %v7184_v34, %v7182_v33  ;;  %v7296_v34 = vadd.f32 %v991_v25, %v638_v1  ;;  %v637_v18 = vmax.f32 %v549_v3, 0.0  ;;  %v939_v25 = vadd.f32 %v7193_v38, %v7182_v33 }
  0xf6   : > { %v7188_v36 = vpop.f32.mrf.mxu0  ;;  %v7206_v45 = vpop.f32.mrf.mxu1  ;;  %v996_v1 = vmax.f32 %v926_v43, 0.0  ;;  %v994_v28 = vmax.f32 %v918_v20, 0.0 }
  0xf7   : > { %v642_v23 = vmax.f32 %v570_v24, 0.0  ;;  %v562_v30 = vadd.f32 %v7182_v33, %v7188_v36  ;;  %v931_v62 = vadd.f32 %v7182_v33, %v7206_v45  ;;  %v7314_v36 = vadd.f32 %v992_v14, %v639_v9 }
  0xf8   : > { %v7199_v41 = vpop.f32.mrf.mxu0  ;;  %v7214_v51 = vpop.f32.mrf.mxu1  ;;  %v7322_v27 = vadd.f32 %v990_v46, %v637_v18  ;;  %v999_v9 = vmax.f32 %v939_v25, 0.0 }
  0xf9   : > { %v573_v55 = vadd.f32 %v7199_v41, %v7182_v33  ;;  %v942_v35 = vadd.f32 %v7214_v51, %v7182_v33  ;;  %v7330_v11 = vadd.f32 %v995_v47, %v642_v23  ;;  %v997_v14 = vmax.f32 %v931_v62, 0.0 }
  0xfa   : > { %v7211_v49 = vpop.f32.mrf.mxu0  ;;  %v7225_v61 = vpop.f32.mrf.mxu1 }
  0xfb   : > { %v565_v41 = vadd.f32 %v7182_v33, %v7211_v49  ;;  %v640_v49 = vmax.f32 %v562_v30, 0.0  ;;  %v643_v26 = vmax.f32 %v573_v55, 0.0  ;;  %v1000_v46 = vmax.f32 %v942_v35, 0.0 }
  0xfc   : > { %v7221_v56 = vpop.f32.mrf.mxu0  ;;  %v7234_v7 = vpop.f32.mrf.mxu1 }
  0xfd   : > { %v586_v38 = vadd.f32 %v7221_v56, %v7182_v33  ;;  %v934_v56 = vadd.f32 %v7182_v33, %v7225_v61  ;;  %v955_v47 = vadd.f32 %v7234_v7, %v7182_v33  ;;  %v7346_v61 = vadd.f32 %v993_v60, %v640_v49 }
  0xfe   : > { %v7228_v2 = vpop.f32.mrf.mxu0  ;;  %v7245_v19 = vpop.f32.mrf.mxu1  ;;  %v7348_v62 = vadd.f32 %v996_v1, %v643_v26 }
  0xff   : > { %v578_v45 = vadd.f32 %v7182_v33, %v7228_v2  ;;  %v641_v2 = vmax.f32 %v565_v41, 0.0  ;;  %v646_v30 = vmax.f32 %v586_v38, 0.0  ;;  %v998_v38 = vmax.f32 %v934_v56, 0.0 }
 0x100   : > { %v7239_v12 = vpop.f32.mrf.mxu0  ;;  %v7254_v54 = vpop.f32.mrf.mxu1  ;;  %v1003_v49 = vmax.f32 %v955_v47, 0.0 }
 0x101   : > { %v589_v22 = vadd.f32 %v7239_v12, %v7182_v33  ;;  %v644_v55 = vmax.f32 %v578_v45, 0.0  ;;  %v7359_v60 = vadd.f32 %v994_v28, %v641_v2  ;;  %v7362_v8 = vadd.f32 %v999_v9, %v646_v30 }
 0x102   : > { %v7252_v44 = vpop.f32.mrf.mxu0  ;;  %v7266_v0 = vpop.f32.mrf.mxu1 }
 0x103   : > { %v581_v43 = vadd.f32 %v7182_v33, %v7252_v44  ;;  %v647_v20 = vmax.f32 %v589_v22, 0.0  ;;  %v947_v44 = vadd.f32 %v7182_v33, %v7245_v19  ;;  %v950_v19 = vadd.f32 %v7182_v33, %v7266_v0 }
 0x104   : > { %v7260_v59 = vpop.f32.mrf.mxu0  ;;  %v7284_v10 = vpop.f32.mrf.mxu1 }
 0x105   : > { %v602_v12 = vadd.f32 %v7260_v59, %v7182_v33  ;;  %v958_v59 = vadd.f32 %v7254_v54, %v7182_v33  ;;  %v645_v35 = vmax.f32 %v581_v43, 0.0  ;;  %v7364_v54 = vadd.f32 %v997_v14, %v644_v55 }
 0x106   : > { %v7274_v4 = vpop.f32.mrf.mxu0  ;;  %v7294_v21 = vpop.f32.mrf.mxu1  ;;  %v7366_v57 = vadd.f32 %v1000_v46, %v647_v20  ;;  %v1001_v43 = vmax.f32 %v947_v44, 0.0  ;;  %v7370_v0 = vadd.f32 %v7284_v10, %v7182_v33  ;;  %v1002_v9 = vmax.f32 %v950_v19, 0.0 }
 0x107   : > { %v594_v41 = vadd.f32 %v7182_v33, %v7274_v4  ;;  %v650_v1 = vmax.f32 %v602_v12, 0.0  ;;  %v1004_v52 = vmax.f32 %v958_v59, 0.0  ;;  %v7373_v12 = vadd.f32 %v998_v38, %v645_v35 }
 0x108   : > { %v6365_v15 = vpop.f32.mrf.mxu0  ;;  %v7304_v58 = vpop.f32.mrf.mxu1  ;;  %v7377_v14 = vadd.f32 %v7182_v33, %v7294_v21 }
 0x109   : > { %v605_v45 = vadd.f32 %v6365_v15, %v7182_v33  ;;  %v648_v15 = vmax.f32 %v594_v41, 0.0  ;;  %v7379_v47 = vadd.f32 %v1003_v49, %v650_v1  ;;  %v7383_v55 = vadd.f32 %v7304_v58, %v7182_v33 }
 0x10a   : > { %v596_v48 = vpop.f32.mrf.mxu0  ;;  %v7320_v3 = vpop.f32.mrf.mxu1 }
 0x10b   : > { %v597_v26 = vadd.f32 %v7182_v33, %v596_v48  ;;  %v651_v48 = vmax.f32 %v605_v45, 0.0  ;;  %v7395_v21 = vadd.f32 %v7182_v33, %v7320_v3  ;;  %v7398_v38 = vadd.f32 %v1001_v43, %v648_v15 }
 0x10c   : > { %v7312_v63 = vpop.f32.mrf.mxu0  ;;  %v6448_v51 = vpop.f32.mrf.mxu1 }
 0x10d   : > { %v649_v30 = vmax.f32 %v597_v26, 0.0  ;;  %v7388_v44 = vadd.f32 %v7312_v63, %v7182_v33  ;;  %8537 = vst [vmem:[#allocation6_spill] sm:$0xff] %v7395_v21  ;;  %v1629_v19 = vadd.f32 %v6448_v51, %v7182_v33  ;;  %v7402_v63 = vadd.f32 %v1004_v52, %v651_v48 }
 0x10e   : > { %v609_v24 = vpop.f32.mrf.mxu0  ;;  %v1620_v23 = vpop.f32.mrf.mxu1 }
 0x10f   : > { %v7391_v41 = vadd.f32 %v7182_v33, %v609_v24  ;;  %8538 = vst [vmem:[#allocation7_spill] sm:$0xff] %v7402_v63  ;;  %v1621_v3 = vadd.f32 %v7182_v33, %v1620_v23  ;;  %v7407_v26 = vadd.f32 %v1002_v9, %v649_v30 }
 0x110   : > { %v7336_v18 = vpop.f32.mrf.mxu0  ;;  %v7354_v7 = vpop.f32.mrf.mxu1 }
 0x111   : > { %8539 = vst [vmem:[#allocation8_spill] sm:$0xff] %v7407_v26  ;;  %v1632_v58 = vadd.f32 %v7354_v7, %v7182_v33 }
 0x112   : > { %v7344_v25 = vpop.f32.mrf.mxu0  ;;  %v1623_v4 = vpop.f32.mrf.mxu1 }
 0x113   : > { %v1624_v52 = vadd.f32 %v7182_v33, %v1623_v4 }
 0x114   : > { %v6376_v22 = vpop.f32.mrf.mxu0  ;;  %v6452_v2 = vpop.f32.mrf.mxu1 }
 0x115   : > { %v859_v28 = vadd.f32 %v6376_v22, %v7182_v33 }
 0x116   : > { %v850_v56 = vpop.f32.mrf.mxu0  ;;  %v1636_v20 = vpop.f32.mrf.mxu1 }
 0x117   : > { %v851_v10 = vadd.f32 %v7182_v33, %v850_v56  ;;  %v979_v45 = vmax.f32 %v859_v28, 0.0  ;;  %v1637_v7 = vadd.f32 %v7182_v33, %v1636_v20 }
 0x118   : > { %v6377_v46 = vpop.f32.mrf.mxu0  ;;  %v6453_v22 = vpop.f32.mrf.mxu1 }
 0x119   : > { %v862_v59 = vadd.f32 %v6377_v46, %v7182_v33  ;;  %v977_v56 = vmax.f32 %v851_v10, 0.0  ;;  %v1011_v23 = vadd.f32 %v979_v45, %v626_v50 }
 0x11a   : > { %v853_v35 = vpop.f32.mrf.mxu0  ;;  %v1639_v28 = vpop.f32.mrf.mxu1 }
 0x11b   : > { %v854_v1 = vadd.f32 %v7182_v33, %v853_v35  ;;  %v980_v46 = vmax.f32 %v862_v59, 0.0  ;;  %v1749_v35 = vmax.f32 %v1629_v19, 0.0  ;;  %v8540_v59 = vmax.f32 %v7196_v39, 0.0 }
 0x11c   : > { %v6412_v49 = vpop.f32.mrf.mxu0  ;;  %v6456_v43 = vpop.f32.mrf.mxu1  ;;  %v8541_v19 = vmax.f32 %v7202_v42, 0.0  ;;  %v8542_v42 = vmax.f32 %v7218_v53, 0.0 }
 0x11d   : > { %v1244_v15 = vadd.f32 %v6412_v49, %v7182_v33  ;;  %v978_v10 = vmax.f32 %v854_v1, 0.0  ;;  %v1747_v49 = vmax.f32 %v1621_v3, 0.0  ;;  %v1009_v48 = vadd.f32 %v977_v56, %v8540_v59 }
 0x11e   : > { %v1235_v24 = vpop.f32.mrf.mxu0  ;;  %v7423_v45 = vpop.f32.mrf.mxu1  ;;  %v1645_v3 = vadd.f32 %v6452_v2, %v7182_v33  ;;  %v1748_v2 = vmax.f32 %v1624_v52, 0.0 }
 0x11f   : > { %v1364_v9 = vmax.f32 %v1244_v15, 0.0  ;;  %v1236_v30 = vadd.f32 %v7182_v33, %v1235_v24  ;;  %v1012_v24 = vadd.f32 %v980_v46, %v8541_v19  ;;  %v1010_v46 = vadd.f32 %v978_v10, %v8542_v42 }
 0x120   : > { %v6413_v51 = vpop.f32.mrf.mxu0  ;;  %v6457_v56 = vpop.f32.mrf.mxu1  ;;  %v8543_v42 = vmax.f32 %v7388_v44, 0.0 }
 0x121   : > { %v1396_v21 = vadd.f32 %v1364_v9, %v1011_v23  ;;  %v1362_v37 = vmax.f32 %v1236_v30, 0.0  ;;  %v1247_v50 = vadd.f32 %v6413_v51, %v7182_v33  ;;  %v6938_v23 = vmov 0.0  }
 0x122   : > { %v1238_v1 = vpop.f32.mrf.mxu0  ;;  %1875 = vst [vmem:[#allocation2 + $0x100] sm:$0xff] %v6938_v23  ;;  %4592 = vst [vmem:[#allocation3 + $0x30] sm:$0xff] %v6938_v23  ;;  %v7432_v51 = vadd.f32 %v7336_v18, %v7182_v33  ;;  %v1750_v9 = vmax.f32 %v1632_v58, 0.0  ;;  %v1655_v59 = vpop.f32.mrf.mxu1  ;;  %v1648_v23 = vadd.f32 %v6453_v22, %v7182_v33 }
 0x123   : > { %v1781_v15 = vadd.f32 %v1749_v35, %v1396_v21  ;;  %v1394_v4 = vadd.f32 %v1362_v37, %v1009_v48  ;;  %v1365_v26 = vmax.f32 %v1247_v50, 0.0  ;;  %v1239_v39 = vadd.f32 %v7182_v33, %v1238_v1 }
 0x124   : > { %v6416_v30 = vpop.f32.mrf.mxu0  ;;  %v1753_v50 = vmax.f32 %v1645_v3, 0.0  ;;  %v1751_v1 = vmax.f32 %v1637_v7, 0.0  ;;  %v6460_v52 = vpop.f32.mrf.mxu1 }
 0x125   : > { %v1813_v20 = vmul.f32 0.25, %v1781_v15  ;;  %v1779_v21 = vadd.f32 %v1747_v49, %v1394_v4  ;;  %v1397_v48 = vadd.f32 %v1365_v26, %v1012_v24  ;;  %v1363_v35 = vmax.f32 %v1239_v39, 0.0 }
 0x126   : > { %v1260_v37 = vadd.f32 %v6416_v30, %v7182_v33  ;;  %v1251_v19 = vpop.f32.mrf.mxu0  ;;  %v1640_v26 = vadd.f32 %v7182_v33, %v1639_v28  ;;  %v7441_v49 = vadd.f32 %v6456_v43, %v7182_v33  ;;  %v1668_v39 = vpop.f32.mrf.mxu1  ;;  %v8545_v30 = vmax.f32 %v7391_v41, 0.0 }
 0x127   : > { %1845 = vst [vmem:[#allocation2 + $0x10] sm:$0xff] %v1813_v20  ;;  %v1811_v18 = vmul.f32 0.25, %v1779_v21  ;;  %v1782_v63 = vadd.f32 %v1750_v9, %v1397_v48  ;;  %v1395_v53 = vadd.f32 %v1363_v35, %v1010_v46  ;;  %v1252_v58 = vadd.f32 %v7182_v33, %v1251_v19 }
 0x128   : > { %v1368_v10 = vmax.f32 %v1260_v37, 0.0  ;;  %v6417_v15 = vpop.f32.mrf.mxu0  ;;  %v5952_v24 = vpack.c.bf16 %v1813_v20, %v1813_v20  ;;  %v8544_v46 = vmax.f32 %v7370_v0, 0.0  ;;  %v8546_v28 = vmax.f32 %v7377_v14, 0.0  ;;  %v7460_v35 = vpop.f32.mrf.mxu1 }
 0x129   : > { %1843 = vst [vmem:[#allocation2] sm:$0xff] %v1811_v18  ;;  %v1814_v3 = vmul.f32 0.25, %v1782_v63  ;;  %v1780_v7 = vadd.f32 %v1748_v2, %v1395_v53  ;;  %v1366_v4 = vmax.f32 %v1252_v58, 0.0  ;;  %v1263_v22 = vadd.f32 %v6417_v15, %v7182_v33 }
 0x12a   : > { %v7448_v9 = vadd.f32 %v8544_v46, %v8543_v42  ;;  %v7454_v43 = vadd.f32 %v8546_v28, %v8545_v30  ;;  %v1400_v20 = vadd.f32 %v1368_v10, %v7241_v13  ;;  %v1754_v63 = vmax.f32 %v1648_v23, 0.0  ;;  %v1254_v2 = vpop.f32.mrf.mxu0  ;;  %2040 = vst.msk [vmem:[#allocation4 + $0x8] sm:$0xf] %vm2037_vm1, %v5952_v24 }
 0x12b   : > { %1846 = vst [vmem:[#allocation2 + $0x18] sm:$0xff] %v1814_v3  ;;  %v1812_v21 = vmul.f32 0.25, %v1780_v7  ;;  %v1398_v44 = vadd.f32 %v1366_v4, %v7247_v16  ;;  %v1369_v48 = vmax.f32 %v1263_v22, 0.0  ;;  %v1255_v0 = vadd.f32 %v7182_v33, %v1254_v2  ;;  %v7466_v16 = vpop.f32.mrf.mxu1 }
 0x12c   : > { %v655_v41 = vmax.f32 %v7432_v51, 0.0  ;;  %v1785_v14 = vadd.f32 %v1753_v50, %v1400_v20  ;;  %v1752_v37 = vmax.f32 %v1640_v26, 0.0  ;;  %v6420_v19 = vpop.f32.mrf.mxu0  ;;  %v1757_v13 = vmax.f32 %v7441_v49, 0.0  ;;  %v6927_v51 = vld [vmem:[%s8530_s2] ss:$0 sm:$0xff] }
 0x12d   : > { %1844 = vst [vmem:[#allocation2 + $0x8] sm:$0xff] %v1812_v21  ;;  %v1783_v23 = vadd.f32 %v1751_v1, %v1398_v44  ;;  %v1401_v18 = vadd.f32 %v1369_v48, %v7249_v40  ;;  %v1367_v53 = vmax.f32 %v1255_v0, 0.0  ;;  %v1276_v58 = vadd.f32 %v6420_v19, %v7182_v33  ;;  %v6464_v40 = vpop.f32.mrf.mxu1 }
 0x12e   : > { %v1817_v10 = vmul.f32 0.25, %v1785_v14  ;;  %v1267_v15 = vpop.f32.mrf.mxu0  ;;  %v1653_v24 = vadd.f32 %v7182_v33, %v7423_v45  ;;  %v1664_v50 = vadd.f32 %v6457_v56, %v7182_v33  ;;  %v5951_v26 = vpack.c.bf16 %v1812_v21, %v1812_v21 }
 0x12f   : > { %v7471_v3 = vmul.f32 0.25, %v1783_v23  ;;  %v1786_v49 = vadd.f32 %v1754_v63, %v1401_v18  ;;  %v1399_v1 = vadd.f32 %v1367_v53, %v7276_v5  ;;  %v1372_v7 = vmax.f32 %v1276_v58, 0.0  ;;  %v1684_v28 = vpop.f32.mrf.mxu1 }
 0x130   : > { %v7476_v4 = vadd.f32 %v7182_v33, %v7344_v25  ;;  %1849 = vst [vmem:[#allocation2 + $0x30] sm:$0xff] %v1817_v10  ;;  %v1268_v22 = vadd.f32 %v7182_v33, %v1267_v15  ;;  %v6421_v42 = vpop.f32.mrf.mxu0  ;;  %v1656_v45 = vadd.f32 %v7182_v33, %v1655_v59  ;;  %v7481_v56 = vadd.f32 %v6460_v52, %v7182_v33 }
 0x131   : > { %2039 = vst.msk [vmem:[#allocation4 + $0x4] sm:$0xf] %vm2037_vm1, %v5951_v26  ;;  %1847 = vst [vmem:[#allocation2 + $0x20] sm:$0xff] %v7471_v3  ;;  %v1818_v5 = vmul.f32 0.25, %v1786_v49  ;;  %v1784_v46 = vadd.f32 %v1752_v37, %v1399_v1  ;;  %v1404_v30 = vadd.f32 %v1372_v7, %v7278_v29  ;;  %v1279_v25 = vadd.f32 %v6421_v42, %v7182_v33  ;;  %v7493_v37 = vpop.f32.mrf.mxu1 }
 0x132   : > { %v1370_v20 = vmax.f32 %v1268_v22, 0.0  ;;  %v1755_v63 = vmax.f32 %v1653_v24, 0.0  ;;  %v1270_v2 = vpop.f32.mrf.mxu0  ;;  %v1758_v21 = vmax.f32 %v1664_v50, 0.0  ;;  %v2072_v44 = vld [vmem:[#allocation2 + $0x11] sm:$0xff]  ;;  %v7488_v59 = vadd.f32 %v7182_v33, %v1668_v39 }
 0x133   : > { %1850 = vst [vmem:[#allocation2 + $0x38] sm:$0xff] %v1818_v5  ;;  %v7490_v52 = vmul.f32 0.25, %v1784_v46  ;;  %v1789_v48 = vadd.f32 %v1757_v13, %v1404_v30  ;;  %v1373_v0 = vmax.f32 %v1279_v25, 0.0  ;;  %v1271_v14 = vadd.f32 %v7182_v33, %v1270_v2  ;;  %v2329_v24 = vld [vmem:[#allocation2 + $0x12] sm:$0xff]  ;;  %v7500_v50 = vpop.f32.mrf.mxu1 }
 0x134   : > { %v1402_v29 = vadd.f32 %v1370_v20, %v7280_v6  ;;  %v6424_v19 = vpop.f32.mrf.mxu0  ;;  %v1756_v23 = vmax.f32 %v1656_v45, 0.0  ;;  %v5984_v18 = vpack.c.bf16 %v2072_v44, %v2072_v44  ;;  %v1761_v53 = vmax.f32 %v7481_v56, 0.0  ;;  %v2071_v58 = vld [vmem:[#allocation2 + $0x9] sm:$0xff]  ;;  %v2586_v44 = vld [vmem:[#allocation2 + $0x13] sm:$0xff] }
 0x135   : > { %1848 = vst [vmem:[#allocation2 + $0x28] sm:$0xff] %v7490_v52  ;;  %v1821_v39 = vmul.f32 0.25, %v1789_v48  ;;  %v1405_v10 = vadd.f32 %v1373_v0, %v7286_v31  ;;  %v1371_v15 = vmax.f32 %v1271_v14, 0.0  ;;  %v1292_v13 = vadd.f32 %v6424_v19, %v7182_v33  ;;  %v2328_v56 = vld [vmem:[#allocation2 + $0xa] sm:$0xff]  ;;  %v6468_v5 = vpop.f32.mrf.mxu1 }
 0x136   : > { %v1787_v26 = vadd.f32 %v1755_v63, %v1402_v29  ;;  %2202 = vrot.lane.b32.xlu0 %v5984_v18, %s6939_s13  ;;  %v1283_v6 = vpop.f32.mrf.mxu0  ;;  %v5983_v49 = vpack.c.bf16 %v2071_v58, %v2071_v58  ;;  %v1759_v1 = vmax.f32 %v7488_v59, 0.0  ;;  %v7506_v7 = vadd.f32 %v7460_v35, %v7182_v33 }
 0x137   : > { %1853 = vst [vmem:[#allocation2 + $0x50] sm:$0xff] %v1821_v39  ;;  %v1403_v31 = vadd.f32 %v1371_v15, %v7290_v17  ;;  %v1790_v22 = vadd.f32 %v1758_v21, %v1405_v10  ;;  %v1376_v42 = vmax.f32 %v1292_v13, 0.0  ;;  %v1284_v45 = vadd.f32 %v7182_v33, %v1283_v6  ;;  %v1700_v59 = vpop.f32.mrf.mxu1 }
 0x138   : > { %v1819_v46 = vmul.f32 0.25, %v1787_v26  ;;  %2200 = vrot.lane.b32.xlu1 %v5983_v49, %s6939_s13  ;;  %v6425_v30 = vpop.f32.mrf.mxu0  ;;  %v6016_v25 = vpack.c.bf16 %v2329_v24, %v2329_v24  ;;  %v1672_v20 = vadd.f32 %v7182_v33, %v7466_v16  ;;  %v7514_v35 = vadd.f32 %v6464_v40, %v7182_v33  ;;  %v2330_v18 = vld [vmem:[#allocation2 + $0x1a] sm:$0xff] }
 0x139   : > { %v1822_v63 = vmul.f32 0.25, %v1790_v22  ;;  %v1408_v17 = vadd.f32 %v1376_v42, %v7296_v34  ;;  %v1788_v2 = vadd.f32 %v1756_v23, %v1403_v31  ;;  %v1374_v21 = vmax.f32 %v1284_v45, 0.0  ;;  %v7525_v58 = vpop.f32.mrf.mxu1 }
 0x13a   : > { %1851 = vst [vmem:[#allocation2 + $0x40] sm:$0xff] %v1819_v46  ;;  %v1295_v48 = vadd.f32 %v6425_v30, %v7182_v33  ;;  %2459 = vrot.lane.b32.xlu0 %v6016_v25, %s6940_s14  ;;  %v1286_v0 = vpop.f32.mrf.mxu0  ;;  %v1762_v14 = vmax.f32 %v7506_v7, 0.0  ;;  %v6015_v16 = vpack.c.bf16 %v2328_v56, %v2328_v56  ;;  %v7521_v40 = vadd.f32 %v7182_v33, %v1684_v28  ;;  %v2587_v25 = vld [vmem:[#allocation2 + $0x1b] sm:$0xff] }
 0x13b   : > { %1854 = vst [vmem:[#allocation2 + $0x58] sm:$0xff] %v1822_v63  ;;  %v1820_v29 = vmul.f32 0.25, %v1788_v2  ;;  %v1406_v34 = vadd.f32 %v1374_v21, %v7306_v32  ;;  %v1793_v19 = vadd.f32 %v1761_v53, %v1408_v17  ;;  %v1287_v23 = vadd.f32 %v7182_v33, %v1286_v0  ;;  %v2843_v53 = vld [vmem:[#allocation2 + $0x14] sm:$0xff]  ;;  %v7530_v49 = vpop.f32.mrf.mxu1 }
 0x13c   : > { %v1377_v39 = vmax.f32 %v1295_v48, 0.0  ;;  %2457 = vrot.lane.b32.xlu1 %v6015_v16, %s6940_s14  ;;  %v6428_v10 = vpop.f32.mrf.mxu0  ;;  %v1760_v15 = vmax.f32 %v1672_v20, 0.0  ;;  %v6048_v13 = vpack.c.bf16 %v2586_v44, %v2586_v44  ;;  %v1765_v24 = vmax.f32 %v7514_v35, 0.0  ;;  %v2070_v48 = vld [vmem:[#allocation2 + $0x1] sm:$0xff] }
 0x13d   : > { %1852 = vst [vmem:[#allocation2 + $0x48] sm:$0xff] %v1820_v29  ;;  %v1825_v28 = vmul.f32 0.25, %v1793_v19  ;;  %v1791_v26 = vadd.f32 %v1759_v1, %v1406_v34  ;;  %v1375_v6 = vmax.f32 %v1287_v23, 0.0  ;;  %v1308_v32 = vadd.f32 %v6428_v10, %v7182_v33  ;;  %v6472_v20 = vpop.f32.mrf.mxu1  ;;  %v2844_v23 = vld [vmem:[#allocation2 + $0x1c] sm:$0xff] }
 0x13e   : > { %v1409_v7 = vadd.f32 %v1377_v39, %v7314_v36  ;;  %2716 = vrot.lane.b32.xlu0 %v6048_v13, %s6941_s15  ;;  %v1299_v31 = vpop.f32.mrf.mxu0  ;;  %v6017_v22 = vpack.c.bf16 %v2330_v18, %v2330_v18  ;;  %v1763_v42 = vmax.f32 %v7521_v40, 0.0  ;;  %v1696_v45 = vadd.f32 %v7493_v37, %v7182_v33 }
 0x13f   : > { %1857 = vst [vmem:[#allocation2 + $0x70] sm:$0xff] %v1825_v28  ;;  %v1823_v1 = vmul.f32 0.25, %v1791_v26  ;;  %v1407_v56 = vadd.f32 %v1375_v6, %v7322_v27  ;;  %v1380_v46 = vmax.f32 %v1308_v32, 0.0  ;;  %v1300_v30 = vadd.f32 %v7182_v33, %v1299_v31  ;;  %v1716_v0 = vpop.f32.mrf.mxu1  ;;  %v2327_v6 = vld [vmem:[#allocation2 + $0x2] sm:$0xff] }
 0x140   : > { %v1794_v36 = vadd.f32 %v1762_v14, %v1409_v7  ;;  %2461 = vrot.lane.b32.xlu1 %v6017_v22, %s6940_s14  ;;  %v6429_v35 = vpop.f32.mrf.mxu0  ;;  %v6080_v63 = vpack.c.bf16 %v2843_v53, %v2843_v53  ;;  %v1688_v17 = vadd.f32 %v7182_v33, %v7500_v50  ;;  %v7543_v2 = vadd.f32 %v6468_v5, %v7182_v33 }
 0x141   : > { %1855 = vst [vmem:[#allocation2 + $0x60] sm:$0xff] %v1823_v1  ;;  %v1412_v37 = vadd.f32 %v1380_v46, %v7330_v11  ;;  %v1792_v27 = vadd.f32 %v1760_v15, %v1407_v56  ;;  %v1378_v21 = vmax.f32 %v1300_v30, 0.0  ;;  %v1311_v44 = vadd.f32 %v6429_v35, %v7182_v33  ;;  %v7552_v18 = vpop.f32.mrf.mxu1  ;;  %v2074_v46 = vld [vmem:[#allocation2 + $0x21] sm:$0xff] }
 0x142   : > { %v1826_v14 = vmul.f32 0.25, %v1794_v36  ;;  %2973 = vrot.lane.b32.xlu0 %v6080_v63, %s6942_s16  ;;  %v1302_v16 = vpop.f32.mrf.mxu0  ;;  %v1766_v40 = vmax.f32 %v1696_v45, 0.0  ;;  %v6049_v29 = vpack.c.bf16 %v2587_v25, %v2587_v25  ;;  %v7549_v50 = vadd.f32 %v7182_v33, %v1700_v59 }
 0x143   : > { %v1824_v5 = vmul.f32 0.25, %v1792_v27  ;;  %v1410_v34 = vadd.f32 %v1378_v21, %v7346_v61  ;;  %v1797_v11 = vadd.f32 %v1765_v24, %v1412_v37  ;;  %v1381_v19 = vmax.f32 %v1311_v44, 0.0  ;;  %v7559_v32 = vpop.f32.mrf.mxu1  ;;  %v2073_v27 = vld [vmem:[#allocation2 + $0x19] sm:$0xff] }
 0x144   : > { %1858 = vst [vmem:[#allocation2 + $0x78] sm:$0xff] %v1826_v14  ;;  %v1303_v39 = vadd.f32 %v7182_v33, %v1302_v16  ;;  %2718 = vrot.lane.b32.xlu1 %v6049_v29, %s6941_s15  ;;  %v6432_v10 = vpop.f32.mrf.mxu0  ;;  %v1764_v15 = vmax.f32 %v1688_v17, 0.0  ;;  %v5982_v13 = vpack.c.bf16 %v2070_v48, %v2070_v48  ;;  %v1769_v28 = vmax.f32 %v7543_v2, 0.0  ;;  %v2075_v29 = vld [vmem:[#allocation2 + $0x29] sm:$0xff] }
 0x145   : > { %1856 = vst [vmem:[#allocation2 + $0x68] sm:$0xff] %v1824_v5  ;;  %v1829_v59 = vmul.f32 0.25, %v1797_v11  ;;  %v1413_v26 = vadd.f32 %v1381_v19, %v7348_v62  ;;  %v1795_v61 = vadd.f32 %v1763_v42, %v1410_v34  ;;  %v1324_v24 = vadd.f32 %v6432_v10, %v7182_v33  ;;  %v6476_v21 = vpop.f32.mrf.mxu1 }
 0x146   : > { %v1379_v53 = vmax.f32 %v1303_v39, 0.0  ;;  %2198 = vrot.lane.b32.xlu0 %v5982_v13, %s6939_s13  ;;  %v1315_v7 = vpop.f32.mrf.mxu0  ;;  %v6081_v31 = vpack.c.bf16 %v2844_v23, %v2844_v23  ;;  %v1767_v22 = vmax.f32 %v7549_v50, 0.0  ;;  %v1712_v45 = vadd.f32 %v7525_v58, %v7182_v33 }
 0x147   : > { %1861 = vst [vmem:[#allocation2 + $0x90] sm:$0xff] %v1829_v59  ;;  %v1827_v1 = vmul.f32 0.25, %v1795_v61  ;;  %v1798_v56 = vadd.f32 %v1766_v40, %v1413_v26  ;;  %v1384_v62 = vmax.f32 %v1324_v24, 0.0  ;;  %v1316_v42 = vadd.f32 %v7182_v33, %v1315_v7  ;;  %v2332_v7 = vld [vmem:[#allocation2 + $0x2a] sm:$0xff] }
 0x148   : > { %v1411_v30 = vadd.f32 %v1379_v53, %v7359_v60  ;;  %2975 = vrot.lane.b32.xlu1 %v6081_v31, %s6942_s16  ;;  %v6433_v25 = vpop.f32.mrf.mxu0  ;;  %v6014_v36 = vpack.c.bf16 %v2327_v6, %v2327_v6  ;;  %v1704_v35 = vadd.f32 %v7182_v33, %v7530_v49  ;;  %v7571_v63 = vadd.f32 %v6472_v20, %v7182_v33 }
 0x149   : > { %1859 = vst [vmem:[#allocation2 + $0x80] sm:$0xff] %v1827_v1  ;;  %v1830_v58 = vmul.f32 0.25, %v1798_v56  ;;  %v1416_v17 = vadd.f32 %v1384_v62, %v7362_v8  ;;  %v1382_v2 = vmax.f32 %v1316_v42, 0.0  ;;  %v1327_v37 = vadd.f32 %v6433_v25, %v7182_v33 }
 0x14a   : > { %v1796_v60 = vadd.f32 %v1764_v15, %v1411_v30  ;;  %2455 = vrot.lane.b32.xlu0 %v6014_v36, %s6940_s14  ;;  %v1318_v44 = vpop.f32.mrf.mxu0  ;;  %v1770_v48 = vmax.f32 %v1712_v45, 0.0  ;;  %v5986_v14 = vpack.c.bf16 %v2074_v46, %v2074_v46  ;;  %v7577_v49 = vadd.f32 %v7182_v33, %v1716_v0  ;;  %v2076_v15 = vld [vmem:[#allocation2 + $0x31] sm:$0xff] }
 0x14b   : > { %1862 = vst [vmem:[#allocation2 + $0x98] sm:$0xff] %v1830_v58  ;;  %v1414_v20 = vadd.f32 %v1382_v2, %v7364_v54  ;;  %v1801_v16 = vadd.f32 %v1769_v28, %v1416_v17  ;;  %v1385_v40 = vmax.f32 %v1327_v37, 0.0  ;;  %v1319_v8 = vadd.f32 %v7182_v33, %v1318_v44  ;;  %v1732_v54 = vpop.f32.mrf.mxu1  ;;  %v2333_v46 = vld [vmem:[#allocation2 + $0x32] sm:$0xff] }
 0x14c   : > { %v1828_v50 = vmul.f32 0.25, %v1796_v60  ;;  %2206 = vrot.lane.b32.xlu1 %v5986_v14, %s6939_s13  ;;  %v6436_v5 = vpop.f32.mrf.mxu0  ;;  %v1768_v34 = vmax.f32 %v1704_v35, 0.0  ;;  %v5985_v11 = vpack.c.bf16 %v2073_v27, %v2073_v27  ;;  %v1773_v19 = vmax.f32 %v7571_v63, 0.0  ;;  %v8548_v44 = vld [vmem:[#allocation7_spill] sm:$0xff] }
 0x14d   : > { %v1833_v23 = vmul.f32 0.25, %v1801_v16  ;;  %v1417_v0 = vadd.f32 %v1385_v40, %v7366_v57  ;;  %v1799_v39 = vadd.f32 %v1767_v22, %v1414_v20  ;;  %v1383_v10 = vmax.f32 %v1319_v8, 0.0  ;;  %v6477_v30 = vpop.f32.mrf.mxu1  ;;  %v2590_v20 = vld [vmem:[#allocation2 + $0x33] sm:$0xff] }
 0x14e   : > { %1860 = vst [vmem:[#allocation2 + $0x88] sm:$0xff] %v1828_v50  ;;  %v1340_v13 = vadd.f32 %v6436_v5, %v7182_v33  ;;  %2204 = vrot.lane.b32.xlu0 %v5985_v11, %s6939_s13  ;;  %v1331_v28 = vpop.f32.mrf.mxu0  ;;  %v5987_v59 = vpack.c.bf16 %v2075_v29, %v2075_v29  ;;  %v1771_v26 = vmax.f32 %v7577_v49, 0.0  ;;  %v1728_v61 = vadd.f32 %v7552_v18, %v7182_v33  ;;  %v8549_v11 = vld [vmem:[#allocation8_spill] sm:$0xff] }
 0x14f   : > { %1865 = vst [vmem:[#allocation2 + $0xb0] sm:$0xff] %v1833_v23  ;;  %v1831_v24 = vmul.f32 0.25, %v1799_v39  ;;  %v1415_v57 = vadd.f32 %v1383_v10, %v7373_v12  ;;  %v1802_v6 = vadd.f32 %v1770_v48, %v1417_v0  ;;  %v1332_v53 = vadd.f32 %v7182_v33, %v1331_v28  ;;  %v1735_v16 = vpop.f32.mrf.mxu1  ;;  %v2846_v39 = vld [vmem:[#allocation2 + $0x2c] sm:$0xff] }
 0x150   : > { %v1388_v31 = vmax.f32 %v1340_v13, 0.0  ;;  %2208 = vrot.lane.b32.xlu1 %v5987_v59, %s6939_s13  ;;  %v6437_v22 = vpop.f32.mrf.mxu0  ;;  %v5988_v45 = vpack.c.bf16 %v2076_v15, %v2076_v15  ;;  %v1720_v1 = vadd.f32 %v7182_v33, %v7559_v32  ;;  %v7595_v56 = vadd.f32 %v6476_v21, %v7182_v33 }
 0x151   : > { %1863 = vst [vmem:[#allocation2 + $0xa0] sm:$0xff] %v1831_v24  ;;  %v1834_v18 = vmul.f32 0.25, %v1802_v6  ;;  %v1800_v62 = vadd.f32 %v1768_v34, %v1415_v57  ;;  %v1386_v42 = vmax.f32 %v1332_v53, 0.0  ;;  %v1343_v12 = vadd.f32 %v6437_v22, %v7182_v33  ;;  %v2847_v57 = vld [vmem:[#allocation2 + $0x34] sm:$0xff] }
 0x152   : > { %v8547_v25 = vmax.f32 %v7383_v55, 0.0  ;;  %v1420_v35 = vadd.f32 %v1388_v31, %v7379_v47  ;;  %2210 = vrot.lane.b32.xlu0 %v5988_v45, %s6939_s13  ;;  %v1334_v32 = vpop.f32.mrf.mxu0  ;;  %v1774_v63 = vmax.f32 %v1728_v61, 0.0  ;;  %v6019_v58 = vpack.c.bf16 %v2332_v7, %v2332_v7  ;;  %v2589_v55 = vld [vmem:[#allocation2 + $0x2b] sm:$0xff] }
 0x153   : > { %1866 = vst [vmem:[#allocation2 + $0xb8] sm:$0xff] %v1834_v18  ;;  %v1832_v17 = vmul.f32 0.25, %v1800_v62  ;;  %v1418_v2 = vadd.f32 %v1386_v42, %v7398_v38  ;;  %v1389_v33 = vmax.f32 %v1343_v12, 0.0  ;;  %v1335_v37 = vadd.f32 %v6927_v51, %v1334_v32  ;;  %v2077_v18 = vld [vmem:[#allocation2 + $0x39] sm:$0xff]  ;;  %v8550_v62 = vld [vmem:[#allocation6_spill] sm:$0xff] }
 0x154   : > { %v7602_v36 = vadd.f32 %v8547_v25, %v655_v41  ;;  %v1805_v41 = vadd.f32 %v1773_v19, %v1420_v35  ;;  %2465 = vrot.lane.b32.xlu1 %v6019_v58, %s6940_s14  ;;  %v6440_v47 = vpop.f32.mrf.mxu0  ;;  %v1772_v27 = vmax.f32 %v1720_v1, 0.0  ;;  %v6020_v21 = vpack.c.bf16 %v2333_v46, %v2333_v46 }
 0x155   : > { %v1777_v60 = vmax.f32 %v7595_v56, 0.0  ;;  %1864 = vst [vmem:[#allocation2 + $0xa8] sm:$0xff] %v1832_v17  ;;  %v1421_v48 = vadd.f32 %v1389_v33, %v8548_v44  ;;  %v1803_v14 = vadd.f32 %v1771_v26, %v1418_v2  ;;  %v1387_v38 = vmax.f32 %v1335_v37, 0.0  ;;  %v1877_v44 = vld [vmem:[#allocation2] sm:$0xff] }
 0x156   : > { %v1356_v49 = vadd.f32 %v6927_v51, %v6440_v47  ;;  %v1837_v40 = vmul.f32 0.25, %v1805_v41  ;;  %2467 = vrot.lane.b32.xlu0 %v6020_v21, %s6940_s14  ;;  %v1347_v8 = vpop.f32.mrf.mxu0  ;;  %v6051_v29 = vpack.c.bf16 %v2589_v55, %v2589_v55  ;;  %v1733_v50 = vadd.f32 %v6927_v51, %v1732_v54  ;;  %v2588_v47 = vld [vmem:[#allocation2 + $0x23] sm:$0xff]  ;;  %v2591_v21 = vld [vmem:[#allocation2 + $0x3b] sm:$0xff] }
 0x157   : > { %v1744_v5 = vadd.f32 %v6927_v51, %v6477_v30  ;;  %v1835_v34 = vmul.f32 0.25, %v1803_v14  ;;  %v1419_v19 = vadd.f32 %v1387_v38, %v8549_v11  ;;  %v1806_v23 = vadd.f32 %v1774_v63, %v1421_v48  ;;  %v2331_v63 = vld [vmem:[#allocation2 + $0x22] sm:$0xff]  ;;  %v1880_v38 = vld [vmem:[#allocation2 + $0x18] sm:$0xff] }
 0x158   : > { %v1392_v0 = vmax.f32 %v1356_v49, 0.0  ;;  %v653_v10 = vmax.f32 %v7476_v4, 0.0  ;;  %1869 = vst [vmem:[#allocation2 + $0xd0] sm:$0xff] %v1837_v40  ;;  %v1348_v15 = vadd.f32 %v6927_v51, %v1347_v8  ;;  %2722 = vrot.lane.b32.xlu1 %v6051_v29, %s6941_s15  ;;  %v6441_v13 = vpop.f32.mrf.mxu0  ;;  %v6052_v28 = vpack.c.bf16 %v2590_v20, %v2590_v20  ;;  %v2845_v48 = vld [vmem:[#allocation2 + $0x24] sm:$0xff]  ;;  %v2848_v49 = vld [vmem:[#allocation2 + $0x3c] sm:$0xff]  ;;  %v2080_v29 = vld [vmem:[#allocation2 + $0x51] sm:$0xff] }
 0x159   : > { %v1736_v59 = vadd.f32 %v6927_v51, %v1735_v16  ;;  %1867 = vst [vmem:[#allocation2 + $0xc0] sm:$0xff] %v1835_v34  ;;  %v1838_v26 = vmul.f32 0.25, %v1806_v23  ;;  %v1804_v61 = vadd.f32 %v1772_v27, %v1419_v19  ;;  %v1359_v24 = vadd.f32 %v6927_v51, %v6441_v13  ;;  %v1883_v16 = vld [vmem:[#allocation2 + $0x30] sm:$0xff]  ;;  %v1884_v34 = vld [vmem:[#allocation2 + $0x38] sm:$0xff]  ;;  %v6826_v23 = vld [vmem:[%s8531_s3 + $0x24] ss:$0 sps:$4 sm:$0xff]  }
 0x15a   : > { %v1424_v54 = vadd.f32 %v1392_v0, %v7448_v9  ;;  %v1390_v6 = vmax.f32 %v1348_v15, 0.0  ;;  %v1775_v53 = vmax.f32 %v1733_v50, 0.0  ;;  %2724 = vrot.lane.b32.xlu0 %v6052_v28, %s6941_s15  ;;  %v1350_v7 = vpop.f32.mrf.mxu0  ;;  %v1778_v4 = vmax.f32 %v1744_v5, 0.0  ;;  %v2079_v0 = vld [vmem:[#allocation2 + $0x49] sm:$0xff]  ;;  %v2337_v13 = vld [vmem:[#allocation2 + $0x52] sm:$0xff]  ;;  %6737 = vmatprep.subr.msk.bf16.mxu0 %vm3246_vm2, %v6826_v23 }
 0x15b   : > { %v6083_v31 = vpack.c.bf16 %v2846_v39, %v2846_v39  ;;  %1870 = vst [vmem:[#allocation2 + $0xd8] sm:$0xff] %v1838_v26  ;;  %v1836_v22 = vmul.f32 0.25, %v1804_v61  ;;  %v1393_v1 = vmax.f32 %v1359_v24, 0.0  ;;  %v1351_v56 = vadd.f32 %v6927_v51, %v1350_v7  ;;  %v2334_v51 = vld [vmem:[#allocation2 + $0x3a] sm:$0xff]  ;;  %v1886_v15 = vld [vmem:[#allocation2 + $0x48] sm:$0xff] }
 0x15c   : > { %v1809_v45 = vadd.f32 %v1777_v60, %v1424_v54  ;;  %v8551_v42 = vmax.f32 %v8550_v62, 0.0  ;;  %v1422_v9 = vadd.f32 %v1390_v6, %v7454_v43  ;;  %v6084_v46 = vpack.c.bf16 %v2847_v57, %v2847_v57  ;;  %v1885_v54 = vld [vmem:[#allocation2 + $0x40] sm:$0xff]  ;;  %v1888_v61 = vld [vmem:[#allocation2 + $0x58] sm:$0xff]  ;;  %v2336_v24 = vld [vmem:[#allocation2 + $0x4a] sm:$0xff] }
 0x15d   : > { %2979 = vrot.lane.b32.xlu1 %v6083_v31, %s6942_s16  ;;  %1868 = vst [vmem:[#allocation2 + $0xc8] sm:$0xff] %v1836_v22  ;;  %v1425_v25 = vadd.f32 %v1393_v1, %v7602_v36  ;;  %v1391_v35 = vmax.f32 %v1351_v56, 0.0  ;;  %v1776_v32 = vmax.f32 %v1736_v59, 0.0  ;;  %v5989_v17 = vpack.c.bf16 %v2077_v18, %v2077_v18  ;;  %v2594_v7 = vld [vmem:[#allocation2 + $0x53] sm:$0xff]  ;;  %v2593_v56 = vld [vmem:[#allocation2 + $0x4b] sm:$0xff]  ;;  %v1889_v18 = vld [vmem:[#allocation2 + $0x60] sm:$0xff] }
 0x15e   : > { %v1038_v12 = vadd.f32 %v8551_v42, %v653_v10  ;;  %v1841_v30 = vmul.f32 0.25, %v1809_v45  ;;  %v1807_v58 = vadd.f32 %v1775_v53, %v1422_v9  ;;  %2981 = vrot.lane.b32.xlu0 %v6084_v46, %s6942_s16  ;;  %v6018_v43 = vpack.c.bf16 %v2331_v63, %v2331_v63  ;;  %v6827_v10 = vld [vmem:[%s8531_s3 + $0x1c] sm:$0xff]   ;;  %v6828_v53 = vld [vmem:[%s8531_s3 + $0x14] sm:$0xff]   ;;  %v1890_v45 = vld [vmem:[#allocation2 + $0x68] sm:$0xff] }
 0x15f   : > { %v1810_v33 = vadd.f32 %v1778_v4, %v1425_v25  ;;  %v6021_v36 = vpack.c.bf16 %v2334_v51, %v2334_v51  ;;  %v6050_v60 = vpack.c.bf16 %v2588_v47, %v2588_v47  ;;  %v6053_v14 = vpack.c.bf16 %v2591_v21, %v2591_v21  ;;  %v1891_v22 = vld [vmem:[#allocation2 + $0x70] sm:$0xff]  ;;  %v1892_v9 = vld [vmem:[#allocation2 + $0x78] sm:$0xff]  ;;  %v1893_v51 = vld [vmem:[#allocation2 + $0x80] sm:$0xff] }
 0x160   : > { %1873 = vst [vmem:[#allocation2 + $0xf0] sm:$0xff] %v1841_v30  ;;  %v1423_v2 = vadd.f32 %v1391_v35, %v1038_v12  ;;  %v1839_v37 = vmul.f32 0.25, %v1807_v58  ;;  %v5950_v20 = vpack.c.bf16 %v1877_v44, %v1877_v44  ;;  %v6082_v40 = vpack.c.bf16 %v2845_v48, %v2845_v48  ;;  %v2851_v46 = vld [vmem:[#allocation2 + $0x54] sm:$0xff]  ;;  %v2850_v63 = vld [vmem:[#allocation2 + $0x4c] sm:$0xff]  ;;  %v2078_v58 = vld [vmem:[#allocation2 + $0x41] sm:$0xff] }
 0x161   : > { %2212 = vrot.lane.b32.xlu1 %v5989_v17, %s6939_s13  ;;  %v1842_v55 = vmul.f32 0.25, %v1810_v33  ;;  %v5954_v8 = vpack.c.bf16 %v7471_v3, %v7471_v3  ;;  %v5953_v50 = vpack.c.bf16 %v1880_v38, %v1880_v38  ;;  %v5955_v5 = vpack.c.bf16 %v7490_v52, %v7490_v52  ;;  %v1887_v3 = vld [vmem:[#allocation2 + $0x50] sm:$0xff]  ;;  %v2081_v33 = vld [vmem:[#allocation2 + $0x59] sm:$0xff]  ;;  %v1898_v21 = vld [vmem:[#allocation2 + $0xa8] sm:$0xff] }
 0x162   : > { %v1808_v41 = vadd.f32 %v1776_v32, %v1423_v2  ;;  %1871 = vst [vmem:[#allocation2 + $0xe0] sm:$0xff] %v1839_v37  ;;  %2463 = vrot.lane.b32.xlu0 %v6018_v43, %s6940_s14  ;;  %2038 = vst.msk [vmem:[#allocation4] sm:$0xf] %vm2037_vm1, %v5950_v20  ;;  %v6085_v11 = vpack.c.bf16 %v2848_v49, %v2848_v49  ;;  %v5956_v19 = vpack.c.bf16 %v1883_v16, %v1883_v16  ;;  %v1895_v35 = vld [vmem:[#allocation2 + $0x90] sm:$0xff]  ;;  %v1894_v32 = vld [vmem:[#allocation2 + $0x88] sm:$0xff] }
 0x163   : > { %1874 = vst [vmem:[#allocation2 + $0xf8] sm:$0xff] %v1842_v55  ;;  %2042 = vst.msk [vmem:[#allocation4 + $0x10] sm:$0xf] %vm2037_vm1, %v5954_v8  ;;  %v5992_v52 = vpack.c.bf16 %v2080_v29, %v2080_v29  ;;  %v5957_v39 = vpack.c.bf16 %v1884_v34, %v1884_v34  ;;  %v5991_v28 = vpack.c.bf16 %v2079_v0, %v2079_v0  ;;  %v3248_v59 = vsel %vm3246_vm2, %v6826_v23, 0  ;;  %v1896_v37 = vld [vmem:[#allocation2 + $0x98] sm:$0xff]  ;;  %v1897_v47 = vld [vmem:[#allocation2 + $0xa0] sm:$0xff] }
 0x164   : > { %v1840_v27 = vmul.f32 0.25, %v1808_v41  ;;  %2041 = vst.msk [vmem:[#allocation4 + $0xc] sm:$0xf] %vm2037_vm1, %v5953_v50  ;;  %2043 = vst.msk [vmem:[#allocation4 + $0x14] sm:$0xf] %vm2037_vm1, %v5955_v5  ;;  %v5960_v26 = vpack.c.bf16 %v1887_v3, %v1887_v3  ;;  %6479 = vmatpush3.bf16.msra.mxu0 %v3248_v59  ;;  %v5959_v57 = vpack.c.bf16 %v1886_v15, %v1886_v15  ;;  %v1899_v41 = vld [vmem:[#allocation2 + $0xb0] sm:$0xff] }
 0x165   : > { %2469 = vrot.lane.b32.xlu1 %v6021_v36, %s6940_s14  ;;  %2044 = vst.msk [vmem:[#allocation4 + $0x18] sm:$0xf] %vm2037_vm1, %v5956_v19  ;;  %2045 = vst.msk [vmem:[#allocation4 + $0x1c] sm:$0xf] %vm2037_vm1, %v5957_v39  ;;  %v6024_v6 = vpack.c.bf16 %v2337_v13, %v2337_v13  ;;  %6480 = vmatprep.subr.bf16.mxu0 %v6827_v10  ;;  %v5958_v4 = vpack.c.bf16 %v1885_v54, %v1885_v54  ;;  %v1900_v36 = vld [vmem:[#allocation2 + $0xb8] sm:$0xff]  ;;  %v1903_v44 = vld [vmem:[#allocation2 + $0xd0] sm:$0xff] }
 0x166   : > { %1872 = vst [vmem:[#allocation2 + $0xe8] sm:$0xff] %v1840_v27  ;;  %2720 = vrot.lane.b32.xlu0 %v6050_v60, %s6941_s15  ;;  %2048 = vst.msk [vmem:[#allocation4 + $0x28] sm:$0xf] %vm2037_vm1, %v5960_v26  ;;  %v5961_v31 = vpack.c.bf16 %v1888_v61, %v1888_v61  ;;  %v6023_v1 = vpack.c.bf16 %v2336_v24, %v2336_v24  ;;  %v6056_v62 = vpack.c.bf16 %v2594_v7, %v2594_v7  ;;  %v1901_v60 = vld [vmem:[#allocation2 + $0xc0] sm:$0xff]  ;;  %v1904_v38 = vld [vmem:[#allocation2 + $0xd8] sm:$0xff] }
 0x167   : > { %2047 = vst.msk [vmem:[#allocation4 + $0x24] sm:$0xf] %vm2037_vm1, %v5959_v57  ;;  %2046 = vst.msk [vmem:[#allocation4 + $0x20] sm:$0xf] %vm2037_vm1, %v5958_v4  ;;  %v5964_v42 = vpack.c.bf16 %v1891_v22, %v1891_v22  ;;  %v5963_v12 = vpack.c.bf16 %v1890_v45, %v1890_v45  ;;  %v6055_v30 = vpack.c.bf16 %v2593_v56, %v2593_v56  ;;  %v1907_v49 = vld [vmem:[#allocation2 + $0xf0] sm:$0xff]  ;;  %v2335_v34 = vld [vmem:[#allocation2 + $0x42] sm:$0xff] }
 0x168   : > { %6481 = vmatpush3.bf16.msra.mxu0 %v6827_v10  ;;  %2049 = vst.msk [vmem:[#allocation4 + $0x2c] sm:$0xf] %vm2037_vm1, %v5961_v31  ;;  %v5962_v25 = vpack.c.bf16 %v1889_v18, %v1889_v18  ;;  %v5965_v17 = vpack.c.bf16 %v1892_v9, %v1892_v9  ;;  %v6088_v2 = vpack.c.bf16 %v2851_v46, %v2851_v46  ;;  %v2338_v15 = vld [vmem:[#allocation2 + $0x5a] sm:$0xff]  ;;  %v2592_v54 = vld [vmem:[#allocation2 + $0x43] sm:$0xff]  ;;  %v2084_v31 = vld [vmem:[#allocation2 + $0x71] sm:$0xff] }
 0x169   : > { %2726 = vrot.lane.b32.xlu1 %v6053_v14, %s6941_s15  ;;  %6482 = vmatprep.subr.bf16.mxu0 %v6828_v53  ;;  %2052 = vst.msk [vmem:[#allocation4 + $0x38] sm:$0xf] %vm2037_vm1, %v5964_v42  ;;  %2051 = vst.msk [vmem:[#allocation4 + $0x34] sm:$0xf] %vm2037_vm1, %v5963_v12  ;;  %v5968_v43 = vpack.c.bf16 %v1895_v35, %v1895_v35  ;;  %v5967_v55 = vpack.c.bf16 %v1894_v32, %v1894_v32  ;;  %v1902_v14 = vld [vmem:[#allocation2 + $0xc8] sm:$0xff]  ;;  %v1905_v50 = vld [vmem:[#allocation2 + $0xe0] sm:$0xff] }
 0x16a   : > { %2977 = vrot.lane.b32.xlu0 %v6082_v40, %s6942_s16  ;;  %2050 = vst.msk [vmem:[#allocation4 + $0x30] sm:$0xf] %vm2037_vm1, %v5962_v25  ;;  %2053 = vst.msk [vmem:[#allocation4 + $0x3c] sm:$0xf] %vm2037_vm1, %v5965_v17  ;;  %v6087_v27 = vpack.c.bf16 %v2850_v63, %v2850_v63  ;;  %v5966_v48 = vpack.c.bf16 %v1893_v51, %v1893_v51  ;;  %v5990_v20 = vpack.c.bf16 %v2078_v58, %v2078_v58  ;;  %v1908_v29 = vld [vmem:[#allocation2 + $0xf8] sm:$0xff]  ;;  %v2083_v45 = vld [vmem:[#allocation2 + $0x69] sm:$0xff] }
 0x16b   : > { %2056 = vst.msk [vmem:[#allocation4 + $0x48] sm:$0xf] %vm2037_vm1, %v5968_v43  ;;  %2055 = vst.msk [vmem:[#allocation4 + $0x44] sm:$0xf] %vm2037_vm1, %v5967_v55  ;;  %v5993_v16 = vpack.c.bf16 %v2081_v33, %v2081_v33  ;;  %v5969_v40 = vpack.c.bf16 %v1896_v37, %v1896_v37  ;;  %v5972_v8 = vpack.c.bf16 %v1899_v41, %v1899_v41  ;;  %v2595_v24 = vld [vmem:[#allocation2 + $0x5b] sm:$0xff]  ;;  %v2341_v56 = vld [vmem:[#allocation2 + $0x72] sm:$0xff] }
 0x16c   : > { %6483 = vmatpush3.bf16.msra.mxu0 %v6828_v53  ;;  %2054 = vst.msk [vmem:[#allocation4 + $0x40] sm:$0xf] %vm2037_vm1, %v5966_v48  ;;  %v5970_v19 = vpack.c.bf16 %v1897_v47, %v1897_v47  ;;  %v5973_v23 = vpack.c.bf16 %v1900_v36, %v1900_v36  ;;  %v5974_v0 = vpack.c.bf16 %v1901_v60, %v1901_v60  ;;  %v2852_v7 = vld [vmem:[#allocation2 + $0x5c] sm:$0xff]  ;;  %v2598_v12 = vld [vmem:[#allocation2 + $0x73] sm:$0xff]  ;;  %v2597_v46 = vld [vmem:[#allocation2 + $0x6b] sm:$0xff] }
 0x16d   : > { %2983 = vrot.lane.b32.xlu1 %v6085_v11, %s6942_s16  ;;  %v1906_v5 = vld [vmem:[#allocation2 + $0xe8] sm:$0xff]  ;;  %v5971_v11 = vpack.c.bf16 %v1898_v21, %v1898_v21  ;;  %2057 = vst.msk [vmem:[#allocation4 + $0x4c] sm:$0xf] %vm2037_vm1, %v5969_v40  ;;  %2060 = vst.msk [vmem:[#allocation4 + $0x58] sm:$0xf] %vm2037_vm1, %v5972_v8  ;;  %v5975_v3 = vpack.c.bf16 %v1902_v14, %v1902_v14  ;;  %v5977_v39 = vpack.c.bf16 %v1904_v38, %v1904_v38  ;;  %v2855_v25 = vld [vmem:[#allocation2 + $0x74] sm:$0xff] }
 0x16e   : > { %2218 = vrot.lane.b32.xlu0 %v5992_v52, %s6939_s13  ;;  %v5976_v52 = vpack.c.bf16 %v1903_v44, %v1903_v44  ;;  %v5980_v10 = vpack.c.bf16 %v1907_v49, %v1907_v49  ;;  %2058 = vst.msk [vmem:[#allocation4 + $0x50] sm:$0xf] %vm2037_vm1, %v5970_v19  ;;  %2061 = vst.msk [vmem:[#allocation4 + $0x5c] sm:$0xf] %vm2037_vm1, %v5973_v23  ;;  %v5981_v13 = vpack.c.bf16 %v1908_v29, %v1908_v29  ;;  %v2854_v32 = vld [vmem:[#allocation2 + $0x6c] sm:$0xff]  ;;  %v2082_v58 = vld [vmem:[#allocation2 + $0x61] sm:$0xff] }
 0x16f   : > { %2059 = vst.msk [vmem:[#allocation4 + $0x54] sm:$0xf] %vm2037_vm1, %v5971_v11  ;;  %2062 = vst.msk [vmem:[#allocation4 + $0x60] sm:$0xf] %vm2037_vm1, %v5974_v0  ;;  %v5979_v59 = vpack.c.bf16 %v1906_v5, %v1906_v5  ;;  %v6022_v26 = vpack.c.bf16 %v2335_v34, %v2335_v34  ;;  %v6025_v61 = vpack.c.bf16 %v2338_v15, %v2338_v15  ;;  %v2339_v51 = vld [vmem:[#allocation2 + $0x62] sm:$0xff]  ;;  %v2342_v43 = vld [vmem:[#allocation2 + $0x7a] sm:$0xff] }
 0x170   : > { %2063 = vst.msk [vmem:[#allocation4 + $0x64] sm:$0xf] %vm2037_vm1, %v5975_v3  ;;  %2064 = vst.msk [vmem:[#allocation4 + $0x68] sm:$0xf] %vm2037_vm1, %v5976_v52  ;;  %v6054_v57 = vpack.c.bf16 %v2592_v54, %v2592_v54  ;;  %v6057_v53 = vpack.c.bf16 %v2595_v24, %v2595_v24  ;;  %v6089_v22 = vpack.c.bf16 %v2852_v7, %v2852_v7  ;;  %v2596_v41 = vld [vmem:[#allocation2 + $0x63] sm:$0xff]  ;;  %v2599_v36 = vld [vmem:[#allocation2 + $0x7b] sm:$0xff] }
 0x171   : > { %2216 = vrot.lane.b32.xlu1 %v5991_v28, %s6939_s13  ;;  %v5978_v28 = vpack.c.bf16 %v1905_v50, %v1905_v50  ;;  %2065 = vst.msk [vmem:[#allocation4 + $0x6c] sm:$0xf] %vm2037_vm1, %v5977_v39  ;;  %2068 = vst.msk [vmem:[#allocation4 + $0x78] sm:$0xf] %vm2037_vm1, %v5980_v10  ;;  %v5995_v18 = vpack.c.bf16 %v2083_v45, %v2083_v45  ;;  %v6028_v42 = vpack.c.bf16 %v2341_v56, %v2341_v56  ;;  %v2853_v21 = vld [vmem:[#allocation2 + $0x64] sm:$0xff]  ;;  %v2856_v44 = vld [vmem:[#allocation2 + $0x7c] sm:$0xff] }
 0x172   : > { %2475 = vrot.lane.b32.xlu0 %v6024_v6, %s6940_s14  ;;  %2069 = vst.msk [vmem:[#allocation4 + $0x7c] sm:$0xf] %vm2037_vm1, %v5981_v13  ;;  %2067 = vst.msk [vmem:[#allocation4 + $0x74] sm:$0xf] %vm2037_vm1, %v5979_v59  ;;  %v2849_v6 = vld [vmem:[#allocation2 + $0x44] sm:$0xff]  ;;  %v6059_v35 = vpack.c.bf16 %v2597_v46, %v2597_v46  ;;  %v6092_v63 = vpack.c.bf16 %v2855_v25, %v2855_v25  ;;  %v6091_v17 = vpack.c.bf16 %v2854_v32, %v2854_v32  ;;  %v2088_v38 = vld [vmem:[#allocation2 + $0x91] sm:$0xff] }
 0x173   : > { %2066 = vst.msk [vmem:[#allocation4 + $0x70] sm:$0xf] %vm2037_vm1, %v5978_v28  ;;  %v6086_v4 = vpack.c.bf16 %v2849_v6, %v2849_v6  ;;  %v5994_v33 = vpack.c.bf16 %v2082_v58, %v2082_v58  ;;  %v6026_v55 = vpack.c.bf16 %v2339_v51, %v2339_v51  ;;  %v6029_v47 = vpack.c.bf16 %v2342_v43, %v2342_v43  ;;  %v2345_v29 = vld [vmem:[#allocation2 + $0x92] sm:$0xff]  ;;  %v2344_v34 = vld [vmem:[#allocation2 + $0x8a] sm:$0xff]  ;;  %v2346_v45 = vld [vmem:[#allocation2 + $0x9a] sm:$0xff] }
 0x174   : > { %v6061_v60 = vpack.c.bf16 %v2599_v36, %v2599_v36  ;;  %v6090_v14 = vpack.c.bf16 %v2853_v21, %v2853_v21  ;;  %v6000_v8 = vpack.c.bf16 %v2088_v38, %v2088_v38  ;;  %v6032_v19 = vpack.c.bf16 %v2345_v29, %v2345_v29  ;;  %v2602_v23 = vld [vmem:[#allocation2 + $0x93] sm:$0xff]  ;;  %v2601_v52 = vld [vmem:[#allocation2 + $0x8b] sm:$0xff]  ;;  %v2860_v58 = vld [vmem:[#allocation2 + $0x9c] sm:$0xff] }
 0x175   : > { %2473 = vrot.lane.b32.xlu1 %v6023_v1, %s6940_s14  ;;  %v5996_v1 = vpack.c.bf16 %v2084_v31, %v2084_v31  ;;  %v6031_v3 = vpack.c.bf16 %v2344_v34, %v2344_v34  ;;  %v6064_v10 = vpack.c.bf16 %v2602_v23, %v2602_v23  ;;  %v2859_v15 = vld [vmem:[#allocation2 + $0x94] sm:$0xff]  ;;  %v6063_v28 = vpack.c.bf16 %v2601_v52, %v2601_v52  ;;  %v2858_v59 = vld [vmem:[#allocation2 + $0x8c] sm:$0xff] }
 0x176   : > { %2732 = vrot.lane.b32.xlu0 %v6056_v62, %s6941_s15  ;;  %v2340_v62 = vld [vmem:[#allocation2 + $0x6a] sm:$0xff]  ;;  %v6096_v54 = vpack.c.bf16 %v2859_v15, %v2859_v15  ;;  %v2089_v6 = vld [vmem:[#allocation2 + $0x99] sm:$0xff] }
 0x177   : > { %v6027_v9 = vpack.c.bf16 %v2340_v62, %v2340_v62  ;;  %v6835_v62 = vld [vmem:[%s8531_s3 + $0x10] ss:$0 sps:$4 sm:$0xff]   ;;  %v2349_v36 = vld [vmem:[#allocation2 + $0xb2] sm:$0xff] }
 0x178   : > { %6738 = vmatprep.subr.msk.bf16.mxu1 %vm3246_vm2, %v6835_v62  ;;  %v3403_v46 = vsel %vm3246_vm2, %v6835_v62, 0  ;;  %v2863_v29 = vld [vmem:[#allocation2 + $0xb4] sm:$0xff]  ;;  %v2862_v34 = vld [vmem:[#allocation2 + $0xac] sm:$0xff] }
 0x179   : > { %2730 = vrot.lane.b32.xlu1 %v6055_v30, %s6941_s15  ;;  %v6060_v30 = vpack.c.bf16 %v2598_v12, %v2598_v12  ;;  %v6033_v12 = vpack.c.bf16 %v2346_v45, %v2346_v45  ;;  %6509 = vmatpush3.bf16.msra.mxu1 %v3403_v46  ;;  %v6100_v23 = vpack.c.bf16 %v2863_v29, %v2863_v29  ;;  %v2861_v45 = vld [vmem:[#allocation2 + $0xa4] sm:$0xff] }
 0x17a   : > { %2989 = vrot.lane.b32.xlu0 %v6088_v2, %s6942_s16  ;;  %v2085_v2 = vld [vmem:[#allocation2 + $0x79] sm:$0xff]  ;;  %v6099_v52 = vpack.c.bf16 %v2862_v34, %v2862_v34  ;;  %v2094_v46 = vld [vmem:[#allocation2 + $0xc1] sm:$0xff] }
 0x17b   : > { %v5997_v37 = vpack.c.bf16 %v2085_v2, %v2085_v2 }
 0x17d   : > { %2987 = vrot.lane.b32.xlu1 %v6087_v27, %s6942_s16  ;;  %v6058_v27 = vpack.c.bf16 %v2596_v41, %v2596_v41 }
 0x17e   : > { %2214 = vrot.lane.b32.xlu0 %v5990_v20, %s6939_s13  ;;  %v6093_v20 = vpack.c.bf16 %v2856_v44, %v2856_v44 }
 0x181   : > { %2220 = vrot.lane.b32.xlu1 %v5993_v16, %s6939_s13  ;;  %v2087_v16 = vld [vmem:[#allocation2 + $0x89] sm:$0xff] }
 0x182   : > { %2471 = vrot.lane.b32.xlu0 %v6022_v26, %s6940_s14  ;;  %v5999_v5 = vpack.c.bf16 %v2087_v16, %v2087_v16  ;;  %v6838_v16 = vld [vmem:[%s8531_s3 + $0x38] ss:$0 sps:$4 sm:$0xff]  }
 0x183   : > { %6739 = vmatprep.subr.msk.bf16.mxu0 %vm3246_vm2, %v6838_v16 }
 0x185   : > { %2477 = vrot.lane.b32.xlu1 %v6025_v61, %s6940_s14  ;;  %v2086_v61 = vld [vmem:[#allocation2 + $0x81] sm:$0xff] }
 0x186   : > { %2728 = vrot.lane.b32.xlu0 %v6054_v57, %s6941_s15  ;;  %v6095_v57 = vpack.c.bf16 %v2858_v59, %v2858_v59  ;;  %v5998_v7 = vpack.c.bf16 %v2086_v61, %v2086_v61 }
 0x189   : > { %2734 = vrot.lane.b32.xlu1 %v6057_v53, %s6941_s15 }
 0x18a   : > { %2985 = vrot.lane.b32.xlu0 %v6086_v4, %s6942_s16  ;;  %v2343_v4 = vld [vmem:[#allocation2 + $0x82] sm:$0xff] }
 0x18b   : > { %v6030_v56 = vpack.c.bf16 %v2343_v4, %v2343_v4 }
 0x18d   : > { %2991 = vrot.lane.b32.xlu1 %v6089_v22, %s6942_s16  ;;  %v6001_v22 = vpack.c.bf16 %v2089_v6, %v2089_v6 }
 0x18e   : > { %2226 = vrot.lane.b32.xlu0 %v5996_v1, %s6939_s13 }
 0x191   : > { %2224 = vrot.lane.b32.xlu1 %v5995_v18, %s6939_s13  ;;  %v2600_v18 = vld [vmem:[#allocation2 + $0x83] sm:$0xff] }
 0x192   : > { %2483 = vrot.lane.b32.xlu0 %v6028_v42, %s6940_s14  ;;  %v6062_v25 = vpack.c.bf16 %v2600_v18, %v2600_v18 }
 0x195   : > { %2481 = vrot.lane.b32.xlu1 %v6027_v9, %s6940_s14  ;;  %v2603_v9 = vld [vmem:[#allocation2 + $0x9b] sm:$0xff] }
 0x196   : > { %2740 = vrot.lane.b32.xlu0 %v6060_v30, %s6941_s15 }
 0x199   : > { %2738 = vrot.lane.b32.xlu1 %v6059_v35, %s6941_s15  ;;  %v2857_v35 = vld [vmem:[#allocation2 + $0x84] sm:$0xff] }
 0x19a   : > { %2997 = vrot.lane.b32.xlu0 %v6092_v63, %s6942_s16  ;;  %v6065_v63 = vpack.c.bf16 %v2603_v9, %v2603_v9  ;;  %v6094_v2 = vpack.c.bf16 %v2857_v35, %v2857_v35  ;;  %v6098_v9 = vpack.c.bf16 %v2861_v45, %v2861_v45  ;;  %v2095_v35 = vld [vmem:[#allocation2 + $0xc9] sm:$0xff]  ;;  %v2610_v45 = vld [vmem:[#allocation2 + $0xd3] sm:$0xff] }
 0x19d   : > { %2995 = vrot.lane.b32.xlu1 %v6091_v17, %s6942_s16 }
 0x19e   : > { %2222 = vrot.lane.b32.xlu0 %v5994_v33, %s6939_s13  ;;  %v2092_v33 = vld [vmem:[#allocation2 + $0xb1] sm:$0xff] }
 0x1a1   : > { %2228 = vrot.lane.b32.xlu1 %v5997_v37, %s6939_s13  ;;  %v6097_v37 = vpack.c.bf16 %v2860_v58, %v2860_v58  ;;  %v2351_v58 = vld [vmem:[#allocation2 + $0xc2] sm:$0xff] }
 0x1a2   : > { %2479 = vrot.lane.b32.xlu0 %v6026_v55, %s6940_s14  ;;  %v2091_v55 = vld [vmem:[#allocation2 + $0xa9] sm:$0xff] }
 0x1a3   : > { %v6003_v21 = vpack.c.bf16 %v2091_v55, %v2091_v55  ;;  %v6038_v55 = vpack.c.bf16 %v2351_v58, %v2351_v58 }
 0x1a5   : > { %2485 = vrot.lane.b32.xlu1 %v6029_v47, %s6940_s14  ;;  %v6004_v47 = vpack.c.bf16 %v2092_v33, %v2092_v33  ;;  %v6007_v33 = vpack.c.bf16 %v2095_v35, %v2095_v35 }
 0x1a6   : > { %2736 = vrot.lane.b32.xlu0 %v6058_v27, %s6941_s15 }
 0x1a8   : > { %v2203_v48 = vpop.permute.xlu0 %2202 }
 0x1a9   : > { %2742 = vrot.lane.b32.xlu1 %v6061_v60, %s6941_s15  ;;  %2297 = vst.msk [vmem:[#allocation4 + $0x8] sm:$0xf] %vm2294_vm3, %v2203_v48  ;;  %v2348_v60 = vld [vmem:[#allocation2 + $0xaa] sm:$0xff]  ;;  %v6036_v48 = vpack.c.bf16 %v2349_v36, %v2349_v36 }
 0x1aa   : > { %v2201_v49 = vpop.permute.xlu1 %2200  ;;  %2993 = vrot.lane.b32.xlu0 %v6090_v14, %s6942_s16  ;;  %v2606_v14 = vld [vmem:[#allocation2 + $0xb3] sm:$0xff] }
 0x1ab   : > { %2296 = vst.msk [vmem:[#allocation4 + $0x4] sm:$0xf] %vm2294_vm3, %v2201_v49  ;;  %v6035_v49 = vpack.c.bf16 %v2348_v60, %v2348_v60 }
 0x1ac   : > { %v2460_v40 = vpop.permute.xlu0 %2459 }
 0x1ad   : > { %2999 = vrot.lane.b32.xlu1 %v6093_v20, %s6942_s16  ;;  %2554 = vst.msk [vmem:[#allocation4 + $0x8] sm:$0xf] %vm2551_vm4, %v2460_v40  ;;  %v2605_v20 = vld [vmem:[#allocation2 + $0xab] sm:$0xff] }
 0x1ae   : > { %v2458_v50 = vpop.permute.xlu1 %2457  ;;  %2234 = vrot.lane.b32.xlu0 %v6000_v8, %s6939_s13  ;;  %v6068_v8 = vpack.c.bf16 %v2606_v14, %v2606_v14 }
 0x1af   : > { %2553 = vst.msk [vmem:[#allocation4 + $0x4] sm:$0xf] %vm2551_vm4, %v2458_v50 }
 0x1b0   : > { %v2717_v11 = vpop.permute.xlu0 %2716 }
 0x1b1   : > { %2232 = vrot.lane.b32.xlu1 %v5999_v5, %s6939_s13  ;;  %2811 = vst.msk [vmem:[#allocation4 + $0x8] sm:$0xf] %vm2808_vm5, %v2717_v11  ;;  %v6067_v5 = vpack.c.bf16 %v2605_v20, %v2605_v20  ;;  %v6839_v11 = vld [vmem:[%s8531_s3 + $0x8] sm:$0xff]  }
 0x1b2   : > { %v2462_v0 = vpop.permute.xlu1 %2461  ;;  %2491 = vrot.lane.b32.xlu0 %v6032_v19, %s6940_s14  ;;  %6510 = vmatprep.subr.bf16.mxu1 %v6839_v11 }
 0x1b3   : > { %6511 = vmatpush3.bf16.msra.mxu1 %v6839_v11  ;;  %v2841_v11 = vld [vmem:[#allocation2 + $0x4] sm:$0xff] }
 0x1b4   : > { %v2974_v39 = vpop.permute.xlu0 %2973 }
 0x1b5   : > { %2489 = vrot.lane.b32.xlu1 %v6031_v3, %s6940_s14  ;;  %3068 = vst.msk [vmem:[#allocation4 + $0x8] sm:$0xf] %vm3065_vm6, %v2974_v39  ;;  %v2093_v39 = vld [vmem:[#allocation2 + $0xb9] sm:$0xff] }
 0x1b6   : > { %v2719_v13 = vpop.permute.xlu1 %2718  ;;  %2748 = vrot.lane.b32.xlu0 %v6064_v10, %s6941_s15  ;;  %v6005_v59 = vpack.c.bf16 %v2093_v39, %v2093_v39  ;;  %v2096_v39 = vld [vmem:[#allocation2 + $0xd1] sm:$0xff] }
 0x1b8   : > { %v2199_v26 = vpop.permute.xlu0 %2198 }
 0x1b9   : > { %2746 = vrot.lane.b32.xlu1 %v6063_v28, %s6941_s15  ;;  %2295 = vst.msk [vmem:[#allocation4] sm:$0xf] %vm2294_vm3, %v2199_v26  ;;  %v2350_v26 = vld [vmem:[#allocation2 + $0xba] sm:$0xff] }
 0x1ba   : > { %v2976_v24 = vpop.permute.xlu1 %2975  ;;  %3005 = vrot.lane.b32.xlu0 %v6096_v54, %s6942_s16  ;;  %v6037_v6 = vpack.c.bf16 %v2350_v26, %v2350_v26 }
 0x1bc   : > { %v2456_v53 = vpop.permute.xlu0 %2455 }
 0x1bd   : > { %3003 = vrot.lane.b32.xlu1 %v6095_v57, %s6942_s16  ;;  %2552 = vst.msk [vmem:[#allocation4] sm:$0xf] %vm2551_vm4, %v2456_v53  ;;  %v2607_v53 = vld [vmem:[#allocation2 + $0xbb] sm:$0xff] }
 0x1be   : > { %v2207_v31 = vpop.permute.xlu1 %2206  ;;  %2230 = vrot.lane.b32.xlu0 %v5998_v7, %s6939_s13  ;;  %v6069_v18 = vpack.c.bf16 %v2607_v53, %v2607_v53 }
 0x1bf   : > { %2299 = vst.msk [vmem:[#allocation4 + $0x10] sm:$0xf] %vm2294_vm3, %v2207_v31 }
 0x1c0   : > { %v2205_v1 = vpop.permute.xlu0 %2204 }
 0x1c1   : > { %2236 = vrot.lane.b32.xlu1 %v6001_v22, %s6939_s13  ;;  %2298 = vst.msk [vmem:[#allocation4 + $0xc] sm:$0xf] %vm2294_vm3, %v2205_v1  ;;  %v3675_v22 = vsel %vm3246_vm2, %v6838_v16, 0  ;;  %v6840_v1 = vld [vmem:[%s8531_s3 + $0x30] sm:$0xff]  }
 0x1c2   : > { %2555 = vst.msk [vmem:[#allocation4 + $0xc] sm:$0xf] %vm2551_vm4, %v2462_v0  ;;  %v2209_v42 = vpop.permute.xlu1 %2208  ;;  %2487 = vrot.lane.b32.xlu0 %v6030_v56, %s6940_s14  ;;  %v2090_v0 = vld [vmem:[#allocation2 + $0xa1] sm:$0xff] }
 0x1c3   : > { %2812 = vst.msk [vmem:[#allocation4 + $0xc] sm:$0xf] %vm2808_vm5, %v2719_v13  ;;  %v6002_v15 = vpack.c.bf16 %v2090_v0, %v2090_v0  ;;  %v2347_v13 = vld [vmem:[#allocation2 + $0xa2] sm:$0xff]  ;;  %v2842_v0 = vld [vmem:[#allocation2 + $0xc] sm:$0xff] }
 0x1c4   : > { %2300 = vst.msk [vmem:[#allocation4 + $0x14] sm:$0xf] %vm2294_vm3, %v2209_v42  ;;  %v2211_v30 = vpop.permute.xlu0 %2210  ;;  %v6034_v61 = vpack.c.bf16 %v2347_v13, %v2347_v13  ;;  %v2864_v42 = vld [vmem:[#allocation2 + $0xbc] sm:$0xff]  ;;  %v6079_v13 = vpack.c.bf16 %v2842_v0, %v2842_v0 }
 0x1c5   : > { %3069 = vst.msk [vmem:[#allocation4 + $0xc] sm:$0xf] %vm3065_vm6, %v2976_v24  ;;  %2493 = vrot.lane.b32.xlu1 %v6033_v12, %s6940_s14  ;;  %v2604_v24 = vld [vmem:[#allocation2 + $0xa3] sm:$0xff] }
 0x1c6   : > { %2301 = vst.msk [vmem:[#allocation4 + $0x18] sm:$0xf] %vm2294_vm3, %v2211_v30  ;;  %v2466_v32 = vpop.permute.xlu1 %2465  ;;  %2744 = vrot.lane.b32.xlu0 %v6062_v25, %s6941_s15  ;;  %v6066_v4 = vpack.c.bf16 %v2604_v24, %v2604_v24  ;;  %v6101_v25 = vpack.c.bf16 %v2864_v42, %v2864_v42  ;;  %v2353_v24 = vld [vmem:[#allocation2 + $0xd2] sm:$0xff] }
 0x1c7   : > { %2557 = vst.msk [vmem:[#allocation4 + $0x14] sm:$0xf] %vm2551_vm4, %v2466_v32 }
 0x1c8   : > { %v2468_v17 = vpop.permute.xlu0 %2467 }
 0x1c9   : > { %2750 = vrot.lane.b32.xlu1 %v6065_v63, %s6941_s15  ;;  %2558 = vst.msk [vmem:[#allocation4 + $0x18] sm:$0xf] %vm2551_vm4, %v2468_v17  ;;  %v6006_v63 = vpack.c.bf16 %v2094_v46, %v2094_v46  ;;  %v6843_v17 = vld [vmem:[%s8531_s3] sm:$0xff]  }
 0x1ca   : > { %v2723_v51 = vpop.permute.xlu1 %2722  ;;  %3001 = vrot.lane.b32.xlu0 %v6094_v2, %s6942_s16  ;;  %6512 = vmatprep.subr.bf16.mxu1 %v6843_v17 }
 0x1cb   : > { %2814 = vst.msk [vmem:[#allocation4 + $0x14] sm:$0xf] %vm2808_vm5, %v2723_v51  ;;  %v2352_v51 = vld [vmem:[#allocation2 + $0xca] sm:$0xff]  ;;  %6513 = vmatpush3.bf16.msra.mxu1 %v6843_v17 }
 0x1cc   : > { %v7747_v43 = vld [vmem:[#allocation4 + $0x8] sm:$0xff]   ;;  %v2725_v41 = vpop.permute.xlu0 %2724  ;;  %v6039_v36 = vpack.c.bf16 %v2352_v51, %v2352_v51 }
 0x1cd   : > { %3007 = vrot.lane.b32.xlu1 %v6097_v37, %s6942_s16  ;;  %2815 = vst.msk [vmem:[#allocation4 + $0x18] sm:$0xf] %vm2808_vm5, %v2725_v41  ;;  %6484 = vmatprep.mubr.msk.bf16.mxu0 %vm3209_vm7, %v7747_v43  ;;  %v2608_v41 = vld [vmem:[#allocation2 + $0xc3] sm:$0xff] }
 0x1ce   : > { %2242 = vrot.lane.b32.xlu0 %v6004_v47, %s6939_s13 }
 0x1cf   : > { %v2980_v27 = vpop.permute.xlu1 %2979 }
 0x1d0   : > { %3071 = vst.msk [vmem:[#allocation4 + $0x14] sm:$0xf] %vm3065_vm6, %v2980_v27  ;;  %v2982_v44 = vpop.permute.xlu0 %2981  ;;  %v2609_v27 = vld [vmem:[#allocation2 + $0xcb] sm:$0xff] }
 0x1d1   : > { %2240 = vrot.lane.b32.xlu1 %v6003_v21, %s6939_s13  ;;  %3072 = vst.msk [vmem:[#allocation4 + $0x18] sm:$0xf] %vm3065_vm6, %v2982_v44  ;;  %v6844_v21 = vld [vmem:[%s8531_s3 + $0x28] sm:$0xff]   ;;  %v6070_v44 = vpack.c.bf16 %v2608_v41, %v2608_v41 }
 0x1d2   : > { %2499 = vrot.lane.b32.xlu0 %v6036_v48, %s6940_s14  ;;  %v2865_v48 = vld [vmem:[#allocation2 + $0xc4] sm:$0xff] }
 0x1d3   : > { %v2213_v38 = vpop.permute.xlu1 %2212  ;;  %v6102_v16 = vpack.c.bf16 %v2865_v48, %v2865_v48  ;;  %v2615_v48 = vld [vmem:[#allocation2 + $0xfb] sm:$0xff] }
 0x1d4   : > { %2302 = vst.msk [vmem:[#allocation4 + $0x1c] sm:$0xf] %vm2294_vm3, %v2213_v38  ;;  %v2464_v40 = vpop.permute.xlu0 %2463  ;;  %v6071_v38 = vpack.c.bf16 %v2609_v27, %v2609_v27 }
 0x1d5   : > { %2497 = vrot.lane.b32.xlu1 %v6035_v49, %s6940_s14  ;;  %2556 = vst.msk [vmem:[#allocation4 + $0x10] sm:$0xf] %vm2551_vm4, %v2464_v40  ;;  %v2866_v49 = vld [vmem:[#allocation2 + $0xcc] sm:$0xff]  ;;  %v2584_v40 = vld [vmem:[#allocation2 + $0x3] sm:$0xff] }
 0x1d6   : > { %2756 = vrot.lane.b32.xlu0 %v6068_v8, %s6941_s15  ;;  %v6103_v29 = vpack.c.bf16 %v2866_v49, %v2866_v49  ;;  %v6046_v34 = vpack.c.bf16 %v2584_v40, %v2584_v40  ;;  %v2098_v49 = vld [vmem:[#allocation2 + $0xe1] sm:$0xff]  ;;  %v2099_v40 = vld [vmem:[#allocation2 + $0xe9] sm:$0xff] }
 0x1d7   : > { %v2470_v50 = vpop.permute.xlu1 %2469 }
 0x1d8   : > { %2559 = vst.msk [vmem:[#allocation4 + $0x1c] sm:$0xf] %vm2551_vm4, %v2470_v50  ;;  %v2721_v19 = vpop.permute.xlu0 %2720  ;;  %v2585_v50 = vld [vmem:[#allocation2 + $0xb] sm:$0xff] }
 0x1d9   : > { %2754 = vrot.lane.b32.xlu1 %v6067_v5, %s6941_s15  ;;  %2813 = vst.msk [vmem:[#allocation4 + $0x10] sm:$0xf] %vm2808_vm5, %v2721_v19 }
 0x1da   : > { %3013 = vrot.lane.b32.xlu0 %v6100_v23, %s6942_s16  ;;  %v6047_v23 = vpack.c.bf16 %v2585_v50, %v2585_v50  ;;  %v2355_v50 = vld [vmem:[#allocation2 + $0xe2] sm:$0xff] }
 0x1db   : > { %v2727_v3 = vpop.permute.xlu1 %2726 }
 0x1dc   : > { %2816 = vst.msk [vmem:[#allocation4 + $0x1c] sm:$0xf] %vm2808_vm5, %v2727_v3  ;;  %v2978_v10 = vpop.permute.xlu0 %2977 }
 0x1dd   : > { %3011 = vrot.lane.b32.xlu1 %v6099_v52, %s6942_s16  ;;  %3070 = vst.msk [vmem:[#allocation4 + $0x10] sm:$0xf] %vm3065_vm6, %v2978_v10  ;;  %v6078_v52 = vpack.c.bf16 %v2841_v11, %v2841_v11  ;;  %v7833_v10 = vld [vmem:[%s8531_s3 + $0x4c] ss:$0 sps:$4 sm:$0xff]  }
 0x1de   : > { %2238 = vrot.lane.b32.xlu0 %v6002_v15, %s6939_s13  ;;  %6740 = vmatprep.subr.msk.bf16.mxu1 %vm3246_vm2, %v7833_v10  ;;  %v2356_v11 = vld [vmem:[#allocation2 + $0xea] sm:$0xff] }
 0x1df   : > { %v2984_v28 = vpop.permute.xlu1 %2983 }
 0x1e0   : > { %3073 = vst.msk [vmem:[#allocation4 + $0x1c] sm:$0xf] %vm3065_vm6, %v2984_v28  ;;  %v2219_v54 = vpop.permute.xlu0 %2218  ;;  %v2097_v28 = vld [vmem:[#allocation2 + $0xd9] sm:$0xff] }
 0x1e1   : > { %2244 = vrot.lane.b32.xlu1 %v6005_v59, %s6939_s13  ;;  %2305 = vst.msk [vmem:[#allocation4 + $0x28] sm:$0xf] %vm2294_vm3, %v2219_v54  ;;  %v7842_v59 = vld [vmem:[%s8531_s3 + $0x60] ss:$0 sps:$4 sm:$0xff]   ;;  %v6008_v54 = vpack.c.bf16 %v2096_v39, %v2096_v39  ;;  %v6043_v39 = vpack.c.bf16 %v2356_v11, %v2356_v11 }
 0x1e2   : > { %2495 = vrot.lane.b32.xlu0 %v6034_v61, %s6940_s14 }
 0x1e3   : > { %v2217_v57 = vpop.permute.xlu1 %2216 }
 0x1e4   : > { %2304 = vst.msk [vmem:[#allocation4 + $0x24] sm:$0xf] %vm2294_vm3, %v2217_v57  ;;  %v2476_v7 = vpop.permute.xlu0 %2475  ;;  %v7783_v31 = vld [vmem:[#allocation4 + $0x10] sm:$0xff]  }
 0x1e5   : > { %2501 = vrot.lane.b32.xlu1 %v6037_v6, %s6940_s14  ;;  %2562 = vst.msk [vmem:[#allocation4 + $0x28] sm:$0xf] %vm2551_vm4, %v2476_v7  ;;  %6485 = vmatmul.mubr.msk.bf16.vlgmr.msra.gmra.mxu0 %vm3209_vm7, %v7783_v31  ;;  %v6009_v6 = vpack.c.bf16 %v2097_v28, %v2097_v28  ;;  %v2354_v7 = vld [vmem:[#allocation2 + $0xda] sm:$0xff] }
 0x1e6   : > { %2752 = vrot.lane.b32.xlu0 %v6066_v4, %s6941_s15  ;;  %6539 = vmatpush3.bf16.msra.mxu0 %v3675_v22  ;;  %v6040_v22 = vpack.c.bf16 %v2353_v24, %v2353_v24 }
 0x1e7   : > { %v2474_v56 = vpop.permute.xlu1 %2473  ;;  %v7793_v62 = vld [vmem:[#allocation4 + $0x18] sm:$0xff]   ;;  %6540 = vmatprep.subr.bf16.mxu0 %v6840_v1 }
 0x1e8   : > { %2561 = vst.msk [vmem:[#allocation4 + $0x24] sm:$0xf] %vm2551_vm4, %v2474_v56  ;;  %v2733_v12 = vpop.permute.xlu0 %2732  ;;  %6488 = vmatprep.mubr.msk.bf16.mxu0 %vm3209_vm7, %v7793_v62  ;;  %v6041_v56 = vpack.c.bf16 %v2354_v7, %v2354_v7 }
 0x1e9   : > { %2758 = vrot.lane.b32.xlu1 %v6069_v18, %s6941_s15  ;;  %2819 = vst.msk [vmem:[#allocation4 + $0x28] sm:$0xf] %vm2808_vm5, %v2733_v12  ;;  %v2611_v18 = vld [vmem:[#allocation2 + $0xdb] sm:$0xff]  ;;  %v6072_v12 = vpack.c.bf16 %v2610_v45, %v2610_v45 }
 0x1ea   : > { %3009 = vrot.lane.b32.xlu0 %v6098_v9, %s6942_s16  ;;  %6541 = vmatpush3.bf16.msra.mxu0 %v6840_v1  ;;  %v2867_v9 = vld [vmem:[#allocation2 + $0xd4] sm:$0xff] }
 0x1eb   : > { %v2731_v30 = vpop.permute.xlu1 %2730  ;;  %6542 = vmatprep.subr.bf16.mxu0 %v6844_v21 }
 0x1ec   : > { %2818 = vst.msk [vmem:[#allocation4 + $0x24] sm:$0xf] %vm2808_vm5, %v2731_v30  ;;  %v2990_v32 = vpop.permute.xlu0 %2989  ;;  %v6073_v30 = vpack.c.bf16 %v2611_v18, %v2611_v18 }
 0x1ed   : > { %3015 = vrot.lane.b32.xlu1 %v6101_v25, %s6942_s16  ;;  %3076 = vst.msk [vmem:[#allocation4 + $0x28] sm:$0xf] %vm3065_vm6, %v2990_v32  ;;  %v2868_v25 = vld [vmem:[#allocation2 + $0xdc] sm:$0xff]  ;;  %v6104_v32 = vpack.c.bf16 %v2867_v9, %v2867_v9 }
 0x1ee   : > { %2246 = vrot.lane.b32.xlu0 %v6006_v63, %s6939_s13  ;;  %6543 = vmatpush3.bf16.msra.mxu0 %v6844_v21  ;;  %v2100_v63 = vld [vmem:[#allocation2 + $0xf1] sm:$0xff]  ;;  %v6105_v17 = vpack.c.bf16 %v2868_v25, %v2868_v25 }
 0x1ef   : > { %v2988_v2 = vpop.permute.xlu1 %2987  ;;  %6741 = vmatprep.subr.msk.bf16.mxu0 %vm3246_vm2, %v7842_v59  ;;  %v6012_v51 = vpack.c.bf16 %v2100_v63, %v2100_v63  ;;  %v2614_v21 = vld [vmem:[#allocation2 + $0xf3] sm:$0xff] }
 0x1f0   : > { %3075 = vst.msk [vmem:[#allocation4 + $0x24] sm:$0xf] %vm3065_vm6, %v2988_v2  ;;  %v2215_v37 = vpop.permute.xlu0 %2214  ;;  %v2101_v2 = vld [vmem:[#allocation2 + $0xf9] sm:$0xff] }
 0x1f1   : > { %2248 = vrot.lane.b32.xlu1 %v6007_v33, %s6939_s13  ;;  %2303 = vst.msk [vmem:[#allocation4 + $0x20] sm:$0xf] %vm2294_vm3, %v2215_v37  ;;  %v2357_v37 = vld [vmem:[#allocation2 + $0xf2] sm:$0xff]  ;;  %v6013_v41 = vpack.c.bf16 %v2101_v2, %v2101_v2 }
 0x1f2   : > { %2503 = vrot.lane.b32.xlu0 %v6038_v55, %s6940_s14  ;;  %v6044_v27 = vpack.c.bf16 %v2357_v37, %v2357_v37 }
 0x1f3   : > { %v2221_v47 = vpop.permute.xlu1 %2220 }
 0x1f4   : > { %2306 = vst.msk [vmem:[#allocation4 + $0x2c] sm:$0xf] %vm2294_vm3, %v2221_v47  ;;  %v2472_v60 = vpop.permute.xlu0 %2471  ;;  %v2358_v47 = vld [vmem:[#allocation2 + $0xfa] sm:$0xff] }
 0x1f5   : > { %2505 = vrot.lane.b32.xlu1 %v6039_v36, %s6940_s14  ;;  %2560 = vst.msk [vmem:[#allocation4 + $0x20] sm:$0xf] %vm2551_vm4, %v2472_v60 }
 0x1f6   : > { %2760 = vrot.lane.b32.xlu0 %v6070_v44, %s6941_s15  ;;  %v6045_v44 = vpack.c.bf16 %v2358_v47, %v2358_v47 }
 0x1f7   : > { %v2478_v14 = vpop.permute.xlu1 %2477 }
 0x1f8   : > { %2563 = vst.msk [vmem:[#allocation4 + $0x2c] sm:$0xf] %vm2551_vm4, %v2478_v14  ;;  %v2729_v20 = vpop.permute.xlu0 %2728 }
 0x1f9   : > { %2762 = vrot.lane.b32.xlu1 %v6071_v38, %s6941_s15  ;;  %2817 = vst.msk [vmem:[#allocation4 + $0x20] sm:$0xf] %vm2808_vm5, %v2729_v20  ;;  %v6076_v38 = vpack.c.bf16 %v2614_v21, %v2614_v21 }
 0x1fa   : > { %3017 = vrot.lane.b32.xlu0 %v6102_v16, %s6942_s16  ;;  %v6077_v16 = vpack.c.bf16 %v2615_v48, %v2615_v48 }
 0x1fb   : > { %v2735_v8 = vpop.permute.xlu1 %2734 }
 0x1fc   : > { %2820 = vst.msk [vmem:[#allocation4 + $0x2c] sm:$0xf] %vm2808_vm5, %v2735_v8  ;;  %v2986_v5 = vpop.permute.xlu0 %2985 }
 0x1fd   : > { %3019 = vrot.lane.b32.xlu1 %v6103_v29, %s6942_s16  ;;  %3074 = vst.msk [vmem:[#allocation4 + $0x20] sm:$0xf] %vm3065_vm6, %v2986_v5  ;;  %v6010_v29 = vpack.c.bf16 %v2098_v49, %v2098_v49 }
 0x1fe   : > { %2712 = vrot.lane.b32.xlu0 %v6046_v34, %s6941_s15  ;;  %v6011_v34 = vpack.c.bf16 %v2099_v40, %v2099_v40 }
 0x1ff   : > { %v2992_v19 = vpop.permute.xlu1 %2991 }
 0x200   : > { %3077 = vst.msk [vmem:[#allocation4 + $0x2c] sm:$0xf] %vm3065_vm6, %v2992_v19  ;;  %v2227_v3 = vpop.permute.xlu0 %2226 }
 0x201   : > { %2714 = vrot.lane.b32.xlu1 %v6047_v23, %s6941_s15  ;;  %2309 = vst.msk [vmem:[#allocation4 + $0x38] sm:$0xf] %vm2294_vm3, %v2227_v3  ;;  %v6042_v23 = vpack.c.bf16 %v2355_v50, %v2355_v50  ;;  %v2612_v3 = vld [vmem:[#allocation2 + $0xe3] sm:$0xff] }
 0x202   : > { %2969 = vrot.lane.b32.xlu0 %v6078_v52, %s6942_s16 }
 0x203   : > { %v2225_v15 = vpop.permute.xlu1 %2224 }
 0x204   : > { %2308 = vst.msk [vmem:[#allocation4 + $0x34] sm:$0xf] %vm2294_vm3, %v2225_v15  ;;  %v2484_v26 = vpop.permute.xlu0 %2483  ;;  %v7845_v61 = vld [vmem:[#allocation4 + $0x20] sm:$0xff]  }
 0x205   : > { %2971 = vrot.lane.b32.xlu1 %v6079_v13, %s6942_s16  ;;  %2566 = vst.msk [vmem:[#allocation4 + $0x38] sm:$0xf] %vm2551_vm4, %v2484_v26  ;;  %6489 = vmatmul.mubr.msk.bf16.gmra.mxu0 %vm3209_vm7, %v7845_v61  ;;  %v2613_v13 = vld [vmem:[#allocation2 + $0xeb] sm:$0xff]  ;;  %v6074_v26 = vpack.c.bf16 %v2612_v3, %v2612_v3 }
 0x206   : > { %2250 = vrot.lane.b32.xlu0 %v6008_v54, %s6939_s13  ;;  %v2869_v54 = vld [vmem:[#allocation2 + $0xe4] sm:$0xff] }
 0x207   : > { %v2482_v57 = vpop.permute.xlu1 %2481  ;;  %v7853_v53 = vld [vmem:[#allocation4 + $0x28] sm:$0xff]  }
 0x208   : > { %2565 = vst.msk [vmem:[#allocation4 + $0x34] sm:$0xf] %vm2551_vm4, %v2482_v57  ;;  %v2741_v4 = vpop.permute.xlu0 %2740  ;;  %6492 = vmatprep.mubr.msk.bf16.mxu0 %vm3209_vm7, %v7853_v53  ;;  %v6075_v57 = vpack.c.bf16 %v2613_v13, %v2613_v13 }
 0x209   : > { %2252 = vrot.lane.b32.xlu1 %v6009_v6, %s6939_s13  ;;  %2823 = vst.msk [vmem:[#allocation4 + $0x38] sm:$0xf] %vm2808_vm5, %v2741_v4  ;;  %v2870_v6 = vld [vmem:[#allocation2 + $0xec] sm:$0xff]  ;;  %v6106_v4 = vpack.c.bf16 %v2869_v54, %v2869_v54 }
 0x20a   : > { %2507 = vrot.lane.b32.xlu0 %v6040_v22, %s6940_s14  ;;  %v2871_v22 = vld [vmem:[#allocation2 + $0xf4] sm:$0xff] }
 0x20b   : > { %v2739_v1 = vpop.permute.xlu1 %2738 }
 0x20c   : > { %2822 = vst.msk [vmem:[#allocation4 + $0x34] sm:$0xf] %vm2808_vm5, %v2739_v1  ;;  %v2998_v42 = vpop.permute.xlu0 %2997  ;;  %v6107_v1 = vpack.c.bf16 %v2870_v6, %v2870_v6 }
 0x20d   : > { %2509 = vrot.lane.b32.xlu1 %v6041_v56, %s6940_s14  ;;  %3080 = vst.msk [vmem:[#allocation4 + $0x38] sm:$0xf] %vm3065_vm6, %v2998_v42  ;;  %v2872_v56 = vld [vmem:[#allocation2 + $0xfc] sm:$0xff]  ;;  %v6108_v42 = vpack.c.bf16 %v2871_v22, %v2871_v22  ;;  %v3971_v22 = vsel %vm3246_vm2, %v7833_v10, 0 }
 0x20e   : > { %2764 = vrot.lane.b32.xlu0 %v6072_v12, %s6941_s15  ;;  %v6109_v9 = vpack.c.bf16 %v2872_v56, %v2872_v56  ;;  %v4267_v56 = vsel %vm3246_vm2, %v7842_v59, 0  ;;  %v6862_v59 = vld [vmem:[%s8531_s3 + $0x3c] sm:$0xff]  }
 0x20f   : > { %v2996_v46 = vpop.permute.xlu1 %2995 }
 0x210   : > { %3079 = vst.msk [vmem:[#allocation4 + $0x34] sm:$0xf] %vm3065_vm6, %v2996_v46  ;;  %v2223_v35 = vpop.permute.xlu0 %2222 }
 0x211   : > { %2766 = vrot.lane.b32.xlu1 %v6073_v30, %s6941_s15  ;;  %2307 = vst.msk [vmem:[#allocation4 + $0x30] sm:$0xf] %vm2294_vm3, %v2223_v35 }
 0x212   : > { %3021 = vrot.lane.b32.xlu0 %v6104_v32, %s6942_s16 }
 0x213   : > { %v2229_v58 = vpop.permute.xlu1 %2228 }
 0x214   : > { %2310 = vst.msk [vmem:[#allocation4 + $0x3c] sm:$0xf] %vm2294_vm3, %v2229_v58  ;;  %v2480_v33 = vpop.permute.xlu0 %2479 }
 0x215   : > { %3023 = vrot.lane.b32.xlu1 %v6105_v17, %s6942_s16  ;;  %2564 = vst.msk [vmem:[#allocation4 + $0x30] sm:$0xf] %vm2551_vm4, %v2480_v33 }
 0x216   : > { %2258 = vrot.lane.b32.xlu0 %v6012_v51, %s6939_s13 }
 0x217   : > { %v2486_v55 = vpop.permute.xlu1 %2485 }
 0x218   : > { %2567 = vst.msk [vmem:[#allocation4 + $0x3c] sm:$0xf] %vm2551_vm4, %v2486_v55  ;;  %v2737_v36 = vpop.permute.xlu0 %2736 }
 0x219   : > { %2260 = vrot.lane.b32.xlu1 %v6013_v41, %s6939_s13  ;;  %2821 = vst.msk [vmem:[#allocation4 + $0x30] sm:$0xf] %vm2808_vm5, %v2737_v36 }
 0x21a   : > { %2515 = vrot.lane.b32.xlu0 %v6044_v27, %s6940_s14 }
 0x21b   : > { %v2743_v60 = vpop.permute.xlu1 %2742 }
 0x21c   : > { %2824 = vst.msk [vmem:[#allocation4 + $0x3c] sm:$0xf] %vm2808_vm5, %v2743_v60  ;;  %v2994_v14 = vpop.permute.xlu0 %2993 }
 0x21d   : > { %2517 = vrot.lane.b32.xlu1 %v6045_v44, %s6940_s14  ;;  %3078 = vst.msk [vmem:[#allocation4 + $0x30] sm:$0xf] %vm3065_vm6, %v2994_v14 }
 0x21e   : > { %2772 = vrot.lane.b32.xlu0 %v6076_v38, %s6941_s15 }
 0x21f   : > { %v3000_v20 = vpop.permute.xlu1 %2999 }
 0x220   : > { %3081 = vst.msk [vmem:[#allocation4 + $0x3c] sm:$0xf] %vm3065_vm6, %v3000_v20  ;;  %v2235_v8 = vpop.permute.xlu0 %2234 }
 0x221   : > { %2774 = vrot.lane.b32.xlu1 %v6077_v16, %s6941_s15  ;;  %2313 = vst.msk [vmem:[#allocation4 + $0x48] sm:$0xf] %vm2294_vm3, %v2235_v8 }
 0x222   : > { %2254 = vrot.lane.b32.xlu0 %v6010_v29, %s6939_s13 }
 0x223   : > { %v2233_v5 = vpop.permute.xlu1 %2232 }
 0x224   : > { %2312 = vst.msk [vmem:[#allocation4 + $0x44] sm:$0xf] %vm2294_vm3, %v2233_v5  ;;  %v2492_v19 = vpop.permute.xlu0 %2491  ;;  %v7887_v0 = vld [vmem:[#allocation4 + $0x30] sm:$0xff]  }
 0x225   : > { %2256 = vrot.lane.b32.xlu1 %v6011_v34, %s6939_s13  ;;  %2570 = vst.msk [vmem:[#allocation4 + $0x48] sm:$0xf] %vm2551_vm4, %v2492_v19  ;;  %6493 = vmatmul.mubr.msk.bf16.gmra.mxu0 %vm3209_vm7, %v7887_v0  ;;  %s6944_s13 = smov 48  }
 0x226   : > { %2511 = vrot.lane.b32.xlu0 %v6042_v23, %s6940_s14 }
 0x227   : > { %v2490_v52 = vpop.permute.xlu1 %2489  ;;  %v7893_v15 = vld [vmem:[#allocation4 + $0x38] sm:$0xff]  }
 0x228   : > { %2569 = vst.msk [vmem:[#allocation4 + $0x44] sm:$0xf] %vm2551_vm4, %v2490_v52  ;;  %v2749_v28 = vpop.permute.xlu0 %2748  ;;  %6496 = vmatprep.mubr.msk.bf16.mxu0 %vm3209_vm7, %v7893_v15 }
 0x229   : > { %2513 = vrot.lane.b32.xlu1 %v6043_v39, %s6940_s14  ;;  %2827 = vst.msk [vmem:[#allocation4 + $0x48] sm:$0xf] %vm2808_vm5, %v2749_v28  ;;  %v6846_v28 = vld [vmem:[#allocation4 + $0x10] sm:$0xff]  }
 0x22a   : > { %2768 = vrot.lane.b32.xlu0 %v6074_v26, %s6941_s15 }
 0x22b   : > { %v2747_v24 = vpop.permute.xlu1 %2746 }
 0x22c   : > { %2826 = vst.msk [vmem:[#allocation4 + $0x44] sm:$0xf] %vm2808_vm5, %v2747_v24  ;;  %v3006_v7 = vpop.permute.xlu0 %3005 }
 0x22d   : > { %2770 = vrot.lane.b32.xlu1 %v6075_v57, %s6941_s15  ;;  %3084 = vst.msk [vmem:[#allocation4 + $0x48] sm:$0xf] %vm3065_vm6, %v3006_v7  ;;  %v6848_v7 = vld [vmem:[#allocation4 + $0x18] sm:$0xff]   ;;  %s6945_s15 = smov 64  }
 0x22e   : > { %3025 = vrot.lane.b32.xlu0 %v6106_v4, %s6942_s16  ;;  %v6850_v4 = vld [vmem:[#allocation4 + $0x20] sm:$0xff]  }
 0x22f   : > { %v3004_v45 = vpop.permute.xlu1 %3003 }
 0x230   : > { %3083 = vst.msk [vmem:[#allocation4 + $0x44] sm:$0xf] %vm3065_vm6, %v3004_v45  ;;  %v2231_v18 = vpop.permute.xlu0 %2230  ;;  %v6856_v45 = vld [vmem:[%s8531_s3 + $0x44] sm:$0xff]  }
 0x231   : > { %3027 = vrot.lane.b32.xlu1 %v6107_v1, %s6942_s16  ;;  %2311 = vst.msk [vmem:[#allocation4 + $0x40] sm:$0xf] %vm2294_vm3, %v2231_v18  ;;  %v6857_v18 = vld [vmem:[%s8531_s3 + $0x58] sm:$0xff]  }
 0x232   : > { %3029 = vrot.lane.b32.xlu0 %v6108_v42, %s6942_s16 }
 0x233   : > { %v2237_v12 = vpop.permute.xlu1 %2236 }
 0x234   : > { %2314 = vst.msk [vmem:[#allocation4 + $0x4c] sm:$0xf] %vm2294_vm3, %v2237_v12  ;;  %v2488_v46 = vpop.permute.xlu0 %2487 }
 0x235   : > { %3031 = vrot.lane.b32.xlu1 %v6109_v9, %s6942_s16  ;;  %2568 = vst.msk [vmem:[#allocation4 + $0x40] sm:$0xf] %vm2551_vm4, %v2488_v46  ;;  %v6852_v9 = vld [vmem:[#allocation4 + $0x28] sm:$0xff]  }
 0x237   : > { %v2494_v30 = vpop.permute.xlu1 %2493 }
 0x238   : > { %2571 = vst.msk [vmem:[#allocation4 + $0x4c] sm:$0xf] %vm2551_vm4, %v2494_v30  ;;  %v2745_v25 = vpop.permute.xlu0 %2744 }
 0x239   : > { %2825 = vst.msk [vmem:[#allocation4 + $0x40] sm:$0xf] %vm2808_vm5, %v2745_v25 }
 0x23b   : > { %v2751_v35 = vpop.permute.xlu1 %2750 }
 0x23c   : > { %2828 = vst.msk [vmem:[#allocation4 + $0x4c] sm:$0xf] %vm2808_vm5, %v2751_v35  ;;  %v3002_v32 = vpop.permute.xlu0 %3001  ;;  %v8002_v35 = vld [vmem:[#allocation2 + $0x100] sm:$0xff] }
 0x23d   : > { %3082 = vst.msk [vmem:[#allocation4 + $0x40] sm:$0xf] %vm3065_vm6, %v3002_v32 }
 0x23f   : > { %v3008_v63 = vpop.permute.xlu1 %3007 }
 0x240   : > { %3085 = vst.msk [vmem:[#allocation4 + $0x4c] sm:$0xf] %vm3065_vm6, %v3008_v63  ;;  %v2243_v58 = vpop.permute.xlu0 %2242  ;;  %v6854_v63 = vld [vmem:[#allocation4 + $0x38] sm:$0xff]  }
 0x241   : > { %2317 = vst.msk [vmem:[#allocation4 + $0x58] sm:$0xf] %vm2294_vm3, %v2243_v58 }
 0x243   : > { %v2241_v17 = vpop.permute.xlu1 %2240 }
 0x244   : > { %2316 = vst.msk [vmem:[#allocation4 + $0x54] sm:$0xf] %vm2294_vm3, %v2241_v17  ;;  %v2500_v2 = vpop.permute.xlu0 %2499  ;;  %v7919_v33 = vld [vmem:[#allocation4 + $0x40] sm:$0xff]  }
 0x245   : > { %2574 = vst.msk [vmem:[#allocation4 + $0x58] sm:$0xf] %vm2551_vm4, %v2500_v2  ;;  %6497 = vmatmul.mubr.msk.bf16.gmra.mxu0 %vm3209_vm7, %v7919_v33 }
 0x247   : > { %v2498_v51 = vpop.permute.xlu1 %2497  ;;  %v7924_v37 = vld [vmem:[#allocation4 + $0x48] sm:$0xff]  }
 0x248   : > { %2573 = vst.msk [vmem:[#allocation4 + $0x54] sm:$0xf] %vm2551_vm4, %v2498_v51  ;;  %v2757_v55 = vpop.permute.xlu0 %2756  ;;  %6500 = vmatprep.mubr.msk.bf16.mxu0 %vm3209_vm7, %v7924_v37  ;;  %v6858_v51 = vld [vmem:[#allocation4 + $0x48] sm:$0xff]  }
 0x249   : > { %2831 = vst.msk [vmem:[#allocation4 + $0x58] sm:$0xf] %vm2808_vm5, %v2757_v55 }
 0x24b   : > { %v2755_v41 = vpop.permute.xlu1 %2754 }
 0x24c   : > { %2830 = vst.msk [vmem:[#allocation4 + $0x54] sm:$0xf] %vm2808_vm5, %v2755_v41  ;;  %v3014_v47 = vpop.permute.xlu0 %3013 }
 0x24d   : > { %3088 = vst.msk [vmem:[#allocation4 + $0x58] sm:$0xf] %vm3065_vm6, %v3014_v47 }
 0x24f   : > { %v3012_v36 = vpop.permute.xlu1 %3011 }
 0x250   : > { %3087 = vst.msk [vmem:[#allocation4 + $0x54] sm:$0xf] %vm3065_vm6, %v3012_v36  ;;  %v2239_v27 = vpop.permute.xlu0 %2238 }
 0x251   : > { %2315 = vst.msk [vmem:[#allocation4 + $0x50] sm:$0xf] %vm2294_vm3, %v2239_v27 }
 0x253   : > { %v2245_v21 = vpop.permute.xlu1 %2244 }
 0x254   : > { %2318 = vst.msk [vmem:[#allocation4 + $0x5c] sm:$0xf] %vm2294_vm3, %v2245_v21  ;;  %v2496_v60 = vpop.permute.xlu0 %2495 }
 0x255   : > { %2572 = vst.msk [vmem:[#allocation4 + $0x50] sm:$0xf] %vm2551_vm4, %v2496_v60 }
 0x257   : > { %v2502_v44 = vpop.permute.xlu1 %2501 }
 0x258   : > { %2575 = vst.msk [vmem:[#allocation4 + $0x5c] sm:$0xf] %vm2551_vm4, %v2502_v44  ;;  %v2753_v48 = vpop.permute.xlu0 %2752 }
 0x259   : > { %2829 = vst.msk [vmem:[#allocation4 + $0x50] sm:$0xf] %vm2808_vm5, %v2753_v48  ;;  %v6865_v48 = vld [vmem:[#allocation4 + $0x20] sm:$0xff]  }
 0x25b   : > { %v2759_v14 = vpop.permute.xlu1 %2758 }
 0x25c   : > { %2832 = vst.msk [vmem:[#allocation4 + $0x5c] sm:$0xf] %vm2808_vm5, %v2759_v14  ;;  %v3010_v38 = vpop.permute.xlu0 %3009  ;;  %v6866_v14 = vld [vmem:[#allocation4 + $0x18] sm:$0xff]  }
 0x25d   : > { %3086 = vst.msk [vmem:[#allocation4 + $0x50] sm:$0xf] %vm3065_vm6, %v3010_v38  ;;  %v6868_v38 = vld [vmem:[#allocation4 + $0x20] sm:$0xff]  }
 0x25f   : > { %v3016_v49 = vpop.permute.xlu1 %3015 }
 0x260   : > { %3089 = vst.msk [vmem:[#allocation4 + $0x5c] sm:$0xf] %vm3065_vm6, %v3016_v49  ;;  %v2247_v20 = vpop.permute.xlu0 %2246  ;;  %v6869_v49 = vld [vmem:[#allocation4 + $0x30] sm:$0xff]  }
 0x261   : > { %2319 = vst.msk [vmem:[#allocation4 + $0x60] sm:$0xf] %vm2294_vm3, %v2247_v20  ;;  %v6870_v20 = vld [vmem:[#allocation4 + $0x28] sm:$0xff]  }
 0x263   : > { %v2249_v16 = vpop.permute.xlu1 %2248 }
 0x264   : > { %2320 = vst.msk [vmem:[#allocation4 + $0x64] sm:$0xf] %vm2294_vm3, %v2249_v16  ;;  %v2504_v40 = vpop.permute.xlu0 %2503  ;;  %v7943_v8 = vld [vmem:[#allocation4 + $0x50] sm:$0xff]   ;;  %v6871_v16 = vld [vmem:[#allocation4 + $0x38] sm:$0xff]  }
 0x265   : > { %2576 = vst.msk [vmem:[#allocation4 + $0x60] sm:$0xf] %vm2551_vm4, %v2504_v40  ;;  %6501 = vmatmul.mubr.msk.bf16.gmra.mxu0 %vm3209_vm7, %v7943_v8  ;;  %v6859_v55 = vld [vmem:[#allocation4 + $0x50] sm:$0xff]  }
 0x266   : > { %v6872_v40 = vld [vmem:[#allocation4 + $0x30] sm:$0xff]  }
 0x267   : > { %v2506_v29 = vpop.permute.xlu1 %2505  ;;  %v7948_v50 = vld [vmem:[#allocation4 + $0x58] sm:$0xff]  }
 0x268   : > { %2577 = vst.msk [vmem:[#allocation4 + $0x64] sm:$0xf] %vm2551_vm4, %v2506_v29  ;;  %v2761_v5 = vpop.permute.xlu0 %2760  ;;  %6504 = vmatprep.mubr.msk.bf16.mxu0 %vm3209_vm7, %v7948_v50  ;;  %v6860_v36 = vld [vmem:[#allocation4 + $0x58] sm:$0xff]  }
 0x269   : > { %2833 = vst.msk [vmem:[#allocation4 + $0x60] sm:$0xf] %vm2808_vm5, %v2761_v5  ;;  %v6874_v29 = vld [vmem:[#allocation4 + $0x38] sm:$0xff]   ;;  %v6876_v5 = vld [vmem:[#allocation4 + $0x40] sm:$0xff]  }
 0x26b   : > { %v2763_v34 = vpop.permute.xlu1 %2762 }
 0x26c   : > { %2834 = vst.msk [vmem:[#allocation4 + $0x64] sm:$0xf] %vm2808_vm5, %v2763_v34  ;;  %v3018_v11 = vpop.permute.xlu0 %3017  ;;  %v6877_v34 = vld [vmem:[#allocation4 + $0x50] sm:$0xff]  }
 0x26d   : > { %3090 = vst.msk [vmem:[#allocation4 + $0x60] sm:$0xf] %vm3065_vm6, %v3018_v11  ;;  %v6878_v11 = vld [vmem:[#allocation4 + $0x48] sm:$0xff]  }
 0x26f   : > { %v3020_v19 = vpop.permute.xlu1 %3019 }
 0x270   : > { %3091 = vst.msk [vmem:[#allocation4 + $0x64] sm:$0xf] %vm3065_vm6, %v3020_v19  ;;  %v2713_v23 = vpop.permute.xlu0 %2712  ;;  %v6879_v19 = vld [vmem:[#allocation4 + $0x58] sm:$0xff]  }
 0x271   : > { %2809 = vst.msk [vmem:[#allocation4] sm:$0xf] %vm2808_vm5, %v2713_v23  ;;  %v6880_v23 = vld [vmem:[#allocation4 + $0x50] sm:$0xff]  }
 0x273   : > { %v2715_v3 = vpop.permute.xlu1 %2714 }
 0x274   : > { %2810 = vst.msk [vmem:[#allocation4 + $0x4] sm:$0xf] %vm2808_vm5, %v2715_v3  ;;  %v2970_v52 = vpop.permute.xlu0 %2969 }
 0x275   : > { %3066 = vst.msk [vmem:[#allocation4] sm:$0xf] %vm3065_vm6, %v2970_v52  ;;  %v6882_v52 = vld [vmem:[#allocation4 + $0x58] sm:$0xff]  }
 0x277   : > { %v2972_v39 = vpop.permute.xlu1 %2971  ;;  %v6845_v13 = vld [vmem:[#allocation4 + $0x60] sm:$0xff]  }
 0x278   : > { %3067 = vst.msk [vmem:[#allocation4 + $0x4] sm:$0xf] %vm3065_vm6, %v2972_v39  ;;  %v2251_v26 = vpop.permute.xlu0 %2250  ;;  %6505 = vmatmul.mubr.msk.bf16.gmra.mxu0 %vm3209_vm7, %v6845_v13  ;;  %v6861_v27 = vld [vmem:[#allocation4 + $0x60] sm:$0xff]  }
 0x279   : > { %2321 = vst.msk [vmem:[#allocation4 + $0x68] sm:$0xf] %vm2294_vm3, %v2251_v26  ;;  %6544 = vmatprep.mubr.msk.bf16.mxu0 %vm3209_vm7, %v6846_v28  ;;  %v6881_v3 = vld [vmem:[#allocation4 + $0x60] sm:$0xff]  }
 0x27a   : > { %v6884_v13 = vld [vmem:[#allocation4 + $0x60] sm:$0xff]  }
 0x27b   : > { %v2253_v54 = vpop.permute.xlu1 %2252 }
 0x27c   : > { %2322 = vst.msk [vmem:[#allocation4 + $0x6c] sm:$0xf] %vm2294_vm3, %v2253_v54  ;;  %v2508_v24 = vpop.permute.xlu0 %2507 }
 0x27d   : > { %2578 = vst.msk [vmem:[#allocation4 + $0x68] sm:$0xf] %vm2551_vm4, %v2508_v24 }
 0x27f   : > { %v2510_v57 = vpop.permute.xlu1 %2509  ;;  %v6847_v6 = vld [vmem:[#allocation4] sm:$0xff]  }
 0x280   : > { %2579 = vst.msk [vmem:[#allocation4 + $0x6c] sm:$0xf] %vm2551_vm4, %v2510_v57  ;;  %v2765_v1 = vpop.permute.xlu0 %2764  ;;  %6514 = vmatprep.mubr.msk.bf16.mxu1 %vm3209_vm7, %v6847_v6  ;;  %6545 = vmatmul.mubr.msk.bf16.vlgmr.msra.gmra.mxu0 %vm3209_vm7, %v6848_v7 }
 0x281   : > { %2835 = vst.msk [vmem:[#allocation4 + $0x68] sm:$0xf] %vm2808_vm5, %v2765_v1  ;;  %6515 = vmatmul.mubr.msk.bf16.vlgmr.msra.gmra.mxu1 %vm3209_vm7, %v7747_v43  ;;  %6548 = vmatprep.mubr.msk.bf16.mxu0 %vm3209_vm7, %v6850_v4  ;;  %v6863_v43 = vld [vmem:[%s8531_s3 + $0x50] sm:$0xff]  }
 0x282   : > { %6518 = vmatprep.mubr.msk.bf16.mxu1 %vm3209_vm7, %v7783_v31  ;;  %6569 = vmatpush3.bf16.msra.mxu1 %v3971_v22  ;;  %v6853_v31 = vld [vmem:[#allocation4 + $0x30] sm:$0xff]  }
 0x283   : > { %v2767_v10 = vpop.permute.xlu1 %2766  ;;  %6599 = vmatpush3.bf16.msra.mxu0 %v4267_v56  ;;  %6570 = vmatprep.subr.bf16.mxu1 %v6856_v45 }
 0x284   : > { %2836 = vst.msk [vmem:[#allocation4 + $0x6c] sm:$0xf] %vm2808_vm5, %v2767_v10  ;;  %v3022_v42 = vpop.permute.xlu0 %3021  ;;  %6600 = vmatprep.subr.bf16.mxu0 %v6857_v18 }
 0x285   : > { %3092 = vst.msk [vmem:[#allocation4 + $0x68] sm:$0xf] %vm3065_vm6, %v3022_v42 }
 0x286   : > { %6571 = vmatpush3.bf16.msra.mxu1 %v6856_v45 }
 0x287   : > { %v3024_v12 = vpop.permute.xlu1 %3023  ;;  %6601 = vmatpush3.bf16.msra.mxu0 %v6857_v18  ;;  %6572 = vmatprep.subr.bf16.mxu1 %v6862_v59 }
 0x288   : > { %3093 = vst.msk [vmem:[#allocation4 + $0x6c] sm:$0xf] %vm3065_vm6, %v3024_v12  ;;  %v2259_v46 = vpop.permute.xlu0 %2258  ;;  %6549 = vmatmul.mubr.msk.bf16.gmra.mxu0 %vm3209_vm7, %v6852_v9  ;;  %6602 = vmatprep.subr.bf16.mxu0 %v6863_v43  ;;  %v6943_v9 = vmov 0  }
 0x289   : > { %2325 = vst.msk [vmem:[#allocation4 + $0x78] sm:$0xf] %vm2294_vm3, %v2259_v46  ;;  %6519 = vmatmul.mubr.msk.bf16.gmra.mxu1 %vm3209_vm7, %v7793_v62  ;;  %6552 = vmatprep.mubr.msk.bf16.mxu0 %vm3209_vm7, %v6853_v31  ;;  %v6855_v62 = vld [vmem:[#allocation4 + $0x40] sm:$0xff]  }
 0x28a   : > { %6522 = vmatprep.mubr.msk.bf16.mxu1 %vm3209_vm7, %v7845_v61  ;;  %6573 = vmatpush3.bf16.msra.mxu1 %v6862_v59 }
 0x28b   : > { %v2261_v30 = vpop.permute.xlu1 %2260  ;;  %6603 = vmatpush3.bf16.msra.mxu0 %v6863_v43  ;;  %4529 = vmatprep.subr.bf16.mxu1 %v6943_v9 }
 0x28c   : > { %2326 = vst.msk [vmem:[#allocation4 + $0x7c] sm:$0xf] %vm2294_vm3, %v2261_v30  ;;  %v2516_v25 = vpop.permute.xlu0 %2515  ;;  %6656 = vmatprep.subr.bf16.mxu0 %v8002_v35 }
 0x28d   : > { %2582 = vst.msk [vmem:[#allocation4 + $0x78] sm:$0xf] %vm2551_vm4, %v2516_v25 }
 0x28f   : > { %v2518_v32 = vpop.permute.xlu1 %2517  ;;  %v6864_v44 = vld [vmem:[#allocation4 + $0x68] sm:$0xff]  }
 0x290   : > { %2583 = vst.msk [vmem:[#allocation4 + $0x7c] sm:$0xf] %vm2551_vm4, %v2518_v32  ;;  %v2773_v58 = vpop.permute.xlu0 %2772  ;;  %6553 = vmatmul.mubr.msk.bf16.gmra.mxu0 %vm3209_vm7, %v6854_v63  ;;  %v6883_v39 = vld [vmem:[#allocation4 + $0x68] sm:$0xff]  }
 0x291   : > { %2839 = vst.msk [vmem:[#allocation4 + $0x78] sm:$0xf] %vm2808_vm5, %v2773_v58  ;;  %6523 = vmatmul.mubr.msk.bf16.gmra.mxu1 %vm3209_vm7, %v7853_v53  ;;  %6556 = vmatprep.mubr.msk.bf16.mxu0 %vm3209_vm7, %v6855_v62  ;;  %v6886_v26 = vld [vmem:[#allocation4 + $0x68] sm:$0xff]  }
 0x292   : > { %6526 = vmatprep.mubr.msk.bf16.mxu1 %vm3209_vm7, %v7887_v0 }
 0x293   : > { %v2775_v61 = vpop.permute.xlu1 %2774 }
 0x294   : > { %2840 = vst.msk [vmem:[#allocation4 + $0x7c] sm:$0xf] %vm2808_vm5, %v2775_v61  ;;  %v2255_v17 = vpop.permute.xlu0 %2254 }
 0x295   : > { %2323 = vst.msk [vmem:[#allocation4 + $0x70] sm:$0xf] %vm2294_vm3, %v2255_v17 }
 0x297   : > { %v2257_v2 = vpop.permute.xlu1 %2256 }
 0x298   : > { %2324 = vst.msk [vmem:[#allocation4 + $0x74] sm:$0xf] %vm2294_vm3, %v2257_v2  ;;  %v2512_v41 = vpop.permute.xlu0 %2511  ;;  %6557 = vmatmul.mubr.msk.bf16.gmra.mxu0 %vm3209_vm7, %v6858_v51 }
 0x299   : > { %2580 = vst.msk [vmem:[#allocation4 + $0x70] sm:$0xf] %vm2551_vm4, %v2512_v41  ;;  %6527 = vmatmul.mubr.msk.bf16.gmra.mxu1 %vm3209_vm7, %v7893_v15  ;;  %6560 = vmatprep.mubr.msk.bf16.mxu0 %vm3209_vm7, %v6859_v55 }
 0x29a   : > { %6530 = vmatprep.mubr.msk.bf16.mxu1 %vm3209_vm7, %v7919_v33 }
 0x29b   : > { %v2514_v53 = vpop.permute.xlu1 %2513 }
 0x29c   : > { %2581 = vst.msk [vmem:[#allocation4 + $0x74] sm:$0xf] %vm2551_vm4, %v2514_v53  ;;  %v2769_v0 = vpop.permute.xlu0 %2768 }
 0x29d   : > { %2837 = vst.msk [vmem:[#allocation4 + $0x70] sm:$0xf] %vm2808_vm5, %v2769_v0 }
 0x29f   : > { %v2771_v47 = vpop.permute.xlu1 %2770 }
 0x2a0   : > { %2838 = vst.msk [vmem:[#allocation4 + $0x74] sm:$0xf] %vm2808_vm5, %v2771_v47  ;;  %v3026_v21 = vpop.permute.xlu0 %3025  ;;  %6561 = vmatmul.mubr.msk.bf16.gmra.mxu0 %vm3209_vm7, %v6860_v36 }
 0x2a1   : > { %3094 = vst.msk [vmem:[#allocation4 + $0x70] sm:$0xf] %vm3065_vm6, %v3026_v21  ;;  %6531 = vmatmul.mubr.msk.bf16.gmra.mxu1 %vm3209_vm7, %v7924_v37  ;;  %6564 = vmatprep.mubr.msk.bf16.mxu0 %vm3209_vm7, %v6861_v27  ;;  %v6867_v37 = vld [vmem:[#allocation4 + $0x28] sm:$0xff]   ;;  %v6891_v27 = vld [vmem:[%s8532_s4 + $0x4] ss:$8 sps:$4 sm:$0xff]  }
 0x2a2   : > { %6534 = vmatprep.mubr.msk.bf16.mxu1 %vm3209_vm7, %v7943_v8  ;;  %v6873_v8 = vld [vmem:[#allocation4 + $0x40] sm:$0xff]  }
 0x2a3   : > { %v3028_v15 = vpop.permute.xlu1 %3027 }
 0x2a4   : > { %3095 = vst.msk [vmem:[#allocation4 + $0x74] sm:$0xf] %vm3065_vm6, %v3028_v15  ;;  %v3030_v33 = vpop.permute.xlu0 %3029 }
 0x2a5   : > { %3096 = vst.msk [vmem:[#allocation4 + $0x78] sm:$0xf] %vm3065_vm6, %v3030_v33  ;;  %v6486_v57 = vpop.f32.mrf.mxu0 }
 0x2a7   : > { %v3032_v60 = vpop.permute.xlu1 %3031  ;;  %v3284_v6 = vpop.f32.mrf.mxu0 }
 0x2a8   : > { %3097 = vst.msk [vmem:[#allocation4 + $0x7c] sm:$0xf] %vm3065_vm6, %v3032_v60  ;;  %6565 = vmatmul.mubr.msk.bf16.gmra.mxu0 %vm3209_vm7, %v6864_v44 }
 0x2a9   : > { %6535 = vmatmul.mubr.msk.bf16.gmra.mxu1 %vm3209_vm7, %v7948_v50  ;;  %6604 = vmatprep.mubr.msk.bf16.mxu0 %vm3209_vm7, %v6865_v48  ;;  %v6875_v50 = vld [vmem:[#allocation4 + $0x48] sm:$0xff]   ;;  %v6487_v7 = vpop.f32.mrf.mxu0 }
 0x2aa   : > { %6574 = vmatprep.mubr.msk.bf16.mxu1 %vm3209_vm7, %v6866_v14 }
 0x2ab   : > { %v6885_v28 = vld [vmem:[#allocation4 + $0x70] sm:$0xff]   ;;  %v3287_v4 = vpop.f32.mrf.mxu0 }
 0x2ac   : > { %v6888_v24 = vld [vmem:[#allocation4 + $0x70] sm:$0xff]  }
 0x2af   : > { %v6887_v54 = vld [vmem:[#allocation4 + $0x78] sm:$0xff]  }
 0x2b0   : > { %6605 = vmatmul.mubr.msk.bf16.vlgmr.msra.gmra.mxu0 %vm3209_vm7, %v6867_v37 }
 0x2b1   : > { %6575 = vmatmul.mubr.msk.bf16.vlgmr.msra.gmra.mxu1 %vm3209_vm7, %v6868_v38  ;;  %6608 = vmatprep.mubr.msk.bf16.mxu0 %vm3209_vm7, %v6869_v49 }
 0x2b2   : > { %6578 = vmatprep.mubr.msk.bf16.mxu1 %vm3209_vm7, %v6870_v20 }
 0x2b8   : > { %6609 = vmatmul.mubr.msk.bf16.gmra.mxu0 %vm3209_vm7, %v6871_v16 }
 0x2b9   : > { %6579 = vmatmul.mubr.msk.bf16.gmra.mxu1 %vm3209_vm7, %v6872_v40  ;;  %6612 = vmatprep.mubr.msk.bf16.mxu0 %vm3209_vm7, %v6873_v8 }
 0x2ba   : > { %6582 = vmatprep.mubr.msk.bf16.mxu1 %vm3209_vm7, %v6874_v29 }
 0x2c0   : > { %6613 = vmatmul.mubr.msk.bf16.gmra.mxu0 %vm3209_vm7, %v6875_v50 }
 0x2c1   : > { %6583 = vmatmul.mubr.msk.bf16.gmra.mxu1 %vm3209_vm7, %v6876_v5  ;;  %6616 = vmatprep.mubr.msk.bf16.mxu0 %vm3209_vm7, %v6877_v34 }
 0x2c2   : > { %6586 = vmatprep.mubr.msk.bf16.mxu1 %vm3209_vm7, %v6878_v11 }
 0x2c5   : > { %v6490_v22 = vpop.f32.mrf.mxu0 }
 0x2c7   : > { %v3300_v45 = vpop.f32.mrf.mxu0 }
 0x2c8   : > { %6617 = vmatmul.mubr.msk.bf16.gmra.mxu0 %vm3209_vm7, %v6879_v19 }
 0x2c9   : > { %6587 = vmatmul.mubr.msk.bf16.gmra.mxu1 %vm3209_vm7, %v6880_v23  ;;  %6620 = vmatprep.mubr.msk.bf16.mxu0 %vm3209_vm7, %v6881_v3  ;;  %v6491_v1 = vpop.f32.mrf.mxu0 }
 0x2ca   : > { %6590 = vmatprep.mubr.msk.bf16.mxu1 %vm3209_vm7, %v6882_v52 }
 0x2cb   : > { %v3303_v56 = vpop.f32.mrf.mxu0 }
 0x2d0   : > { %6621 = vmatmul.mubr.msk.bf16.gmra.mxu0 %vm3209_vm7, %v6883_v39 }
 0x2d1   : > { %6591 = vmatmul.mubr.msk.bf16.gmra.mxu1 %vm3209_vm7, %v6884_v13  ;;  %6624 = vmatprep.mubr.msk.bf16.mxu0 %vm3209_vm7, %v6885_v28 }
 0x2d2   : > { %6594 = vmatprep.mubr.msk.bf16.mxu1 %vm3209_vm7, %v6886_v26 }
 0x2d8   : > { %6625 = vmatmul.mubr.msk.bf16.gmra.mxu0 %vm3209_vm7, %v6887_v54 }
 0x2d9   : > { %6595 = vmatmul.mubr.msk.bf16.gmra.mxu1 %vm3209_vm7, %v6888_v24  ;;  %6666 = vmatprep.mubr.msk.bf16.mxu0 %vm6946_vm10, %v8002_v35 }
 0x2da   : > { %5878 = vmatprep.mubr.msk.bf16.mxu1 %vm4519_vm8, %v6891_v27 }
 0x2e5   : > { %v6494_v18 = vpop.f32.mrf.mxu0 }
 0x2e7   : > { %v3316_v10 = vpop.f32.mrf.mxu0 }
 0x2e9   : > { %v8064_v59 = vpop.f32.mrf.mxu0 }
 0x2eb   : > { %v8066_v42 = vpop.f32.mrf.mxu0 }
 0x305   : > { %v8068_v43 = vpop.f32.mrf.mxu0 }
 0x307   : > { %v8070_v12 = vpop.f32.mrf.mxu0 }
 0x309   : > { %v8073_v31 = vpop.f32.mrf.mxu0 }
 0x30b   : > { %v8075_v46 = vpop.f32.mrf.mxu0 }
 0x325   : > { %v8077_v30 = vpop.f32.mrf.mxu0 }
 0x327   : > { %v8079_v25 = vpop.f32.mrf.mxu0 }
 0x329   : > { %v8081_v32 = vpop.f32.mrf.mxu0 }
 0x32b   : > { %v8083_v63 = vpop.f32.mrf.mxu0 }
 0x338   : > { %v8085_v62 = vpop.f32.mrf.mxu0 }
 0x33a   : > { %v8087_v58 = vpop.f32.mrf.mxu0 }
 0x33c   : > { %v8089_v61 = vpop.f32.mrf.mxu0 }
 0x33e   : > { %v8091_v17 = vpop.f32.mrf.mxu0 }
 0x340   : > { %v6546_v2 = vpop.f32.mrf.mxu0 }
 0x341   : > { %v6516_v51 = vpop.f32.mrf.mxu1 }
 0x342   : > { %v3448_v55 = vadd.f32 %v6516_v51, %v6486_v57  ;;  %v3711_v41 = vpop.f32.mrf.mxu0 }
 0x343   : > { %v3439_v53 = vpop.f32.mrf.mxu1 }
 0x344   : > { %v3440_v0 = vadd.f32 %v3439_v53, %v3284_v6  ;;  %v6547_v47 = vpop.f32.mrf.mxu0  ;;  %v8093_v36 = vadd.f32 %v6546_v2, %v3448_v55 }
 0x345   : > { %v6517_v21 = vpop.f32.mrf.mxu1 }
 0x346   : > { %v3451_v15 = vadd.f32 %v6517_v21, %v6487_v7  ;;  %v3714_v33 = vpop.f32.mrf.mxu0  ;;  %v8098_v60 = vadd.f32 %v3711_v41, %v3440_v0 }
 0x347   : > { %v3442_v44 = vpop.f32.mrf.mxu1 }
 0x348   : > { %v3443_v48 = vadd.f32 %v3442_v44, %v3287_v4  ;;  %v6550_v14 = vpop.f32.mrf.mxu0  ;;  %v8101_v37 = vadd.f32 %v6547_v47, %v3451_v15 }
 0x349   : > { %v6520_v38 = vpop.f32.mrf.mxu1 }
 0x34a   : > { %v3464_v49 = vadd.f32 %v6520_v38, %v6490_v22  ;;  %v3727_v20 = vpop.f32.mrf.mxu0  ;;  %v8103_v16 = vadd.f32 %v3714_v33, %v3443_v48 }
 0x34b   : > { %v3455_v40 = vpop.f32.mrf.mxu1 }
 0x34c   : > { %v3456_v8 = vadd.f32 %v3455_v40, %v3300_v45  ;;  %v6551_v29 = vpop.f32.mrf.mxu0  ;;  %v8105_v50 = vadd.f32 %v6550_v14, %v3464_v49 }
 0x34d   : > { %v6521_v5 = vpop.f32.mrf.mxu1 }
 0x34e   : > { %v3467_v34 = vadd.f32 %v6521_v5, %v6491_v1  ;;  %v3730_v11 = vpop.f32.mrf.mxu0  ;;  %v8107_v19 = vadd.f32 %v3727_v20, %v3456_v8 }
 0x34f   : > { %v3458_v23 = vpop.f32.mrf.mxu1 }
 0x350   : > { %v3459_v3 = vadd.f32 %v3458_v23, %v3303_v56  ;;  %v6554_v52 = vpop.f32.mrf.mxu0  ;;  %v8109_v39 = vadd.f32 %v6551_v29, %v3467_v34 }
 0x351   : > { %v6524_v13 = vpop.f32.mrf.mxu1 }
 0x352   : > { %v3480_v28 = vadd.f32 %v6524_v13, %v6494_v18  ;;  %v3743_v26 = vpop.f32.mrf.mxu0  ;;  %v8111_v54 = vadd.f32 %v3730_v11, %v3459_v3 }
 0x353   : > { %v3471_v24 = vpop.f32.mrf.mxu1 }
 0x354   : > { %v3472_v57 = vadd.f32 %v3471_v24, %v3316_v10  ;;  %v8113_v6 = vpop.f32.mrf.mxu0  ;;  %v8115_v7 = vadd.f32 %v6554_v52, %v3480_v28 }
 0x355   : > { %v8117_v4 = vpop.f32.mrf.mxu1 }
 0x356   : > { %v8119_v22 = vpop.f32.mrf.mxu0  ;;  %v8121_v45 = vadd.f32 %v3743_v26, %v3472_v57 }
 0x357   : > { %v8123_v1 = vpop.f32.mrf.mxu1 }
 0x358   : > { %v8125_v56 = vpop.f32.mrf.mxu0 }
 0x359   : > { %v8127_v18 = vpop.f32.mrf.mxu1 }
 0x35a   : > { %v8129_v2 = vpop.f32.mrf.mxu0 }
 0x35b   : > { %v8131_v51 = vpop.f32.mrf.mxu1 }
 0x35c   : > { %v8133_v10 = vpop.f32.mrf.mxu0 }
 0x35d   : > { %v8135_v55 = vpop.f32.mrf.mxu1 }
 0x35e   : > { %v8137_v41 = vpop.f32.mrf.mxu0 }
 0x35f   : > { %v8139_v53 = vpop.f32.mrf.mxu1 }
 0x360   : > { %v6562_v0 = vpop.f32.mrf.mxu0 }
 0x361   : > { %v6532_v47 = vpop.f32.mrf.mxu1 }
 0x362   : > { %v3512_v27 = vadd.f32 %v6532_v47, %v8077_v30  ;;  %v3775_v21 = vpop.f32.mrf.mxu0 }
 0x363   : > { %v3503_v15 = vpop.f32.mrf.mxu1 }
 0x364   : > { %v3504_v33 = vadd.f32 %v3503_v15, %v8079_v25  ;;  %v6563_v44 = vpop.f32.mrf.mxu0  ;;  %v8143_v48 = vadd.f32 %v6562_v0, %v3512_v27  ;;  %v8172_v15 = vld [vmem:[%s8530_s2 + $0x1] ss:$0 sm:$0xff] }
 0x365   : > { %v6533_v14 = vpop.f32.mrf.mxu1 }
 0x366   : > { %v3515_v38 = vadd.f32 %v6533_v14, %v8081_v32  ;;  %v3778_v49 = vpop.f32.mrf.mxu0  ;;  %v8146_v20 = vadd.f32 %v3775_v21, %v3504_v33 }
 0x367   : > { %v3506_v40 = vpop.f32.mrf.mxu1 }
 0x368   : > { %v3507_v8 = vadd.f32 %v3506_v40, %v8083_v63  ;;  %v6566_v29 = vpop.f32.mrf.mxu0  ;;  %v8149_v5 = vadd.f32 %v6563_v44, %v3515_v38 }
 0x369   : > { %v6536_v30 = vpop.f32.mrf.mxu1 }
 0x36a   : > { %v3528_v34 = vadd.f32 %v6536_v30, %v8085_v62  ;;  %v3791_v11 = vpop.f32.mrf.mxu0  ;;  %v8152_v25 = vadd.f32 %v3778_v49, %v3507_v8 }
 0x36b   : > { %v3519_v23 = vpop.f32.mrf.mxu1 }
 0x36c   : > { %v3520_v3 = vadd.f32 %v3519_v23, %v8087_v58  ;;  %v8155_v52 = vpop.f32.mrf.mxu0  ;;  %v8157_v32 = vadd.f32 %v6566_v29, %v3528_v34 }
 0x36d   : > { %v8159_v13 = vpop.f32.mrf.mxu1 }
 0x36e   : > { %v8161_v28 = vpop.f32.mrf.mxu0  ;;  %v8163_v63 = vadd.f32 %v3791_v11, %v3520_v3 }
 0x36f   : > { %v8165_v26 = vpop.f32.mrf.mxu1 }
 0x370   : > { %v6606_v24 = vpop.f32.mrf.mxu0 }
 0x371   : > { %v6576_v62 = vpop.f32.mrf.mxu1 }
 0x372   : > { %v4104_v57 = vadd.f32 %v6576_v62, %v8093_v36  ;;  %v4303_v0 = vpop.f32.mrf.mxu0 }
 0x373   : > { %v4007_v47 = vpop.f32.mrf.mxu1 }
 0x374   : > { %v4400_v27 = vadd.f32 %v6606_v24, %v4104_v57  ;;  %v4102_v58 = vadd.f32 %v4007_v47, %v8098_v60  ;;  %v6607_v21 = vpop.f32.mrf.mxu0 }
 0x375   : > { %v6577_v33 = vpop.f32.mrf.mxu1 }
 0x376   : > { %v4398_v44 = vadd.f32 %v4303_v0, %v4102_v58  ;;  %v4105_v14 = vadd.f32 %v6577_v33, %v8101_v37  ;;  %v4306_v38 = vpop.f32.mrf.mxu0  ;;  %v4428_v40 = vadd.f32 %v8172_v15, %v4400_v27 }
 0x377   : > { %v4010_v49 = vpop.f32.mrf.mxu1 }
 0x378   : > { %v4401_v36 = vadd.f32 %v6607_v21, %v4105_v14  ;;  %v4103_v8 = vadd.f32 %v4010_v49, %v8103_v16  ;;  %v6610_v29 = vpop.f32.mrf.mxu0  ;;  %v4426_v60 = vadd.f32 %v8172_v15, %v4398_v44  ;;  %v4452_v62 = vmax.f32 %v4428_v40, 0.0 }
 0x379   : > { %v6580_v30 = vpop.f32.mrf.mxu1 }
 0x37a   : > { %v4429_v34 = vadd.f32 %v8172_v15, %v4401_v36  ;;  %v4399_v11 = vadd.f32 %v4306_v38, %v4103_v8  ;;  %v4108_v23 = vadd.f32 %v6580_v30, %v8105_v50  ;;  %v4319_v3 = vpop.f32.mrf.mxu0  ;;  %v4450_v58 = vmax.f32 %v4426_v60, 0.0 }
 0x37b   : > { %v4023_v24 = vpop.f32.mrf.mxu1 }
 0x37c   : > { %v4453_v37 = vmax.f32 %v4429_v34, 0.0  ;;  %v4427_v57 = vadd.f32 %v8172_v15, %v4399_v11  ;;  %v4106_v0 = vadd.f32 %v4023_v24, %v8107_v19  ;;  %v6611_v47 = vpop.f32.mrf.mxu0  ;;  %v4404_v27 = vadd.f32 %v6610_v29, %v4108_v23 }
 0x37d   : > { %v6581_v16 = vpop.f32.mrf.mxu1 }
 0x37e   : > { %v8182_v21 = vpack.c.bf16 %v4453_v37, %v4452_v62  ;;  %v4451_v33 = vmax.f32 %v4427_v57, 0.0  ;;  %v4402_v44 = vadd.f32 %v4319_v3, %v4106_v0  ;;  %v4322_v14 = vpop.f32.mrf.mxu0  ;;  %v4109_v38 = vadd.f32 %v6581_v16, %v8109_v39 }
 0x37f   : > { %v4026_v50 = vpop.f32.mrf.mxu1  ;;  %v4432_v8 = vadd.f32 %v8172_v15, %v4404_v27  ;;  %v3496_v39 = vadd.f32 %v8127_v18, %v8068_v43  ;;  %v3488_v57 = vadd.f32 %v8131_v51, %v8070_v12  ;;  %v3483_v16 = vadd.f32 %v8117_v4, %v8064_v59 }
 0x380   : > { %v8185_v49 = vpack.c.bf16 %v4451_v33, %v4450_v58  ;;  %v4107_v40 = vadd.f32 %v4026_v50, %v8111_v54  ;;  %v6614_v36 = vpop.f32.mrf.mxu0  ;;  %v4405_v19 = vadd.f32 %v6611_v47, %v4109_v38  ;;  %v4430_v29 = vadd.f32 %v8172_v15, %v4402_v44 }
 0x381   : > { %v6584_v30 = vpop.f32.mrf.mxu1  ;;  %v4456_v54 = vmax.f32 %v4432_v8, 0.0  ;;  %v3499_v43 = vadd.f32 %v8135_v55, %v8073_v31  ;;  %v3491_v12 = vadd.f32 %v8139_v53, %v8075_v46  ;;  %v3475_v59 = vadd.f32 %v8123_v1, %v8066_v42 }
 0x382   : > { %v4403_v60 = vadd.f32 %v4322_v14, %v4107_v40  ;;  %v8190_v34 = vpop.f32.mrf.mxu0  ;;  %v4433_v11 = vadd.f32 %v8172_v15, %v4405_v19  ;;  %v4454_v0 = vmax.f32 %v4430_v29, 0.0  ;;  %v3820_v14 = vadd.f32 %v8125_v56, %v3496_v39 }
 0x383   : > { %v4039_v23 = vpop.f32.mrf.mxu1  ;;  %v3818_v40 = vadd.f32 %v8129_v2, %v3488_v57  ;;  %v3817_v4 = vadd.f32 %v8113_v6, %v3483_v16  ;;  %v3821_v29 = vadd.f32 %v8133_v10, %v3499_v43  ;;  %v3819_v46 = vadd.f32 %v8137_v41, %v3491_v12 }
 0x384   : > { %v4431_v3 = vadd.f32 %v8172_v15, %v4403_v60  ;;  %v6615_v24 = vpop.f32.mrf.mxu0  ;;  %v4457_v62 = vmax.f32 %v4433_v11, 0.0  ;;  %v4112_v53 = vadd.f32 %v6584_v30, %v8115_v7  ;;  %v3815_v2 = vadd.f32 %v8119_v22, %v3475_v59 }
 0x385   : > { %v6585_v37 = vpop.f32.mrf.mxu1  ;;  %v4110_v7 = vadd.f32 %v4039_v23, %v8121_v45  ;;  %v3531_v45 = vadd.f32 %v8159_v13, %v8089_v61 }
 0x386   : > { %v4455_v47 = vmax.f32 %v4431_v3, 0.0  ;;  %v4338_v27 = vpop.f32.mrf.mxu0  ;;  %v8200_v58 = vpack.c.bf16 %v4457_v62, %v4456_v54  ;;  %v4113_v56 = vadd.f32 %v6585_v37, %v3817_v4  ;;  %v4408_v43 = vadd.f32 %v6614_v36, %v4112_v53 }
 0x387   : > { %v4042_v33 = vpop.f32.mrf.mxu1 }
 0x388   : > { %v8204_v18 = vpack.c.bf16 %v4455_v47, %v4454_v0  ;;  %v6618_v44 = vpop.f32.mrf.mxu0  ;;  %v4409_v57 = vadd.f32 %v6615_v24, %v4113_v56  ;;  %v4111_v0 = vadd.f32 %v4042_v33, %v3815_v2  ;;  %v4436_v23 = vadd.f32 %v8172_v15, %v4408_v43 }
 0x389   : > { %v6588_v38 = vpop.f32.mrf.mxu1 }
 0x38a   : > { %v4116_v51 = vadd.f32 %v6588_v38, %v3820_v14  ;;  %v4351_v50 = vpop.f32.mrf.mxu0  ;;  %v4437_v12 = vadd.f32 %v8172_v15, %v4409_v57  ;;  %v4460_v53 = vmax.f32 %v4436_v23, 0.0 }
 0x38b   : > { %v4055_v8 = vpop.f32.mrf.mxu1 }
 0x38c   : > { %v4412_v31 = vadd.f32 %v6618_v44, %v4116_v51  ;;  %v4114_v55 = vadd.f32 %v4055_v8, %v3818_v40  ;;  %v6619_v19 = vpop.f32.mrf.mxu0  ;;  %v4407_v51 = vadd.f32 %v4338_v27, %v4111_v0 }
 0x38d   : > { %v6589_v60 = vpop.f32.mrf.mxu1 }
 0x38e   : > { %v4117_v11 = vadd.f32 %v6589_v60, %v3821_v29  ;;  %v4354_v39 = vpop.f32.mrf.mxu0  ;;  %v4440_v42 = vadd.f32 %v8172_v15, %v4412_v31  ;;  %v4410_v6 = vadd.f32 %v4351_v50, %v4114_v55  ;;  %v4461_v29 = vmax.f32 %v4437_v12, 0.0 }
 0x38f   : > { %v4058_v1 = vpop.f32.mrf.mxu1  ;;  %v4435_v56 = vadd.f32 %v8172_v15, %v4407_v51 }
 0x390   : > { %v4413_v3 = vadd.f32 %v6619_v19, %v4117_v11  ;;  %v4115_v54 = vadd.f32 %v4058_v1, %v3819_v46  ;;  %v6622_v62 = vpop.f32.mrf.mxu0  ;;  %v4464_v22 = vmax.f32 %v4440_v42, 0.0  ;;  %v4438_v44 = vadd.f32 %v8172_v15, %v4410_v6 }
 0x391   : > { %v6592_v10 = vpop.f32.mrf.mxu1  ;;  %v3829_v1 = vadd.f32 %v8155_v52, %v3531_v45  ;;  %v4485_v57 = vpack.c.bf16 %v4461_v29, %v4460_v53 }
 0x392   : > { %v4441_v37 = vadd.f32 %v8172_v15, %v4413_v3  ;;  %v4411_v47 = vadd.f32 %v4354_v39, %v4115_v54  ;;  %v4120_v16 = vadd.f32 %v6592_v10, %v8143_v48  ;;  %v4367_v41 = vpop.f32.mrf.mxu0  ;;  %v4462_v55 = vmax.f32 %v4438_v44, 0.0 }
 0x393   : > { %v4071_v30 = vpop.f32.mrf.mxu1 }
 0x394   : > { %v4465_v14 = vmax.f32 %v4441_v37, 0.0  ;;  %v4439_v38 = vadd.f32 %v8172_v15, %v4411_v47  ;;  %v4118_v24 = vadd.f32 %v4071_v30, %v8146_v20  ;;  %v6623_v33 = vpop.f32.mrf.mxu0  ;;  %v4416_v50 = vadd.f32 %v6622_v62, %v4120_v16 }
 0x395   : > { %v6593_v40 = vpop.f32.mrf.mxu1  ;;  %v4406_v20 = vadd.f32 %v8190_v34, %v4110_v7 }
 0x396   : > { %v4487_v48 = vpack.c.bf16 %v4465_v14, %v4464_v22  ;;  %v4463_v59 = vmax.f32 %v4439_v38, 0.0  ;;  %v4414_v36 = vadd.f32 %v4367_v41, %v4118_v24  ;;  %v4370_v4 = vpop.f32.mrf.mxu0  ;;  %v4121_v8 = vadd.f32 %v6593_v40, %v8149_v5 }
 0x397   : > { %v4074_v31 = vpop.f32.mrf.mxu1  ;;  %v4444_v60 = vadd.f32 %v8172_v15, %v4416_v50  ;;  %v4434_v6 = vadd.f32 %v8172_v15, %v4406_v20 }
 0x398   : > { %v4119_v19 = vadd.f32 %v4074_v31, %v8152_v25  ;;  %v6626_v27 = vpop.f32.mrf.mxu0  ;;  %4530 = vmatpush1.bf16.msra.mxu1 %v4487_v48  ;;  %v4417_v11 = vadd.f32 %v6623_v33, %v4121_v8  ;;  %v4486_v61 = vpack.c.bf16 %v4463_v59, %v4462_v55  ;;  %v4442_v5 = vadd.f32 %v8172_v15, %v4414_v36  ;;  %v6898_v55 = vld [vmem:[%s8533_s5 + $0x70] sm:$0xff]  }
 0x399   : > { %v6596_v39 = vpop.f32.mrf.mxu1  ;;  %4531 = vmatprep.subr.bf16.mxu1 %v6943_v9  ;;  %v3523_v25 = vadd.f32 %v8165_v26, %v8091_v17  ;;  %v4459_v17 = vmax.f32 %v4435_v56, 0.0  ;;  %v4458_v22 = vmax.f32 %v4434_v6, 0.0  ;;  %6657 = vmatpush3.bf16.msra.mxu0 %v6898_v55 }
 0x39a   : > { %v4415_v13 = vadd.f32 %v4370_v4, %v4119_v19  ;;  %v4124_v34 = vadd.f32 %v6596_v39, %v8157_v32  ;;  %v4383_v46 = vpop.f32.mrf.mxu0  ;;  %v4445_v2 = vadd.f32 %v8172_v15, %v4417_v11  ;;  %v4468_v32 = vmax.f32 %v4444_v60, 0.0  ;;  %v6899_v19 = vld [vmem:[%s8533_s5 + $0x48] sm:$0xff]   ;;  %6658 = vmatprep.subr.bf16.mxu0 %v8002_v35 }
 0x39b   : > { %v4087_v42 = vpop.f32.mrf.mxu1  ;;  %v4466_v26 = vmax.f32 %v4442_v5, 0.0  ;;  %v3827_v43 = vadd.f32 %v8161_v28, %v3523_v25  ;;  %v4484_v38 = vpack.c.bf16 %v4459_v17, %v4458_v22  ;;  %v6901_v5 = vld [vmem:[%s8533_s5 + $0x68] sm:$0xff]  }
 0x39c   : > { %v4443_v3 = vadd.f32 %v8172_v15, %v4415_v13  ;;  %v4420_v54 = vadd.f32 %v6626_v27, %v4124_v34  ;;  %v4122_v62 = vadd.f32 %v4087_v42, %v8163_v63  ;;  %4532 = vmatpush1.bf16.msra.mxu1 %v4486_v61  ;;  %v4469_v0 = vmax.f32 %v4445_v2, 0.0  ;;  %v6627_v47 = vpop.f32.mrf.mxu0  ;;  %v6900_v61 = vld [vmem:[%s8533_s5 + $0x40] sm:$0xff]   ;;  %v6902_v2 = vld [vmem:[%s8533_s5 + $0x38] sm:$0xff]  }
 0x39d   : > { %v6597_v10 = vpop.f32.mrf.mxu1  ;;  %4533 = vmatprep.subr.bf16.mxu1 %v6943_v9  ;;  %6659 = vmatpush3.bf16.msra.mxu0 %v6901_v5 }
 0x39e   : > { %v4467_v37 = vmax.f32 %v4443_v3, 0.0  ;;  %v4125_v16 = vadd.f32 %v6597_v10, %v3829_v1  ;;  %v4489_v52 = vpack.c.bf16 %v4469_v0, %v4468_v32  ;;  %v4418_v41 = vadd.f32 %v4383_v46, %v4122_v62  ;;  %v4386_v33 = vpop.f32.mrf.mxu0  ;;  %6660 = vmatprep.subr.bf16.mxu0 %v8002_v35  ;;  %v6903_v10 = vld [vmem:[%s8533_s5 + $0x30] sm:$0xff]  }
 0x39f   : > { %v4090_v7 = vpop.f32.mrf.mxu1  ;;  %v4448_v63 = vadd.f32 %v8172_v15, %v4420_v54 }
 0x3a0   : > { %v4488_v30 = vpack.c.bf16 %v4467_v37, %v4466_v26  ;;  %v4421_v44 = vadd.f32 %v6627_v47, %v4125_v16  ;;  %4534 = vmatpush1.bf16.msra.mxu1 %v4485_v57  ;;  %v4123_v14 = vadd.f32 %v4090_v7, %v3827_v43  ;;  %v4446_v12 = vadd.f32 %v8172_v15, %v4418_v41  ;;  %v6904_v16 = vld [vmem:[%s8533_s5 + $0x60] sm:$0xff]  }
 0x3a1   : > { %4535 = vmatprep.subr.bf16.mxu1 %v6943_v9  ;;  %v4472_v50 = vmax.f32 %v4448_v63, 0.0  ;;  %6661 = vmatpush3.bf16.msra.mxu0 %v6904_v16 }
 0x3a2   : > { %v4449_v24 = vadd.f32 %v8172_v15, %v4421_v44  ;;  %v4419_v51 = vadd.f32 %v4386_v33, %v4123_v14  ;;  %v4470_v59 = vmax.f32 %v4446_v12, 0.0  ;;  %6662 = vmatprep.subr.bf16.mxu0 %v8002_v35  ;;  %v6909_v33 = vld [vmem:[%s8533_s5 + $0x58] sm:$0xff]  }
 0x3a4   : > { %v4473_v40 = vmax.f32 %v4449_v24, 0.0  ;;  %4536 = vmatpush1.bf16.msra.mxu1 %v4484_v38  ;;  %v4447_v28 = vadd.f32 %v8172_v15, %v4419_v51  ;;  %v6889_v15 = vld [vmem:[%s8532_s4] ss:$8 sps:$4 sm:$0xff]  }
 0x3a5   : > { %4537 = vmatprep.subr.bf16.mxu1 %v6943_v9  ;;  %6663 = vmatpush3.bf16.msra.mxu0 %v6909_v33  ;;  %v6916_v33 = vld [vmem:[%s8533_s5 + $0x98] sm:$0xff]  }
 0x3a6   : > { %v4491_v48 = vpack.c.bf16 %v4473_v40, %v4472_v50  ;;  %v4471_v36 = vmax.f32 %v4447_v28, 0.0  ;;  %v8336_v40 = vld [vmem:[#allocation2 + $0x100] sm:$0xff] }
 0x3a7   : > { %6664 = vmatprep.subr.bf16.mxu0 %v8336_v40 }
 0x3a8   : > { %4538 = vmatpush1.bf16.msra.mxu1 %v8200_v58  ;;  %v4490_v4 = vpack.c.bf16 %v4471_v36, %v4470_v59  ;;  %v6897_v58 = vld [vmem:[%s8532_s4 + $0x20] ss:$8 sps:$4 sm:$0xff]  }
 0x3a9   : > { %4539 = vmatprep.subr.bf16.mxu1 %v6943_v9 }
 0x3ac   : > { %4540 = vmatpush1.bf16.msra.mxu1 %v8204_v18 }
 0x3ad   : > { %4541 = vmatprep.subr.bf16.mxu1 %v6943_v9 }
 0x3b0   : > { %4542 = vmatpush1.bf16.msra.mxu1 %v8182_v21  ;;  %v6892_v21 = vld [vmem:[%s8532_s4 + $0x14] ss:$8 sps:$4 sm:$0xff]  }
 0x3b1   : > { %4543 = vmatprep.subr.bf16.mxu1 %v6943_v9 }
 0x3b4   : > { %4544 = vmatpush1.bf16.msra.mxu1 %v8185_v49  ;;  %v6894_v49 = vld [vmem:[%s8532_s4 + $0x10] ss:$8 sps:$4 sm:$0xff]  }
 0x3b5   : > { %4553 = vmatprep.subr.bf16.mxu1 %v6943_v9 }
 0x3b8   : > { %4554 = vmatpush2.bf16.msra.mxu1 %v4491_v48 }
 0x3b9   : > { %4555 = vmatprep.subr.bf16.mxu1 %v6943_v9 }
 0x3bc   : > { %4556 = vmatpush2.bf16.msra.mxu1 %v4490_v4  ;;  %v6912_v4 = vld [vmem:[%s8533_s5 + $0x50] sm:$0xff]  }
 0x3bd   : > { %4557 = vmatprep.subr.bf16.mxu1 %v6943_v9  ;;  %6665 = vmatpush3.bf16.msra.mxu0 %v6912_v4 }
 0x3be   : > { %6684 = vmatprep.subr.bf16.mxu0 %v8336_v40 }
 0x3c0   : > { %4558 = vmatpush2.bf16.msra.mxu1 %v4489_v52  ;;  %v6905_v52 = vld [vmem:[%s8533_s5 + $0x28] sm:$0xff]  }
 0x3c1   : > { %4559 = vmatprep.subr.bf16.mxu1 %v6943_v9  ;;  %v6895_v9 = vld [vmem:[%s8532_s4 + $0x24] ss:$8 sps:$4 sm:$0xff]  }
 0x3c4   : > { %4560 = vmatpush2.bf16.msra.mxu1 %v4488_v30 }
 0x3c5   : > { %6628 = vmatprep.subr.bf16.mxu1 %v8002_v35 }
 0x3c7   : > { %4562 = vmatmul.mubr.bf16.vlgmr.msra.gmra.mxu1 %v6889_v15 }
 0x3c8   : > { %5879 = vmatprep.mubr.msk.bf16.mxu1 %vm4519_vm8, %v6892_v21  ;;  %6629 = vmatpush3.bf16.msra.mxu1 %v6899_v19 }
 0x3c9   : > { %6630 = vmatprep.subr.bf16.mxu1 %v8002_v35 }
 0x3cc   : > { %6631 = vmatpush3.bf16.msra.mxu1 %v6900_v61 }
 0x3cd   : > { %6632 = vmatprep.subr.bf16.mxu1 %v8002_v35 }
 0x3cf   : > { %4570 = vmatmul.mubr.bf16.gmra.mxu1 %v6894_v49 }
 0x3d0   : > { %5880 = vmatprep.mubr.msk.bf16.mxu1 %vm4519_vm8, %v6895_v9  ;;  %6633 = vmatpush3.bf16.msra.mxu1 %v6902_v2 }
 0x3d1   : > { %6634 = vmatprep.subr.bf16.mxu1 %v8002_v35 }
 0x3d4   : > { %6635 = vmatpush3.bf16.msra.mxu1 %v6903_v10 }
 0x3d5   : > { %6636 = vmatprep.subr.bf16.mxu1 %v8002_v35 }
 0x3d7   : > { %4578 = vmatmul.mubr.bf16.gmra.mxu1 %v6897_v58 }
 0x3d8   : > { %6637 = vmatpush3.bf16.msra.mxu1 %v6905_v52  ;;  %6638 = vmatprep.mubr.msk.bf16.mxu1 %vm6946_vm10, %v8002_v35 }
 0x3d9   : > { %6642 = vmatprep.subr.bf16.mxu1 %v8002_v35 }
 0x487   : > { %v4563_v18 = vpop.f32.mrf.mxu1 }
 0x488   : > { %4586 = vst [vmem:[#allocation3] sm:$0xff] %v4563_v18  ;;  %v6110_v45 = vpack.c.bf16 %v4563_v18, %v4563_v18 }
 0x489   : > { %v4565_v23 = vpop.f32.mrf.mxu1 }
 0x48a   : > { %4625 = vst.msk [vmem:[#allocation5] sm:$0xf] %vm4624_vm9, %v6110_v45 }
 0x48b   : > { %v4566_v8 = vpop.f32.mrf.mxu1 }
 0x48c   : > { %4587 = vst [vmem:[#allocation3 + $0x8] sm:$0xff] %v4566_v8  ;;  %v6111_v31 = vpack.c.bf16 %v4566_v8, %v4566_v8 }
 0x48d   : > { %v4568_v20 = vpop.f32.mrf.mxu1 }
 0x48e   : > { %4626 = vst.msk [vmem:[#allocation5 + $0x4] sm:$0xf] %vm4624_vm9, %v6111_v31 }
 0x48f   : > { %v4571_v27 = vpop.f32.mrf.mxu1 }
 0x490   : > { %4588 = vst [vmem:[#allocation3 + $0x10] sm:$0xff] %v4571_v27  ;;  %v6112_v29 = vpack.c.bf16 %v4571_v27, %v4571_v27 }
 0x491   : > { %v4573_v56 = vpop.f32.mrf.mxu1 }
 0x492   : > { %4627 = vst.msk [vmem:[#allocation5 + $0x8] sm:$0xf] %vm4624_vm9, %v6112_v29 }
 0x493   : > { %v4574_v60 = vpop.f32.mrf.mxu1  ;;  %v4631_v7 = vld [vmem:[#allocation3 + $0x1] sm:$0xff] }
 0x494   : > { %4589 = vst [vmem:[#allocation3 + $0x18] sm:$0xff] %v4574_v60  ;;  %v6113_v11 = vpack.c.bf16 %v4574_v60, %v4574_v60  ;;  %v6116_v30 = vpack.c.bf16 %v4631_v7, %v4631_v7  ;;  %v4680_v44 = vld [vmem:[#allocation3 + $0x2] sm:$0xff]  ;;  %v6915_v7 = vld [vmem:[%s8533_s5 + $0xc0] sm:$0xff]  }
 0x495   : > { %v4576_v39 = vpop.f32.mrf.mxu1  ;;  %v6122_v38 = vpack.c.bf16 %v4680_v44, %v4680_v44  ;;  %v4729_v12 = vld [vmem:[#allocation3 + $0x3] sm:$0xff] }
 0x496   : > { %4628 = vst.msk [vmem:[#allocation5 + $0xc] sm:$0xf] %vm4624_vm9, %v6113_v11  ;;  %v6128_v35 = vpack.c.bf16 %v4729_v12, %v4729_v12  ;;  %v4778_v28 = vld [vmem:[#allocation3 + $0x4] sm:$0xff] }
 0x497   : > { %v4579_v13 = vpop.f32.mrf.mxu1  ;;  %v4632_v34 = vld [vmem:[#allocation3 + $0x9] sm:$0xff]  ;;  %v6134_v59 = vpack.c.bf16 %v4778_v28, %v4778_v28  ;;  %v6921_v28 = vld [vmem:[%s8533_s5 + $0xa8] sm:$0xff]  }
 0x498   : > { %4590 = vst [vmem:[#allocation3 + $0x20] sm:$0xff] %v4579_v13  ;;  %v6117_v46 = vpack.c.bf16 %v4632_v34, %v4632_v34  ;;  %v4681_v25 = vld [vmem:[#allocation3 + $0xa] sm:$0xff]  ;;  %v6114_v42 = vpack.c.bf16 %v4579_v13, %v4579_v13 }
 0x499   : > { %v4581_v53 = vpop.f32.mrf.mxu1  ;;  %v6123_v3 = vpack.c.bf16 %v4681_v25, %v4681_v25  ;;  %v4730_v57 = vld [vmem:[#allocation3 + $0xb] sm:$0xff] }
 0x49a   : > { %4657 = vrot.lane.b32.xlu0 %v6117_v46, %s6940_s14  ;;  %4629 = vst.msk [vmem:[#allocation5 + $0x10] sm:$0xf] %vm4624_vm9, %v6114_v42  ;;  %v6129_v17 = vpack.c.bf16 %v4730_v57, %v4730_v57  ;;  %v4779_v37 = vld [vmem:[#allocation3 + $0xc] sm:$0xff] }
 0x49b   : > { %v4633_v1 = vld [vmem:[#allocation3 + $0x11] sm:$0xff]  ;;  %v4582_v6 = vpop.f32.mrf.mxu1  ;;  %v6135_v41 = vpack.c.bf16 %v4779_v37, %v4779_v37 }
 0x49c   : > { %v6118_v54 = vpack.c.bf16 %v4633_v1, %v4633_v1  ;;  %4591 = vst [vmem:[#allocation3 + $0x28] sm:$0xff] %v4582_v6  ;;  %v6115_v62 = vpack.c.bf16 %v4582_v6, %v4582_v6  ;;  %v4682_v32 = vld [vmem:[#allocation3 + $0x12] sm:$0xff] }
 0x49d   : > { %v4584_v0 = vpop.f32.mrf.mxu1  ;;  %v6124_v26 = vpack.c.bf16 %v4682_v32, %v4682_v32  ;;  %v4731_v47 = vld [vmem:[#allocation3 + $0x13] sm:$0xff] }
 0x49e   : > { %4706 = vrot.lane.b32.xlu0 %v6123_v3, %s6942_s16  ;;  %4659 = vrot.lane.b32.xlu1 %v6118_v54, %s6940_s14  ;;  %4630 = vst.msk [vmem:[#allocation5 + $0x14] sm:$0xf] %vm4624_vm9, %v6115_v62  ;;  %v6130_v43 = vpack.c.bf16 %v4731_v47, %v4731_v47  ;;  %v4780_v22 = vld [vmem:[#allocation3 + $0x14] sm:$0xff]  ;;  %v6910_v47 = vld [vmem:[%s8533_s5 + $0x10] sm:$0xff]  }
 0x49f   : > { %v6136_v63 = vpack.c.bf16 %v4780_v22, %v4780_v22  ;;  %v4634_v14 = vld [vmem:[#allocation3 + $0x19] sm:$0xff]  ;;  %v6907_v6 = vld [vmem:[%s8533_s5 + $0x20] sm:$0xff]  }
 0x4a0   : > { %v6119_v24 = vpack.c.bf16 %v4634_v14, %v4634_v14  ;;  %v4683_v51 = vld [vmem:[#allocation3 + $0x1a] sm:$0xff]  ;;  %v6917_v14 = vld [vmem:[%s8533_s5 + $0xb8] sm:$0xff]  }
 0x4a1   : > { %v6125_v50 = vpack.c.bf16 %v4683_v51, %v4683_v51  ;;  %v4732_v48 = vld [vmem:[#allocation3 + $0x1b] sm:$0xff] }
 0x4a2   : > { %4755 = vrot.lane.b32.xlu0 %v6129_v17, %s6944_s13  ;;  %4708 = vrot.lane.b32.xlu1 %v6124_v26, %s6942_s16  ;;  %v6131_v36 = vpack.c.bf16 %v4732_v48, %v4732_v48  ;;  %v4781_v15 = vld [vmem:[#allocation3 + $0x1c] sm:$0xff]  ;;  %v6908_v17 = vld [vmem:[%s8533_s5 + $0x18] sm:$0xff]  }
 0x4a3   : > { %v4635_v21 = vld [vmem:[#allocation3 + $0x21] sm:$0xff]  ;;  %v6137_v49 = vpack.c.bf16 %v4781_v15, %v4781_v15  ;;  %v4636_v18 = vld [vmem:[#allocation3 + $0x29] sm:$0xff]  ;;  %v6920_v48 = vld [vmem:[%s8533_s5 + $0x88] sm:$0xff]  }
 0x4a4   : > { %v6120_v9 = vpack.c.bf16 %v4635_v21, %v4635_v21  ;;  %v4684_v58 = vld [vmem:[#allocation3 + $0x22] sm:$0xff]  ;;  %v6121_v23 = vpack.c.bf16 %v4636_v18, %v4636_v18  ;;  %v4685_v31 = vld [vmem:[#allocation3 + $0x2a] sm:$0xff] }
 0x4a5   : > { %v6126_v45 = vpack.c.bf16 %v4684_v58, %v4684_v58  ;;  %v4733_v8 = vld [vmem:[#allocation3 + $0x23] sm:$0xff]  ;;  %v6127_v55 = vpack.c.bf16 %v4685_v31, %v4685_v31  ;;  %v4734_v27 = vld [vmem:[#allocation3 + $0x2b] sm:$0xff]  ;;  %v5317_v58 = vld [vmem:[%s8534_s6 + $0x68] sm:$0xff] }
 0x4a6   : > { %4804 = vrot.lane.b32.xlu0 %v6135_v41, %s6945_s15  ;;  %4757 = vrot.lane.b32.xlu1 %v6130_v43, %s6944_s13  ;;  %v6132_v20 = vpack.c.bf16 %v4733_v8, %v4733_v8  ;;  %v4782_v19 = vld [vmem:[#allocation3 + $0x24] sm:$0xff]  ;;  %v6133_v56 = vpack.c.bf16 %v4734_v27, %v4734_v27  ;;  %v4783_v60 = vld [vmem:[#allocation3 + $0x2c] sm:$0xff]  ;;  %v6911_v41 = vld [vmem:[%s8533_s5 + $0x8] sm:$0xff]  }
 0x4a7   : > { %v6138_v29 = vpack.c.bf16 %v4782_v19, %v4782_v19  ;;  %v6139_v11 = vpack.c.bf16 %v4783_v60, %v4783_v60  ;;  %v6913_v43 = vld [vmem:[%s8533_s5] sm:$0xff]   ;;  %v6919_v51 = vld [vmem:[%s8533_s5 + $0xb0] sm:$0xff]   ;;  %v6925_v15 = vld [vmem:[%s8533_s5 + $0x78] sm:$0xff]  }
 0x4a8   : > { %v5316_v18 = vld [vmem:[%s8534_s6 + $0x60] sm:$0xff]  ;;  %v5313_v8 = vld [vmem:[%s8534_s6 + $0x48] sm:$0xff] }
 0x4a9   : > { %v5312_v31 = vld [vmem:[%s8534_s6 + $0x40] sm:$0xff]  ;;  %v5309_v19 = vld [vmem:[%s8534_s6 + $0x28] sm:$0xff] }
 0x4aa   : > { %4655 = vrot.lane.b32.xlu0 %v6116_v30, %s6940_s14  ;;  %4806 = vrot.lane.b32.xlu1 %v6136_v63, %s6945_s15  ;;  %v5308_v27 = vld [vmem:[%s8534_s6 + $0x20] sm:$0xff]  ;;  %v5305_v60 = vld [vmem:[%s8534_s6 + $0x8] sm:$0xff] }
 0x4ae   : > { %4704 = vrot.lane.b32.xlu1 %v6122_v38, %s6942_s16  ;;  %4661 = vrot.lane.b32.xlu0 %v6119_v24, %s6940_s14 }
 0x4b2   : > { %4753 = vrot.lane.b32.xlu1 %v6128_v35, %s6944_s13  ;;  %4710 = vrot.lane.b32.xlu0 %v6125_v50, %s6942_s16  ;;  %v6918_v50 = vld [vmem:[%s8533_s5 + $0x90] sm:$0xff]  }
 0x4b6   : > { %4802 = vrot.lane.b32.xlu1 %v6134_v59, %s6945_s15  ;;  %4759 = vrot.lane.b32.xlu0 %v6131_v36, %s6944_s13  ;;  %v6923_v59 = vld [vmem:[%s8533_s5 + $0xa0] sm:$0xff]  }
 0x4b7   : > { %v6922_v36 = vld [vmem:[%s8533_s5 + $0x80] sm:$0xff]  }
 0x4ba   : > { %4808 = vrot.lane.b32.xlu1 %v6137_v49, %s6945_s15  ;;  %4663 = vrot.lane.b32.xlu0 %v6120_v9, %s6940_s14  ;;  %v5319_v49 = vld [vmem:[%s8534_s6 + $0x78] sm:$0xff]  ;;  %v5318_v9 = vld [vmem:[%s8534_s6 + $0x70] sm:$0xff] }
 0x4be   : > { %4712 = vrot.lane.b32.xlu1 %v6126_v45, %s6942_s16  ;;  %4665 = vrot.lane.b32.xlu0 %v6121_v23, %s6940_s14  ;;  %v5315_v45 = vld [vmem:[%s8534_s6 + $0x58] sm:$0xff]  ;;  %v5314_v23 = vld [vmem:[%s8534_s6 + $0x50] sm:$0xff] }
 0x4c2   : > { %4761 = vrot.lane.b32.xlu1 %v6132_v20, %s6944_s13  ;;  %4714 = vrot.lane.b32.xlu0 %v6127_v55, %s6942_s16  ;;  %v5311_v20 = vld [vmem:[%s8534_s6 + $0x38] sm:$0xff]  ;;  %v5310_v55 = vld [vmem:[%s8534_s6 + $0x30] sm:$0xff] }
 0x4c6   : > { %4810 = vrot.lane.b32.xlu1 %v6138_v29, %s6945_s15  ;;  %4763 = vrot.lane.b32.xlu0 %v6133_v56, %s6944_s13  ;;  %v5307_v29 = vld [vmem:[%s8534_s6 + $0x18] sm:$0xff]  ;;  %v5306_v56 = vld [vmem:[%s8534_s6 + $0x10] sm:$0xff] }
 0x4ca   : > { %4812 = vrot.lane.b32.xlu1 %v6139_v11, %s6945_s15  ;;  %v5304_v11 = vld [vmem:[%s8534_s6] sm:$0xff] }
 0x50c   : > { %v4658_v39 = vpop.permute.xlu0 %4657 }
 0x50d   : > { %4675 = vst.msk [vmem:[#allocation5 + $0x4] sm:$0xf] %vm4673_vm11, %v4658_v39 }
 0x510   : > { %v4707_v61 = vpop.permute.xlu0 %4706  ;;  %v4660_v5 = vpop.permute.xlu1 %4659 }
 0x511   : > { %4724 = vst.msk [vmem:[#allocation5 + $0x4] sm:$0xf] %vm4722_vm12, %v4707_v61 }
 0x512   : > { %4676 = vst.msk [vmem:[#allocation5 + $0x8] sm:$0xf] %vm4673_vm11, %v4660_v5 }
 0x514   : > { %v4756_v13 = vpop.permute.xlu0 %4755  ;;  %v4709_v34 = vpop.permute.xlu1 %4708 }
 0x515   : > { %4773 = vst.msk [vmem:[#allocation5 + $0x4] sm:$0xf] %vm4771_vm13, %v4756_v13 }
 0x516   : > { %4725 = vst.msk [vmem:[#allocation5 + $0x8] sm:$0xf] %vm4722_vm12, %v4709_v34 }
 0x518   : > { %v4805_v46 = vpop.permute.xlu0 %4804  ;;  %v4758_v25 = vpop.permute.xlu1 %4757 }
 0x519   : > { %4822 = vst.msk [vmem:[#allocation5 + $0x4] sm:$0xf] %vm4820_vm14, %v4805_v46 }
 0x51a   : > { %4774 = vst.msk [vmem:[#allocation5 + $0x8] sm:$0xf] %vm4771_vm13, %v4758_v25 }
 0x51c   : > { %v4656_v53 = vpop.permute.xlu0 %4655  ;;  %v4807_v2 = vpop.permute.xlu1 %4806 }
 0x51d   : > { %4674 = vst.msk [vmem:[#allocation5] sm:$0xf] %vm4673_vm11, %v4656_v53 }
 0x51e   : > { %4823 = vst.msk [vmem:[#allocation5 + $0x8] sm:$0xf] %vm4820_vm14, %v4807_v2 }
 0x520   : > { %v4705_v42 = vpop.permute.xlu1 %4704  ;;  %v4662_v1 = vpop.permute.xlu0 %4661  ;;  %v4828_v62 = vld [vmem:[#allocation5 + $0x4] sm:$0xf] }
 0x521   : > { %4723 = vst.msk [vmem:[#allocation5] sm:$0xf] %vm4722_vm12, %v4705_v42 }
 0x522   : > { %4677 = vst.msk [vmem:[#allocation5 + $0xc] sm:$0xf] %vm4673_vm11, %v4662_v1 }
 0x524   : > { %v4754_v3 = vpop.permute.xlu1 %4753  ;;  %v4711_v54 = vpop.permute.xlu0 %4710 }
 0x525   : > { %v4839_v57 = vld [vmem:[#allocation5 + $0x8] sm:$0xf]  ;;  %4772 = vst.msk [vmem:[#allocation5] sm:$0xf] %vm4771_vm13, %v4754_v3 }
 0x526   : > { %4726 = vst.msk [vmem:[#allocation5 + $0xc] sm:$0xf] %vm4722_vm12, %v4711_v54  ;;  %v5911_v32 = vcombine.low %v4828_v62, %v4839_v57 }
 0x528   : > { %6639 = vmatmul.mubr.msk.bf16.vlgmr.msra.gmra.mxu1 %vm4885_vm15, %v5911_v32  ;;  %v4803_v0 = vpop.permute.xlu1 %4802  ;;  %v4760_v10 = vpop.permute.xlu0 %4759 }
 0x529   : > { %6643 = vmatpush3.bf16.msra.mxu1 %v6907_v6  ;;  %6652 = vmatprep.mubr.msk.bf16.mxu1 %vm6946_vm10, %v8336_v40  ;;  %4821 = vst.msk [vmem:[#allocation5] sm:$0xf] %vm4820_vm14, %v4803_v0 }
 0x52a   : > { %4775 = vst.msk [vmem:[#allocation5 + $0xc] sm:$0xf] %vm4771_vm13, %v4760_v10  ;;  %6644 = vmatprep.subr.bf16.mxu1 %v8336_v40 }
 0x52c   : > { %v4809_v26 = vpop.permute.xlu1 %4808  ;;  %v4664_v37 = vpop.permute.xlu0 %4663 }
 0x52d   : > { %6645 = vmatpush3.bf16.msra.mxu1 %v6908_v17  ;;  %4824 = vst.msk [vmem:[#allocation5 + $0xc] sm:$0xf] %vm4820_vm14, %v4809_v26  ;;  %v5946_v26 = vld [vmem:[%s8530_s2 + $0x2] ss:$0 sm:$0xff] }
 0x52e   : > { %4678 = vst.msk [vmem:[#allocation5 + $0x10] sm:$0xf] %vm4673_vm11, %v4664_v37  ;;  %6646 = vmatprep.subr.bf16.mxu1 %v8336_v40 }
 0x530   : > { %v4713_v16 = vpop.permute.xlu1 %4712  ;;  %v4666_v52 = vpop.permute.xlu0 %4665  ;;  %v4827_v44 = vld [vmem:[#allocation5] sm:$0xf] }
 0x531   : > { %6647 = vmatpush3.bf16.msra.mxu1 %v6910_v47  ;;  %4727 = vst.msk [vmem:[#allocation5 + $0x10] sm:$0xf] %vm4722_vm12, %v4713_v16  ;;  %v5918_v12 = vcombine.low %v4827_v44, %v4828_v62 }
 0x532   : > { %4679 = vst.msk [vmem:[#allocation5 + $0x14] sm:$0xf] %vm4673_vm11, %v4666_v52  ;;  %6648 = vmatprep.subr.bf16.mxu1 %v8336_v40 }
 0x534   : > { %v4762_v22 = vpop.permute.xlu1 %4761  ;;  %v4715_v30 = vpop.permute.xlu0 %4714  ;;  %v6914_v63 = vld [vmem:[#allocation5 + $0x8] sm:$0xff]  }
 0x535   : > { %6649 = vmatpush3.bf16.msra.mxu1 %v6911_v41  ;;  %4776 = vst.msk [vmem:[#allocation5 + $0x10] sm:$0xf] %vm4771_vm13, %v4762_v22  ;;  %6667 = vmatmul.mubr.msk.bf16.vlgmr.msra.gmra.mxu0 %vm4885_vm15, %v6914_v63 }
 0x536   : > { %4728 = vst.msk [vmem:[#allocation5 + $0x14] sm:$0xf] %vm4722_vm12, %v4715_v30  ;;  %6650 = vmatprep.subr.bf16.mxu1 %v8336_v40  ;;  %6685 = vmatpush3.bf16.msra.mxu0 %v6915_v7 }
 0x537   : > { %6694 = vmatprep.mubr.msk.bf16.mxu0 %vm6946_vm10, %v8336_v40  ;;  %6686 = vmatprep.subr.bf16.mxu0 %v8336_v40 }
 0x538   : > { %v4811_v38 = vpop.permute.xlu1 %4810  ;;  %v4764_v24 = vpop.permute.xlu0 %4763 }
 0x539   : > { %6651 = vmatpush3.bf16.msra.mxu1 %v6913_v43  ;;  %4825 = vst.msk [vmem:[#allocation5 + $0x10] sm:$0xf] %vm4820_vm14, %v4811_v38 }
 0x53a   : > { %4777 = vst.msk [vmem:[#allocation5 + $0x14] sm:$0xf] %vm4771_vm13, %v4764_v24  ;;  %6670 = vmatprep.subr.bf16.mxu1 %v8336_v40  ;;  %6687 = vmatpush3.bf16.msra.mxu0 %v6917_v14 }
 0x53b   : > { %6688 = vmatprep.subr.bf16.mxu0 %v8336_v40 }
 0x53c   : > { %6653 = vmatmul.mubr.msk.bf16.vlgmr.msra.gmra.mxu1 %vm4885_vm15, %v5918_v12  ;;  %v4813_v35 = vpop.permute.xlu1 %4812 }
 0x53d   : > { %6671 = vmatpush3.bf16.msra.mxu1 %v6916_v33  ;;  %4826 = vst.msk [vmem:[#allocation5 + $0x14] sm:$0xf] %vm4820_vm14, %v4813_v35  ;;  %6680 = vmatprep.mubr.msk.bf16.mxu1 %vm6946_vm10, %v8336_v40  ;;  %v5390_v35 = vlaneseq }
 0x53e   : > { %6672 = vmatprep.subr.bf16.mxu1 %v8336_v40  ;;  %6689 = vmatpush3.bf16.msra.mxu0 %v6919_v51 }
 0x53f   : > { %6690 = vmatprep.subr.bf16.mxu0 %v8336_v40 }
 0x540   : > { %v6926_v21 = vld [vmem:[#allocation5 + $0xc] sm:$0xff]  }
 0x541   : > { %6673 = vmatpush3.bf16.msra.mxu1 %v6918_v50  ;;  %v5391_v50 = vshrl.u32 %v5390_v35, 7 }
 0x542   : > { %6674 = vmatprep.subr.bf16.mxu1 %v8336_v40  ;;  %6691 = vmatpush3.bf16.msra.mxu0 %v6921_v28  ;;  %v281_v28 = vld [vmem:[%s8530_s2 + $0x3] sm:$0x1] }
 0x543   : > { %6692 = vmatprep.subr.bf16.mxu0 %v8336_v40 }
 0x544   : > { %v6924_v4 = vld [vmem:[#allocation5 + $0x10] sm:$0xff]  }
 0x545   : > { %6675 = vmatpush3.bf16.msra.mxu1 %v6920_v48  ;;  %v5392_v48 = vsub.s32 0, %v5391_v50 }
 0x546   : > { %6676 = vmatprep.subr.bf16.mxu1 %v8336_v40  ;;  %6693 = vmatpush3.bf16.msra.mxu0 %v6923_v59 }
 0x549   : > { %6677 = vmatpush3.bf16.msra.mxu1 %v6922_v36  ;;  %6695 = vmatmul.mubr.msk.bf16.vlgmr.msra.gmra.mxu0 %vm4885_vm15, %v6924_v4 }
 0x54a   : > { %6678 = vmatprep.subr.bf16.mxu1 %v8336_v40 }
 0x54d   : > { %6679 = vmatpush3.bf16.msra.mxu1 %v6925_v15 }
 0x54e   : > { %6698 = vmatprep.subr.mxu1 %v8336_v40 }
 0x550   : > { %6681 = vmatmul.mubr.msk.bf16.vlgmr.msra.gmra.mxu1 %vm4885_vm15, %v6926_v21 }
 0x551   : > { %6730 = vmatprep.mubr.msk.f32.mxu1 %vm6946_vm10, %v8336_v40  ;;  %6699 = vmatpush3.msra.mxu1 %v5319_v49 }
 0x552   : > { %6700 = vmatprep.subr.mxu1 %v8336_v40 }
 0x553   : > { %6701 = vmatpush3.msra.mxu1 %v5318_v9 }
 0x554   : > { %6702 = vmatprep.subr.mxu1 %v8336_v40 }
 0x555   : > { %6703 = vmatpush3.msra.mxu1 %v5317_v58 }
 0x556   : > { %6704 = vmatprep.subr.mxu1 %v8336_v40 }
 0x557   : > { %6705 = vmatpush3.msra.mxu1 %v5316_v18 }
 0x558   : > { %6706 = vmatprep.subr.mxu1 %v8336_v40 }
 0x559   : > { %6707 = vmatpush3.msra.mxu1 %v5315_v45 }
 0x55a   : > { %6708 = vmatprep.subr.mxu1 %v8336_v40 }
 0x55b   : > { %6709 = vmatpush3.msra.mxu1 %v5314_v23 }
 0x55c   : > { %6710 = vmatprep.subr.mxu1 %v8336_v40 }
 0x55d   : > { %6711 = vmatpush3.msra.mxu1 %v5313_v8 }
 0x55e   : > { %6712 = vmatprep.subr.mxu1 %v8336_v40 }
 0x55f   : > { %6713 = vmatpush3.msra.mxu1 %v5312_v31 }
 0x560   : > { %6714 = vmatprep.subr.mxu1 %v8336_v40 }
 0x561   : > { %6715 = vmatpush3.msra.mxu1 %v5311_v20 }
 0x562   : > { %6716 = vmatprep.subr.mxu1 %v8336_v40 }
 0x563   : > { %6717 = vmatpush3.msra.mxu1 %v5310_v55 }
 0x564   : > { %6718 = vmatprep.subr.mxu1 %v8336_v40 }
 0x565   : > { %6719 = vmatpush3.msra.mxu1 %v5309_v19 }
 0x566   : > { %6720 = vmatprep.subr.mxu1 %v8336_v40 }
 0x567   : > { %6721 = vmatpush3.msra.mxu1 %v5308_v27 }
 0x568   : > { %6722 = vmatprep.subr.mxu1 %v8336_v40 }
 0x569   : > { %6723 = vmatpush3.msra.mxu1 %v5307_v29 }
 0x56a   : > { %6724 = vmatprep.subr.mxu1 %v8336_v40 }
 0x56b   : > { %6725 = vmatpush3.msra.mxu1 %v5306_v56 }
 0x56c   : > { %6726 = vmatprep.subr.mxu1 %v8336_v40 }
 0x56d   : > { %6727 = vmatpush3.msra.mxu1 %v5305_v60 }
 0x56e   : > { %6728 = vmatprep.subr.mxu1 %v8336_v40 }
 0x56f   : > { %6729 = vmatpush3.msra.mxu1 %v5304_v11 }
 0x5e8   : > { %v4923_v39 = vpop.f32.mrf.mxu1 }
 0x5ea   : > { %v6640_v61 = vpop.f32.mrf.mxu1 }
 0x5ec   : > { %v4926_v5 = vpop.f32.mrf.mxu1 }
 0x5ee   : > { %v6641_v13 = vpop.f32.mrf.mxu1 }
 0x5f5   : > { %v5091_v34 = vpop.f32.mrf.mxu0 }
 0x5f7   : > { %v6668_v46 = vpop.f32.mrf.mxu0 }
 0x5f9   : > { %v5094_v25 = vpop.f32.mrf.mxu0 }
 0x5fb   : > { %v6669_v2 = vpop.f32.mrf.mxu0 }
 0x5fc   : > { %v5000_v53 = vpop.f32.mrf.mxu1 }
 0x5fd   : > { %v5001_v3 = vadd.f32 %v5000_v53, %v4923_v39 }
 0x5fe   : > { %v6654_v42 = vpop.f32.mrf.mxu1 }
 0x5ff   : > { %v5098_v32 = vadd.f32 %v5091_v34, %v5001_v3 }
 0x600   : > { %v5003_v1 = vpop.f32.mrf.mxu1 }
 0x601   : > { %v5004_v57 = vadd.f32 %v5003_v1, %v4926_v5 }
 0x602   : > { %v6655_v6 = vpop.f32.mrf.mxu1 }
 0x603   : > { %v5099_v16 = vadd.f32 %v5094_v25, %v5004_v57 }
 0x609   : > { %v5277_v54 = vpop.f32.mrf.mxu0 }
 0x60b   : > { %v6696_v62 = vpop.f32.mrf.mxu0 }
 0x60d   : > { %v5280_v0 = vpop.f32.mrf.mxu0 }
 0x60f   : > { %v6697_v17 = vpop.f32.mrf.mxu0 }
 0x610   : > { %v5184_v40 = vpop.f32.mrf.mxu1 }
 0x611   : > { %v5191_v10 = vadd.f32 %v5184_v40, %v5098_v32 }
 0x612   : > { %v6682_v37 = vpop.f32.mrf.mxu1 }
 0x613   : > { %v5284_v47 = vadd.f32 %v5277_v54, %v5191_v10 }
 0x614   : > { %v5187_v52 = vpop.f32.mrf.mxu1 }
 0x615   : > { %v5290_v41 = vadd.f32 %v5946_v26, %v5284_v47  ;;  %v5192_v43 = vadd.f32 %v5187_v52, %v5099_v16 }
 0x616   : > { %v6683_v7 = vpop.f32.mrf.mxu1 }
 0x617   : > { %v5292_v22 = vmax.f32 %v5290_v41, 0.0  ;;  %v5285_v30 = vadd.f32 %v5280_v0, %v5192_v43 }
 0x619   : > { %v5295_v63 = vrot.slane %v5292_v22, 1  ;;  %v5291_v44 = vadd.f32 %v5946_v26, %v5285_v30 }
 0x61b   : > { %v5297_v14 = vadd.f32 %v5295_v63, %v5292_v22  ;;  %v5293_v38 = vmax.f32 %v5291_v44, 0.0 }
 0x61d   : > { %v5298_v24 = vadd.f32 %v5297_v14, %v5293_v38  ;;  %v5300_v33 = vrot.slane %v5293_v38, 1 }
 0x61f   : > { %v5302_v12 = vadd.f32 %v5300_v33, %v5298_v24 }
 0x621   : > { %v5303_v51 = vmul.f32 0.25, %v5302_v12 }
 0x623   : > { %6731 = vmatmul.mubr.f32.vlgmr.msra.gmra.mxu1 %v5303_v51 }
 0x6e3   : > { %v5386_v59 = vpop.f32.mrf.mxu1 }
 0x6e4   : > { %v5387_v36 = vadd.f32 %v5386_v59, %v281_v28 }
 0x6e5   : > { %v6732_v4 = vpop.f32.mrf.mxu1 }
 0x6e6   : > { %v5393_v15 = vrot.slane %v5387_v36, %v5392_v48 }
 0x6e8   : > { %5394 = vst [vmem:[%s276_s11] sm:$0xff] %v5393_v15 }
 0x6e9 PF: > { %s17_s24 = sadd.s32 1, %s6936_s24  }
 0x6ea   : > { %p14_p4 = scmp.ge.s32.totalorder %s17_s24, 4  }
 0x6ec   :  { %16 = sbr.rel (!%p14_p4) target bundleno = 1 (0x1), region = 78 }

</bundles_post_ra>
